<compile_context>
chip_gen: v7x
topology: tpu7x:2x2x1
jax: 0.10.0
libtpu: 0.0.40
codegen_flags: <defaults>
</compile_context>

<pallas_src>
import functools

import jax
import jax.numpy as jnp
from jax import lax
from jax.experimental import pallas as pl
from jax.experimental.pallas import tpu as pltpu


_VMEM = pl.BlockSpec(memory_space=pltpu.MemorySpace.VMEM)


# ----------------------------------------------------------------------------
# In-kernel building blocks
# ----------------------------------------------------------------------------
def _bilstm_layer(src_ref, wih_ref, whh_f_ref, whh_b_ref, b_ref, dst_ref,
                  xproj_ref, *, H, T, Bp, unroll):
    """One fused bidirectional LSTM layer over a full (flattened) sequence.

    src_ref:   (T*Bp, D_in)  time-major rows (ref or VMEM scratch)
    wih_ref:   (D_in, 8H)    columns [i_f f_f o_f g_f | i_b f_b o_b g_b]
    whh_*_ref: (H, 4H)       per-direction recurrent weights, cols [i f o g]
    b_ref:     (1, 8H)       b_ih + b_hh, same column layout as wih
    dst_ref:   (T*Bp, 2H)    h_fwd in lanes [0,H), time-aligned h_bwd in [H,2H)
    xproj_ref: (T*Bp, 8H)    VMEM scratch: x @ W_ih + b for all timesteps
    """
    G = 4 * H

    # (1) Hoisted non-recurrent projection: one MXU matmul over all
    #     timesteps, bias folded in once.
    xproj_ref[...] = (jnp.dot(src_ref[...], wih_ref[...],
                              preferred_element_type=jnp.float32)
                      + b_ref[...])

    whh_f = whh_f_ref[...]                                 # (H, 4H)
    whh_b = whh_b_ref[...]                                 # (H, 4H)

    # (2) Serial recurrence: only h @ W_hh + activations remain on the
    #     critical path.  Both directions advance in the same step; carries
    #     are kept separate (no per-step concatenates).
    def step(t, carry):
        h_f, h_b, c_f, c_b = carry                         # (Bp, H) each
        rf = pl.multiple_of(t * Bp, 8)                     # fwd: time t
        rb = pl.multiple_of((T - 1 - t) * Bp, 8)           # bwd: time T-1-t

        zf = xproj_ref[pl.ds(rf, Bp), pl.ds(0, G)] + jnp.dot(
            h_f, whh_f, preferred_element_type=jnp.float32)
        zb = xproj_ref[pl.ds(rb, Bp), pl.ds(G, G)] + jnp.dot(
            h_b, whh_b, preferred_element_type=jnp.float32)

        # One wide sigmoid per direction (i,f,o lane-contiguous), one tanh
        # for the cell candidate, one tanh for the new cell state.
        sf = jax.nn.sigmoid(zf[:, 0:3 * H])                # (Bp, 3H)
        sb = jax.nn.sigmoid(zb[:, 0:3 * H])
        g_f = jnp.tanh(zf[:, 3 * H:4 * H])                 # (Bp, H)
        g_b = jnp.tanh(zb[:, 3 * H:4 * H])

        c_f = sf[:, H:2 * H] * c_f + sf[:, 0:H] * g_f
        c_b = sb[:, H:2 * H] * c_b + sb[:, 0:H] * g_b
        h_f = sf[:, 2 * H:3 * H] * jnp.tanh(c_f)
        h_b = sb[:, 2 * H:3 * H] * jnp.tanh(c_b)

        dst_ref[pl.ds(rf, Bp), pl.ds(0, H)] = h_f
        dst_ref[pl.ds(rb, Bp), pl.ds(H, H)] = h_b
        return (h_f, h_b, c_f, c_b)

    z = jnp.zeros((Bp, H), jnp.float32)
    lax.fori_loop(0, T, step, (z, z, z, z), unroll=unroll)


def _bilstm_stack_kernel(*refs, num_layers, H, T, Bp, unroll):
    """Full stack: num_layers fused BiLSTM layers + Linear head on t = T-1.

    refs layout:
      inputs : x, (wih, whh_f, whh_b, b) * num_layers, wlin, blin
      outputs: logits (Bp, O_pad)
      scratch: seq_a (T*Bp,2H), seq_b (T*Bp,2H), xproj (T*Bp,8H)
    """
    x_ref = refs[0]
    w_refs = refs[1:1 + 4 * num_layers]
    wlin_ref = refs[1 + 4 * num_layers]
    blin_ref = refs[2 + 4 * num_layers]
    logits_ref = refs[3 + 4 * num_layers]
    seq_a, seq_b, xproj = refs[4 + 4 * num_layers:7 + 4 * num_layers]

    src = x_ref
    dsts = (seq_a, seq_b)
    for li in range(num_layers):
        wih, whh_f, whh_b, b = w_refs[4 * li:4 * li + 4]
        dst = dsts[li % 2]
        _bilstm_layer(src, wih, whh_f, whh_b, b, dst, xproj,
                      H=H, T=T, Bp=Bp, unroll=unroll)
        src = dst

    # Fused Linear head on r_out[:, -1, :] (row block t = T-1); the last
    # layer's hidden sequence never leaves VMEM.
    last = src[(T - 1) * Bp:T * Bp, :]                     # (Bp, 2H)
    logits_ref[...] = (jnp.dot(last, wlin_ref[...],
                               preferred_element_type=jnp.float32)
                       + blin_ref[...])


# ----------------------------------------------------------------------------
# Weight preparation (PyTorch layout -> MXU-ready, gate-reordered layout)
# ----------------------------------------------------------------------------
def _reorder_gate_cols(wt, H):
    """Columns in PyTorch gate order [i | f | g | o] -> [i | f | o | g]."""
    return jnp.concatenate(
        [wt[:, 0:2 * H], wt[:, 3 * H:4 * H], wt[:, 2 * H:3 * H]], axis=1)


def _prep_layer_weights(lp, H):
    f, b = lp["fwd"], lp["bwd"]
    wih = jnp.concatenate([_reorder_gate_cols(f["wih"].T, H),
                           _reorder_gate_cols(b["wih"].T, H)], axis=1)   # (D,8H)
    whh_f = _reorder_gate_cols(f["whh"].T, H)                            # (H,4H)
    whh_b = _reorder_gate_cols(b["whh"].T, H)                            # (H,4H)
    bias = jnp.concatenate(
        [_reorder_gate_cols((f["b_ih"] + f["b_hh"])[None, :], H),
         _reorder_gate_cols((b["b_ih"] + b["b_hh"])[None, :], H)],
        axis=1)                                                          # (1,8H)
    return wih, whh_f, whh_b, bias


def _padded_bytes(shape, itemsize=4):
    """Bytes of a VMEM-resident array with (8,128) layout padding."""
    r = shape[-2] if len(shape) >= 2 else 1
    c = shape[-1]
    r = -(-r // 8) * 8
    c = -(-c // 128) * 128
    lead = 1
    for s in shape[:-2]:
        lead *= s
    return lead * r * c * itemsize


def _vmem_limit_bytes(TB, D, H, L, Bp, Op):
    total = _padded_bytes((TB, D))
    total += 2 * _padded_bytes((TB, 2 * H)) + _padded_bytes((TB, 8 * H))
    d_in = D
    for _ in range(L):
        total += (_padded_bytes((d_in, 8 * H))
                  + 2 * _padded_bytes((H, 4 * H))
                  + _padded_bytes((1, 8 * H)))
        d_in = 2 * H
    total += _padded_bytes((2 * H, Op)) + _padded_bytes((1, Op))
    total += _padded_bytes((Bp, Op))
    # 2x headroom for I/O staging, floor at 32 MiB, cap below v5e/v6e physical.
    return int(min(96 * 2 ** 20, max(32 * 2 ** 20, 2 * total + (4 << 20))))


# ----------------------------------------------------------------------------
# Parameter init (mirrors PyTorch shapes & default init scheme)
# ----------------------------------------------------------------------------
def init_bilstm_params(key, input_size, hidden_size, num_layers, output_size):
    k_lstm = 1.0 / float(hidden_size) ** 0.5
    params = {"layers": []}
    for layer in range(num_layers):
        in_size = input_size if layer == 0 else 2 * hidden_size
        layer_params = {}
        for direction in ("fwd", "bwd"):
            key, k1, k2, k3, k4 = jax.random.split(key, 5)
            layer_params[direction] = {
                "wih": jax.random.uniform(k1, (4 * hidden_size, in_size),
                                          jnp.float32, -k_lstm, k_lstm),
                "whh": jax.random.uniform(k2, (4 * hidden_size, hidden_size),
                                          jnp.float32, -k_lstm, k_lstm),
                "b_ih": jax.random.uniform(k3, (4 * hidden_size,),
                                           jnp.float32, -k_lstm, k_lstm),
                "b_hh": jax.random.uniform(k4, (4 * hidden_size,),
                                           jnp.float32, -k_lstm, k_lstm),
            }
        params["layers"].append(layer_params)

    k_lin = 1.0 / float(2 * hidden_size) ** 0.5
    key, k1, k2 = jax.random.split(key, 3)
    params["linear"] = {
        "w": jax.random.uniform(k1, (output_size, 2 * hidden_size),
                                jnp.float32, -k_lin, k_lin),
        "b": jax.random.uniform(k2, (output_size,),
                                jnp.float32, -k_lin, k_lin),
    }
    return params


# ----------------------------------------------------------------------------
# Full forward (matches BiLSTM.forward: linear applied to r_out[:, -1, :])
# ----------------------------------------------------------------------------
def bilstm_forward(x, params):
    """x: (B, T, input_size) float32 -> (B, output_size) float32"""
    x = x.astype(jnp.float32)
    B, T, D = x.shape
    H = params["layers"][0]["fwd"]["whh"].shape[1]
    L = len(params["layers"])
    Bp = ((B + 7) // 8) * 8                              # sublane-pad batch

    x_tm = jnp.transpose(x, (1, 0, 2))                   # (T, B, D) time-major
    if Bp != B:
        x_tm = jnp.pad(x_tm, ((0, 0), (0, Bp - B), (0, 0)))
    x2d = x_tm.reshape(T * Bp, D)

    # Linear head, output lane-padded to 128 for a lane-dense store.
    w = params["linear"]["w"]                            # (O, 2H)
    b = params["linear"]["b"]
    O = w.shape[0]
    Op = ((O + 127) // 128) * 128
    wlin = jnp.pad(w.T, ((0, 0), (0, Op - O)))           # (2H, Op)
    blin = jnp.pad(b, (0, Op - O))[None, :]              # (1, Op)

    weight_args = []
    for lp in params["layers"]:
        weight_args.extend(_prep_layer_weights(lp, H))

    TB = T * Bp
    unroll = True if T <= 16 else 4

    kernel = functools.partial(_bilstm_stack_kernel, num_layers=L, H=H,
                               T=T, Bp=Bp, unroll=unroll)

    logits = pl.pallas_call(
        kernel,
        out_shape=jax.ShapeDtypeStruct((Bp, Op), jnp.float32),
        in_specs=[_VMEM] * (3 + 4 * L),
        out_specs=_VMEM,
        scratch_shapes=[pltpu.VMEM((TB, 2 * H), jnp.float32),
                        pltpu.VMEM((TB, 2 * H), jnp.float32),
                        pltpu.VMEM((TB, 8 * H), jnp.float32)],
        compiler_params=pltpu.CompilerParams(
            vmem_limit_bytes=_vmem_limit_bytes(TB, D, H, L, Bp, Op)),
    )(x2d, *weight_args, wlin, blin)

    return logits[:B, :O]


# ----------------------------------------------------------------------------
# Pure-JAX reference (for in-script correctness check)
# ----------------------------------------------------------------------------
def _lstm_direction_ref(x_tm, wih, whh, b_ih, b_hh):
    H = whh.shape[1]
    B = x_tm.shape[1]

    def cell(carry, x_t):
        h, c = carry
        z = x_t @ wih.T + h @ whh.T + b_ih + b_hh
        i = jax.nn.sigmoid(z[:, 0:H])
        f = jax.nn.sigmoid(z[:, H:2 * H])
        g = jnp.tanh(z[:, 2 * H:3 * H])
        o = jax.nn.sigmoid(z[:, 3 * H:4 * H])
        c_new = f * c + i * g
        h_new = o * jnp.tanh(c_new)
        return (h_new, c_new), h_new

    init = (jnp.zeros((B, H), jnp.float32), jnp.zeros((B, H), jnp.float32))
    _, out = lax.scan(cell, init, x_tm)
    return out


def bilstm_forward_ref(x, params):
    x_tm = jnp.transpose(x.astype(jnp.float32), (1, 0, 2))
    T = x_tm.shape[0]
    layer_in = x_tm
    for lp in params["layers"]:
        f, b = lp["fwd"], lp["bwd"]
        fwd = _lstm_direction_ref(layer_in, f["wih"], f["whh"],
                                  f["b_ih"], f["b_hh"])
        bwd = _lstm_direction_ref(layer_in[::-1], b["wih"], b["whh"],
                                  b["b_ih"], b["b_hh"])[::-1]
        layer_in = jnp.concatenate([fwd, bwd], axis=-1)
    last = layer_in[T - 1]
    return last @ params["linear"]["w"].T + params["linear"]["b"]


# ----------------------------------------------------------------------------
if __name__ == "__main__":
    INPUT_SIZE = 16
    HIDDEN_SIZE = 32
    NUM_LAYERS = 2
    OUTPUT_SIZE = 8
    BATCH = 4
    SEQ = 8

    key = jax.random.PRNGKey(0)
    key, xk, pk = jax.random.split(key, 3)
    x = jax.random.normal(xk, (BATCH, SEQ, INPUT_SIZE), jnp.float32)
    params = init_bilstm_params(pk, INPUT_SIZE, HIDDEN_SIZE,
                                NUM_LAYERS, OUTPUT_SIZE)

    out = jax.block_until_ready(jax.jit(bilstm_forward)(x, params))
    ref = jax.block_until_ready(bilstm_forward_ref(x, params))

    assert out.shape == (BATCH, OUTPUT_SIZE), out.shape
    assert jnp.allclose(out, ref, atol=1e-4, rtol=1e-4), (
        f"max abs err {float(jnp.max(jnp.abs(out - ref)))}")
    print("KERNEL_OK")
</pallas_src>

<mosaic_0001>
module attributes {stable_mosaic.version = 11 : i64} {
  func.func @_bilstm_stack_kernel(%arg0: memref<64x16xf32, #tpu.memory_space<vmem>>, %arg1: memref<16x256xf32, #tpu.memory_space<vmem>>, %arg2: memref<32x128xf32, #tpu.memory_space<vmem>>, %arg3: memref<32x128xf32, #tpu.memory_space<vmem>>, %arg4: memref<1x256xf32, #tpu.memory_space<vmem>>, %arg5: memref<64x256xf32, #tpu.memory_space<vmem>>, %arg6: memref<32x128xf32, #tpu.memory_space<vmem>>, %arg7: memref<32x128xf32, #tpu.memory_space<vmem>>, %arg8: memref<1x256xf32, #tpu.memory_space<vmem>>, %arg9: memref<64x128xf32, #tpu.memory_space<vmem>>, %arg10: memref<1x128xf32, #tpu.memory_space<vmem>>, %arg11: memref<8x128xf32, #tpu.memory_space<vmem>>, %arg12: memref<64x64xf32, #tpu.memory_space<vmem>>, %arg13: memref<64x64xf32, #tpu.memory_space<vmem>>, %arg14: memref<64x256xf32, #tpu.memory_space<vmem>>) attributes {dimension_semantics = [], scalar_prefetch = 0 : i64, scratch_operands = 3 : i64, tpu.core_type = #tpu.core_type<tc>} {
    %c0 = arith.constant 0 : index
    %c0_0 = arith.constant 0 : index
    %0 = vector.load %arg0[%c0, %c0_0] : memref<64x16xf32, #tpu.memory_space<vmem>>, vector<64x16xf32>
    %c0_1 = arith.constant 0 : index
    %c0_2 = arith.constant 0 : index
    %1 = vector.load %arg1[%c0_1, %c0_2] : memref<16x256xf32, #tpu.memory_space<vmem>>, vector<16x256xf32>
    %cst = arith.constant dense<0.000000e+00> : vector<64x256xf32>
    %2 = tpu.matmul %0, %1, %cst {dimension_numbers = #tpu.dot_dimension_numbers<[1], [0], [0], [1], [0, 0, 1, 1], [], []>} : vector<64x16xf32>, vector<16x256xf32>, vector<64x256xf32> -> vector<64x256xf32>
    %c0_3 = arith.constant 0 : index
    %c0_4 = arith.constant 0 : index
    %3 = vector.load %arg4[%c0_3, %c0_4] : memref<1x256xf32, #tpu.memory_space<vmem>>, vector<1x256xf32>
    %4 = vector.broadcast %3 : vector<1x256xf32> to vector<64x256xf32>
    %5 = arith.addf %2, %4 : vector<64x256xf32>
    %c0_5 = arith.constant 0 : index
    %c0_6 = arith.constant 0 : index
    %6 = vector.load %arg14[%c0_5, %c0_6] : memref<64x256xf32, #tpu.memory_space<vmem>>, vector<64x256xf32>
    tpu.vector_store %arg14[%c0_5, %c0_6], %5 {strides = array<i32>} : memref<64x256xf32, #tpu.memory_space<vmem>>, vector<64x256xf32>,
    %c0_7 = arith.constant 0 : index
    %c0_8 = arith.constant 0 : index
    %7 = vector.load %arg2[%c0_7, %c0_8] : memref<32x128xf32, #tpu.memory_space<vmem>>, vector<32x128xf32>
    %c0_9 = arith.constant 0 : index
    %c0_10 = arith.constant 0 : index
    %8 = vector.load %arg3[%c0_9, %c0_10] : memref<32x128xf32, #tpu.memory_space<vmem>>, vector<32x128xf32>
    %cst_11 = arith.constant 0.000000e+00 : f32
    %9 = vector.broadcast %cst_11 : f32 to vector<8x32xf32>
    %c0_i32 = arith.constant 0 : i32
    %c8_i32 = arith.constant 8 : i32
    %10 = arith.muli %c0_i32, %c8_i32 : i32
    %11 = tpu.assume_multiple %10, 8 : i32
    %c7_i32 = arith.constant 7 : i32
    %12 = arith.subi %c7_i32, %c0_i32 : i32
    %c8_i32_12 = arith.constant 8 : i32
    %13 = arith.muli %12, %c8_i32_12 : i32
    %14 = tpu.assume_multiple %13, 8 : i32
    %15 = arith.index_cast %11 : i32 to index
    %c0_13 = arith.constant 0 : index
    %16 = vector.load %arg14[%15, %c0_13] : memref<64x256xf32, #tpu.memory_space<vmem>>, vector<8x128xf32>
    %cst_14 = arith.constant dense<0.000000e+00> : vector<8x128xf32>
    %17 = tpu.matmul %9, %7, %cst_14 {dimension_numbers = #tpu.dot_dimension_numbers<[1], [0], [0], [1], [0, 0, 1, 1], [], []>} : vector<8x32xf32>, vector<32x128xf32>, vector<8x128xf32> -> vector<8x128xf32>
    %18 = arith.addf %16, %17 : vector<8x128xf32>
    %19 = arith.index_cast %14 : i32 to index
    %c128 = arith.constant 128 : index
    %20 = vector.load %arg14[%19, %c128] : memref<64x256xf32, #tpu.memory_space<vmem>>, vector<8x128xf32>
    %cst_15 = arith.constant dense<0.000000e+00> : vector<8x128xf32>
    %21 = tpu.matmul %9, %8, %cst_15 {dimension_numbers = #tpu.dot_dimension_numbers<[1], [0], [0], [1], [0, 0, 1, 1], [], []>} : vector<8x32xf32>, vector<32x128xf32>, vector<8x128xf32> -> vector<8x128xf32>
    %22 = arith.addf %20, %21 : vector<8x128xf32>
    %23 = vector.extract_strided_slice %18 {offsets = [0, 0], sizes = [8, 96], strides = [1, 1]} : vector<8x128xf32> to vector<8x96xf32>
    %24 = arith.negf %23 : vector<8x96xf32>
    %25 = math.exp %24 : vector<8x96xf32>
    %cst_16 = arith.constant 1.000000e+00 : f32
    %26 = vector.broadcast %cst_16 : f32 to vector<8x96xf32>
    %27 = arith.addf %26, %25 : vector<8x96xf32>
    %28 = arith.divf %26, %27 : vector<8x96xf32>
    %29 = vector.extract_strided_slice %22 {offsets = [0, 0], sizes = [8, 96], strides = [1, 1]} : vector<8x128xf32> to vector<8x96xf32>
    %30 = arith.negf %29 : vector<8x96xf32>
    %31 = math.exp %30 : vector<8x96xf32>
    %cst_17 = arith.constant 1.000000e+00 : f32
    %32 = vector.broadcast %cst_17 : f32 to vector<8x96xf32>
    %33 = arith.addf %32, %31 : vector<8x96xf32>
    %34 = arith.divf %32, %33 : vector<8x96xf32>
    %35 = vector.extract_strided_slice %18 {offsets = [0, 96], sizes = [8, 32], strides = [1, 1]} : vector<8x128xf32> to vector<8x32xf32>
    %36 = math.tanh %35 : vector<8x32xf32>
    %37 = vector.extract_strided_slice %22 {offsets = [0, 96], sizes = [8, 32], strides = [1, 1]} : vector<8x128xf32> to vector<8x32xf32>
    %38 = math.tanh %37 : vector<8x32xf32>
    %39 = vector.extract_strided_slice %28 {offsets = [0, 32], sizes = [8, 32], strides = [1, 1]} : vector<8x96xf32> to vector<8x32xf32>
    %40 = arith.mulf %39, %9 : vector<8x32xf32>
    %41 = vector.extract_strided_slice %28 {offsets = [0, 0], sizes = [8, 32], strides = [1, 1]} : vector<8x96xf32> to vector<8x32xf32>
    %42 = arith.mulf %41, %36 : vector<8x32xf32>
    %43 = arith.addf %40, %42 : vector<8x32xf32>
    %44 = vector.extract_strided_slice %34 {offsets = [0, 32], sizes = [8, 32], strides = [1, 1]} : vector<8x96xf32> to vector<8x32xf32>
    %45 = arith.mulf %44, %9 : vector<8x32xf32>
    %46 = vector.extract_strided_slice %34 {offsets = [0, 0], sizes = [8, 32], strides = [1, 1]} : vector<8x96xf32> to vector<8x32xf32>
    %47 = arith.mulf %46, %38 : vector<8x32xf32>
    %48 = arith.addf %45, %47 : vector<8x32xf32>
    %49 = vector.extract_strided_slice %28 {offsets = [0, 64], sizes = [8, 32], strides = [1, 1]} : vector<8x96xf32> to vector<8x32xf32>
    %50 = math.tanh %43 : vector<8x32xf32>
    %51 = arith.mulf %49, %50 : vector<8x32xf32>
    %52 = vector.extract_strided_slice %34 {offsets = [0, 64], sizes = [8, 32], strides = [1, 1]} : vector<8x96xf32> to vector<8x32xf32>
    %53 = math.tanh %48 : vector<8x32xf32>
    %54 = arith.mulf %52, %53 : vector<8x32xf32>
    %55 = arith.index_cast %11 : i32 to index
    %c0_18 = arith.constant 0 : index
    %56 = vector.load %arg12[%55, %c0_18] : memref<64x64xf32, #tpu.memory_space<vmem>>, vector<8x32xf32>
    tpu.vector_store %arg12[%55, %c0_18], %51 {strides = array<i32>} : memref<64x64xf32, #tpu.memory_space<vmem>>, vector<8x32xf32>,
    %57 = arith.index_cast %14 : i32 to index
    %c32 = arith.constant 32 : index
    %58 = vector.load %arg12[%57, %c32] : memref<64x64xf32, #tpu.memory_space<vmem>>, vector<8x32xf32>
    tpu.vector_store %arg12[%57, %c32], %54 {strides = array<i32>} : memref<64x64xf32, #tpu.memory_space<vmem>>, vector<8x32xf32>,
    %c1_i32 = arith.constant 1 : i32
    %c8_i32_19 = arith.constant 8 : i32
    %59 = arith.muli %c1_i32, %c8_i32_19 : i32
    %60 = tpu.assume_multiple %59, 8 : i32
    %c7_i32_20 = arith.constant 7 : i32
    %61 = arith.subi %c7_i32_20, %c1_i32 : i32
    %c8_i32_21 = arith.constant 8 : i32
    %62 = arith.muli %61, %c8_i32_21 : i32
    %63 = tpu.assume_multiple %62, 8 : i32
    %64 = arith.index_cast %60 : i32 to index
    %c0_22 = arith.constant 0 : index
    %65 = vector.load %arg14[%64, %c0_22] : memref<64x256xf32, #tpu.memory_space<vmem>>, vector<8x128xf32>
    %cst_23 = arith.constant dense<0.000000e+00> : vector<8x128xf32>
    %66 = tpu.matmul %51, %7, %cst_23 {dimension_numbers = #tpu.dot_dimension_numbers<[1], [0], [0], [1], [0, 0, 1, 1], [], []>} : vector<8x32xf32>, vector<32x128xf32>, vector<8x128xf32> -> vector<8x128xf32>
    %67 = arith.addf %65, %66 : vector<8x128xf32>
    %68 = arith.index_cast %63 : i32 to index
    %c128_24 = arith.constant 128 : index
    %69 = vector.load %arg14[%68, %c128_24] : memref<64x256xf32, #tpu.memory_space<vmem>>, vector<8x128xf32>
    %cst_25 = arith.constant dense<0.000000e+00> : vector<8x128xf32>
    %70 = tpu.matmul %54, %8, %cst_25 {dimension_numbers = #tpu.dot_dimension_numbers<[1], [0], [0], [1], [0, 0, 1, 1], [], []>} : vector<8x32xf32>, vector<32x128xf32>, vector<8x128xf32> -> vector<8x128xf32>
    %71 = arith.addf %69, %70 : vector<8x128xf32>
    %72 = vector.extract_strided_slice %67 {offsets = [0, 0], sizes = [8, 96], strides = [1, 1]} : vector<8x128xf32> to vector<8x96xf32>
    %73 = arith.negf %72 : vector<8x96xf32>
    %74 = math.exp %73 : vector<8x96xf32>
    %cst_26 = arith.constant 1.000000e+00 : f32
    %75 = vector.broadcast %cst_26 : f32 to vector<8x96xf32>
    %76 = arith.addf %75, %74 : vector<8x96xf32>
    %77 = arith.divf %75, %76 : vector<8x96xf32>
    %78 = vector.extract_strided_slice %71 {offsets = [0, 0], sizes = [8, 96], strides = [1, 1]} : vector<8x128xf32> to vector<8x96xf32>
    %79 = arith.negf %78 : vector<8x96xf32>
    %80 = math.exp %79 : vector<8x96xf32>
    %cst_27 = arith.constant 1.000000e+00 : f32
    %81 = vector.broadcast %cst_27 : f32 to vector<8x96xf32>
    %82 = arith.addf %81, %80 : vector<8x96xf32>
    %83 = arith.divf %81, %82 : vector<8x96xf32>
    %84 = vector.extract_strided_slice %67 {offsets = [0, 96], sizes = [8, 32], strides = [1, 1]} : vector<8x128xf32> to vector<8x32xf32>
    %85 = math.tanh %84 : vector<8x32xf32>
    %86 = vector.extract_strided_slice %71 {offsets = [0, 96], sizes = [8, 32], strides = [1, 1]} : vector<8x128xf32> to vector<8x32xf32>
    %87 = math.tanh %86 : vector<8x32xf32>
    %88 = vector.extract_strided_slice %77 {offsets = [0, 32], sizes = [8, 32], strides = [1, 1]} : vector<8x96xf32> to vector<8x32xf32>
    %89 = arith.mulf %88, %43 : vector<8x32xf32>
    %90 = vector.extract_strided_slice %77 {offsets = [0, 0], sizes = [8, 32], strides = [1, 1]} : vector<8x96xf32> to vector<8x32xf32>
    %91 = arith.mulf %90, %85 : vector<8x32xf32>
    %92 = arith.addf %89, %91 : vector<8x32xf32>
    %93 = vector.extract_strided_slice %83 {offsets = [0, 32], sizes = [8, 32], strides = [1, 1]} : vector<8x96xf32> to vector<8x32xf32>
    %94 = arith.mulf %93, %48 : vector<8x32xf32>
    %95 = vector.extract_strided_slice %83 {offsets = [0, 0], sizes = [8, 32], strides = [1, 1]} : vector<8x96xf32> to vector<8x32xf32>
    %96 = arith.mulf %95, %87 : vector<8x32xf32>
    %97 = arith.addf %94, %96 : vector<8x32xf32>
    %98 = vector.extract_strided_slice %77 {offsets = [0, 64], sizes = [8, 32], strides = [1, 1]} : vector<8x96xf32> to vector<8x32xf32>
    %99 = math.tanh %92 : vector<8x32xf32>
    %100 = arith.mulf %98, %99 : vector<8x32xf32>
    %101 = vector.extract_strided_slice %83 {offsets = [0, 64], sizes = [8, 32], strides = [1, 1]} : vector<8x96xf32> to vector<8x32xf32>
    %102 = math.tanh %97 : vector<8x32xf32>
    %103 = arith.mulf %101, %102 : vector<8x32xf32>
    %104 = arith.index_cast %60 : i32 to index
    %c0_28 = arith.constant 0 : index
    %105 = vector.load %arg12[%104, %c0_28] : memref<64x64xf32, #tpu.memory_space<vmem>>, vector<8x32xf32>
    tpu.vector_store %arg12[%104, %c0_28], %100 {strides = array<i32>} : memref<64x64xf32, #tpu.memory_space<vmem>>, vector<8x32xf32>,
    %106 = arith.index_cast %63 : i32 to index
    %c32_29 = arith.constant 32 : index
    %107 = vector.load %arg12[%106, %c32_29] : memref<64x64xf32, #tpu.memory_space<vmem>>, vector<8x32xf32>
    tpu.vector_store %arg12[%106, %c32_29], %103 {strides = array<i32>} : memref<64x64xf32, #tpu.memory_space<vmem>>, vector<8x32xf32>,
    %c2_i32 = arith.constant 2 : i32
    %c8_i32_30 = arith.constant 8 : i32
    %108 = arith.muli %c2_i32, %c8_i32_30 : i32
    %109 = tpu.assume_multiple %108, 8 : i32
    %c7_i32_31 = arith.constant 7 : i32
    %110 = arith.subi %c7_i32_31, %c2_i32 : i32
    %c8_i32_32 = arith.constant 8 : i32
    %111 = arith.muli %110, %c8_i32_32 : i32
    %112 = tpu.assume_multiple %111, 8 : i32
    %113 = arith.index_cast %109 : i32 to index
    %c0_33 = arith.constant 0 : index
    %114 = vector.load %arg14[%113, %c0_33] : memref<64x256xf32, #tpu.memory_space<vmem>>, vector<8x128xf32>
    %cst_34 = arith.constant dense<0.000000e+00> : vector<8x128xf32>
    %115 = tpu.matmul %100, %7, %cst_34 {dimension_numbers = #tpu.dot_dimension_numbers<[1], [0], [0], [1], [0, 0, 1, 1], [], []>} : vector<8x32xf32>, vector<32x128xf32>, vector<8x128xf32> -> vector<8x128xf32>
    %116 = arith.addf %114, %115 : vector<8x128xf32>
    %117 = arith.index_cast %112 : i32 to index
    %c128_35 = arith.constant 128 : index
    %118 = vector.load %arg14[%117, %c128_35] : memref<64x256xf32, #tpu.memory_space<vmem>>, vector<8x128xf32>
    %cst_36 = arith.constant dense<0.000000e+00> : vector<8x128xf32>
    %119 = tpu.matmul %103, %8, %cst_36 {dimension_numbers = #tpu.dot_dimension_numbers<[1], [0], [0], [1], [0, 0, 1, 1], [], []>} : vector<8x32xf32>, vector<32x128xf32>, vector<8x128xf32> -> vector<8x128xf32>
    %120 = arith.addf %118, %119 : vector<8x128xf32>
    %121 = vector.extract_strided_slice %116 {offsets = [0, 0], sizes = [8, 96], strides = [1, 1]} : vector<8x128xf32> to vector<8x96xf32>
    %122 = arith.negf %121 : vector<8x96xf32>
    %123 = math.exp %122 : vector<8x96xf32>
    %cst_37 = arith.constant 1.000000e+00 : f32
    %124 = vector.broadcast %cst_37 : f32 to vector<8x96xf32>
    %125 = arith.addf %124, %123 : vector<8x96xf32>
    %126 = arith.divf %124, %125 : vector<8x96xf32>
    %127 = vector.extract_strided_slice %120 {offsets = [0, 0], sizes = [8, 96], strides = [1, 1]} : vector<8x128xf32> to vector<8x96xf32>
    %128 = arith.negf %127 : vector<8x96xf32>
    %129 = math.exp %128 : vector<8x96xf32>
    %cst_38 = arith.constant 1.000000e+00 : f32
    %130 = vector.broadcast %cst_38 : f32 to vector<8x96xf32>
    %131 = arith.addf %130, %129 : vector<8x96xf32>
    %132 = arith.divf %130, %131 : vector<8x96xf32>
    %133 = vector.extract_strided_slice %116 {offsets = [0, 96], sizes = [8, 32], strides = [1, 1]} : vector<8x128xf32> to vector<8x32xf32>
    %134 = math.tanh %133 : vector<8x32xf32>
    %135 = vector.extract_strided_slice %120 {offsets = [0, 96], sizes = [8, 32], strides = [1, 1]} : vector<8x128xf32> to vector<8x32xf32>
    %136 = math.tanh %135 : vector<8x32xf32>
    %137 = vector.extract_strided_slice %126 {offsets = [0, 32], sizes = [8, 32], strides = [1, 1]} : vector<8x96xf32> to vector<8x32xf32>
    %138 = arith.mulf %137, %92 : vector<8x32xf32>
    %139 = vector.extract_strided_slice %126 {offsets = [0, 0], sizes = [8, 32], strides = [1, 1]} : vector<8x96xf32> to vector<8x32xf32>
    %140 = arith.mulf %139, %134 : vector<8x32xf32>
    %141 = arith.addf %138, %140 : vector<8x32xf32>
    %142 = vector.extract_strided_slice %132 {offsets = [0, 32], sizes = [8, 32], strides = [1, 1]} : vector<8x96xf32> to vector<8x32xf32>
    %143 = arith.mulf %142, %97 : vector<8x32xf32>
    %144 = vector.extract_strided_slice %132 {offsets = [0, 0], sizes = [8, 32], strides = [1, 1]} : vector<8x96xf32> to vector<8x32xf32>
    %145 = arith.mulf %144, %136 : vector<8x32xf32>
    %146 = arith.addf %143, %145 : vector<8x32xf32>
    %147 = vector.extract_strided_slice %126 {offsets = [0, 64], sizes = [8, 32], strides = [1, 1]} : vector<8x96xf32> to vector<8x32xf32>
    %148 = math.tanh %141 : vector<8x32xf32>
    %149 = arith.mulf %147, %148 : vector<8x32xf32>
    %150 = vector.extract_strided_slice %132 {offsets = [0, 64], sizes = [8, 32], strides = [1, 1]} : vector<8x96xf32> to vector<8x32xf32>
    %151 = math.tanh %146 : vector<8x32xf32>
    %152 = arith.mulf %150, %151 : vector<8x32xf32>
    %153 = arith.index_cast %109 : i32 to index
    %c0_39 = arith.constant 0 : index
    %154 = vector.load %arg12[%153, %c0_39] : memref<64x64xf32, #tpu.memory_space<vmem>>, vector<8x32xf32>
    tpu.vector_store %arg12[%153, %c0_39], %149 {strides = array<i32>} : memref<64x64xf32, #tpu.memory_space<vmem>>, vector<8x32xf32>,
    %155 = arith.index_cast %112 : i32 to index
    %c32_40 = arith.constant 32 : index
    %156 = vector.load %arg12[%155, %c32_40] : memref<64x64xf32, #tpu.memory_space<vmem>>, vector<8x32xf32>
    tpu.vector_store %arg12[%155, %c32_40], %152 {strides = array<i32>} : memref<64x64xf32, #tpu.memory_space<vmem>>, vector<8x32xf32>,
    %c3_i32 = arith.constant 3 : i32
    %c8_i32_41 = arith.constant 8 : i32
    %157 = arith.muli %c3_i32, %c8_i32_41 : i32
    %158 = tpu.assume_multiple %157, 8 : i32
    %c7_i32_42 = arith.constant 7 : i32
    %159 = arith.subi %c7_i32_42, %c3_i32 : i32
    %c8_i32_43 = arith.constant 8 : i32
    %160 = arith.muli %159, %c8_i32_43 : i32
    %161 = tpu.assume_multiple %160, 8 : i32
    %162 = arith.index_cast %158 : i32 to index
    %c0_44 = arith.constant 0 : index
    %163 = vector.load %arg14[%162, %c0_44] : memref<64x256xf32, #tpu.memory_space<vmem>>, vector<8x128xf32>
    %cst_45 = arith.constant dense<0.000000e+00> : vector<8x128xf32>
    %164 = tpu.matmul %149, %7, %cst_45 {dimension_numbers = #tpu.dot_dimension_numbers<[1], [0], [0], [1], [0, 0, 1, 1], [], []>} : vector<8x32xf32>, vector<32x128xf32>, vector<8x128xf32> -> vector<8x128xf32>
    %165 = arith.addf %163, %164 : vector<8x128xf32>
    %166 = arith.index_cast %161 : i32 to index
    %c128_46 = arith.constant 128 : index
    %167 = vector.load %arg14[%166, %c128_46] : memref<64x256xf32, #tpu.memory_space<vmem>>, vector<8x128xf32>
    %cst_47 = arith.constant dense<0.000000e+00> : vector<8x128xf32>
    %168 = tpu.matmul %152, %8, %cst_47 {dimension_numbers = #tpu.dot_dimension_numbers<[1], [0], [0], [1], [0, 0, 1, 1], [], []>} : vector<8x32xf32>, vector<32x128xf32>, vector<8x128xf32> -> vector<8x128xf32>
    %169 = arith.addf %167, %168 : vector<8x128xf32>
    %170 = vector.extract_strided_slice %165 {offsets = [0, 0], sizes = [8, 96], strides = [1, 1]} : vector<8x128xf32> to vector<8x96xf32>
    %171 = arith.negf %170 : vector<8x96xf32>
    %172 = math.exp %171 : vector<8x96xf32>
    %cst_48 = arith.constant 1.000000e+00 : f32
    %173 = vector.broadcast %cst_48 : f32 to vector<8x96xf32>
    %174 = arith.addf %173, %172 : vector<8x96xf32>
    %175 = arith.divf %173, %174 : vector<8x96xf32>
    %176 = vector.extract_strided_slice %169 {offsets = [0, 0], sizes = [8, 96], strides = [1, 1]} : vector<8x128xf32> to vector<8x96xf32>
    %177 = arith.negf %176 : vector<8x96xf32>
    %178 = math.exp %177 : vector<8x96xf32>
    %cst_49 = arith.constant 1.000000e+00 : f32
    %179 = vector.broadcast %cst_49 : f32 to vector<8x96xf32>
    %180 = arith.addf %179, %178 : vector<8x96xf32>
    %181 = arith.divf %179, %180 : vector<8x96xf32>
    %182 = vector.extract_strided_slice %165 {offsets = [0, 96], sizes = [8, 32], strides = [1, 1]} : vector<8x128xf32> to vector<8x32xf32>
    %183 = math.tanh %182 : vector<8x32xf32>
    %184 = vector.extract_strided_slice %169 {offsets = [0, 96], sizes = [8, 32], strides = [1, 1]} : vector<8x128xf32> to vector<8x32xf32>
    %185 = math.tanh %184 : vector<8x32xf32>
    %186 = vector.extract_strided_slice %175 {offsets = [0, 32], sizes = [8, 32], strides = [1, 1]} : vector<8x96xf32> to vector<8x32xf32>
    %187 = arith.mulf %186, %141 : vector<8x32xf32>
    %188 = vector.extract_strided_slice %175 {offsets = [0, 0], sizes = [8, 32], strides = [1, 1]} : vector<8x96xf32> to vector<8x32xf32>
    %189 = arith.mulf %188, %183 : vector<8x32xf32>
    %190 = arith.addf %187, %189 : vector<8x32xf32>
    %191 = vector.extract_strided_slice %181 {offsets = [0, 32], sizes = [8, 32], strides = [1, 1]} : vector<8x96xf32> to vector<8x32xf32>
    %192 = arith.mulf %191, %146 : vector<8x32xf32>
    %193 = vector.extract_strided_slice %181 {offsets = [0, 0], sizes = [8, 32], strides = [1, 1]} : vector<8x96xf32> to vector<8x32xf32>
    %194 = arith.mulf %193, %185 : vector<8x32xf32>
    %195 = arith.addf %192, %194 : vector<8x32xf32>
    %196 = vector.extract_strided_slice %175 {offsets = [0, 64], sizes = [8, 32], strides = [1, 1]} : vector<8x96xf32> to vector<8x32xf32>
    %197 = math.tanh %190 : vector<8x32xf32>
    %198 = arith.mulf %196, %197 : vector<8x32xf32>
    %199 = vector.extract_strided_slice %181 {offsets = [0, 64], sizes = [8, 32], strides = [1, 1]} : vector<8x96xf32> to vector<8x32xf32>
    %200 = math.tanh %195 : vector<8x32xf32>
    %201 = arith.mulf %199, %200 : vector<8x32xf32>
    %202 = arith.index_cast %158 : i32 to index
    %c0_50 = arith.constant 0 : index
    %203 = vector.load %arg12[%202, %c0_50] : memref<64x64xf32, #tpu.memory_space<vmem>>, vector<8x32xf32>
    tpu.vector_store %arg12[%202, %c0_50], %198 {strides = array<i32>} : memref<64x64xf32, #tpu.memory_space<vmem>>, vector<8x32xf32>,
    %204 = arith.index_cast %161 : i32 to index
    %c32_51 = arith.constant 32 : index
    %205 = vector.load %arg12[%204, %c32_51] : memref<64x64xf32, #tpu.memory_space<vmem>>, vector<8x32xf32>
    tpu.vector_store %arg12[%204, %c32_51], %201 {strides = array<i32>} : memref<64x64xf32, #tpu.memory_space<vmem>>, vector<8x32xf32>,
    %c4_i32 = arith.constant 4 : i32
    %c8_i32_52 = arith.constant 8 : i32
    %206 = arith.muli %c4_i32, %c8_i32_52 : i32
    %207 = tpu.assume_multiple %206, 8 : i32
    %c7_i32_53 = arith.constant 7 : i32
    %208 = arith.subi %c7_i32_53, %c4_i32 : i32
    %c8_i32_54 = arith.constant 8 : i32
    %209 = arith.muli %208, %c8_i32_54 : i32
    %210 = tpu.assume_multiple %209, 8 : i32
    %211 = arith.index_cast %207 : i32 to index
    %c0_55 = arith.constant 0 : index
    %212 = vector.load %arg14[%211, %c0_55] : memref<64x256xf32, #tpu.memory_space<vmem>>, vector<8x128xf32>
    %cst_56 = arith.constant dense<0.000000e+00> : vector<8x128xf32>
    %213 = tpu.matmul %198, %7, %cst_56 {dimension_numbers = #tpu.dot_dimension_numbers<[1], [0], [0], [1], [0, 0, 1, 1], [], []>} : vector<8x32xf32>, vector<32x128xf32>, vector<8x128xf32> -> vector<8x128xf32>
    %214 = arith.addf %212, %213 : vector<8x128xf32>
    %215 = arith.index_cast %210 : i32 to index
    %c128_57 = arith.constant 128 : index
    %216 = vector.load %arg14[%215, %c128_57] : memref<64x256xf32, #tpu.memory_space<vmem>>, vector<8x128xf32>
    %cst_58 = arith.constant dense<0.000000e+00> : vector<8x128xf32>
    %217 = tpu.matmul %201, %8, %cst_58 {dimension_numbers = #tpu.dot_dimension_numbers<[1], [0], [0], [1], [0, 0, 1, 1], [], []>} : vector<8x32xf32>, vector<32x128xf32>, vector<8x128xf32> -> vector<8x128xf32>
    %218 = arith.addf %216, %217 : vector<8x128xf32>
    %219 = vector.extract_strided_slice %214 {offsets = [0, 0], sizes = [8, 96], strides = [1, 1]} : vector<8x128xf32> to vector<8x96xf32>
    %220 = arith.negf %219 : vector<8x96xf32>
    %221 = math.exp %220 : vector<8x96xf32>
    %cst_59 = arith.constant 1.000000e+00 : f32
    %222 = vector.broadcast %cst_59 : f32 to vector<8x96xf32>
    %223 = arith.addf %222, %221 : vector<8x96xf32>
    %224 = arith.divf %222, %223 : vector<8x96xf32>
    %225 = vector.extract_strided_slice %218 {offsets = [0, 0], sizes = [8, 96], strides = [1, 1]} : vector<8x128xf32> to vector<8x96xf32>
    %226 = arith.negf %225 : vector<8x96xf32>
    %227 = math.exp %226 : vector<8x96xf32>
    %cst_60 = arith.constant 1.000000e+00 : f32
    %228 = vector.broadcast %cst_60 : f32 to vector<8x96xf32>
    %229 = arith.addf %228, %227 : vector<8x96xf32>
    %230 = arith.divf %228, %229 : vector<8x96xf32>
    %231 = vector.extract_strided_slice %214 {offsets = [0, 96], sizes = [8, 32], strides = [1, 1]} : vector<8x128xf32> to vector<8x32xf32>
    %232 = math.tanh %231 : vector<8x32xf32>
    %233 = vector.extract_strided_slice %218 {offsets = [0, 96], sizes = [8, 32], strides = [1, 1]} : vector<8x128xf32> to vector<8x32xf32>
    %234 = math.tanh %233 : vector<8x32xf32>
    %235 = vector.extract_strided_slice %224 {offsets = [0, 32], sizes = [8, 32], strides = [1, 1]} : vector<8x96xf32> to vector<8x32xf32>
    %236 = arith.mulf %235, %190 : vector<8x32xf32>
    %237 = vector.extract_strided_slice %224 {offsets = [0, 0], sizes = [8, 32], strides = [1, 1]} : vector<8x96xf32> to vector<8x32xf32>
    %238 = arith.mulf %237, %232 : vector<8x32xf32>
    %239 = arith.addf %236, %238 : vector<8x32xf32>
    %240 = vector.extract_strided_slice %230 {offsets = [0, 32], sizes = [8, 32], strides = [1, 1]} : vector<8x96xf32> to vector<8x32xf32>
    %241 = arith.mulf %240, %195 : vector<8x32xf32>
    %242 = vector.extract_strided_slice %230 {offsets = [0, 0], sizes = [8, 32], strides = [1, 1]} : vector<8x96xf32> to vector<8x32xf32>
    %243 = arith.mulf %242, %234 : vector<8x32xf32>
    %244 = arith.addf %241, %243 : vector<8x32xf32>
    %245 = vector.extract_strided_slice %224 {offsets = [0, 64], sizes = [8, 32], strides = [1, 1]} : vector<8x96xf32> to vector<8x32xf32>
    %246 = math.tanh %239 : vector<8x32xf32>
    %247 = arith.mulf %245, %246 : vector<8x32xf32>
    %248 = vector.extract_strided_slice %230 {offsets = [0, 64], sizes = [8, 32], strides = [1, 1]} : vector<8x96xf32> to vector<8x32xf32>
    %249 = math.tanh %244 : vector<8x32xf32>
    %250 = arith.mulf %248, %249 : vector<8x32xf32>
    %251 = arith.index_cast %207 : i32 to index
    %c0_61 = arith.constant 0 : index
    %252 = vector.load %arg12[%251, %c0_61] : memref<64x64xf32, #tpu.memory_space<vmem>>, vector<8x32xf32>
    tpu.vector_store %arg12[%251, %c0_61], %247 {strides = array<i32>} : memref<64x64xf32, #tpu.memory_space<vmem>>, vector<8x32xf32>,
    %253 = arith.index_cast %210 : i32 to index
    %c32_62 = arith.constant 32 : index
    %254 = vector.load %arg12[%253, %c32_62] : memref<64x64xf32, #tpu.memory_space<vmem>>, vector<8x32xf32>
    tpu.vector_store %arg12[%253, %c32_62], %250 {strides = array<i32>} : memref<64x64xf32, #tpu.memory_space<vmem>>, vector<8x32xf32>,
    %c5_i32 = arith.constant 5 : i32
    %c8_i32_63 = arith.constant 8 : i32
    %255 = arith.muli %c5_i32, %c8_i32_63 : i32
    %256 = tpu.assume_multiple %255, 8 : i32
    %c7_i32_64 = arith.constant 7 : i32
    %257 = arith.subi %c7_i32_64, %c5_i32 : i32
    %c8_i32_65 = arith.constant 8 : i32
    %258 = arith.muli %257, %c8_i32_65 : i32
    %259 = tpu.assume_multiple %258, 8 : i32
    %260 = arith.index_cast %256 : i32 to index
    %c0_66 = arith.constant 0 : index
    %261 = vector.load %arg14[%260, %c0_66] : memref<64x256xf32, #tpu.memory_space<vmem>>, vector<8x128xf32>
    %cst_67 = arith.constant dense<0.000000e+00> : vector<8x128xf32>
    %262 = tpu.matmul %247, %7, %cst_67 {dimension_numbers = #tpu.dot_dimension_numbers<[1], [0], [0], [1], [0, 0, 1, 1], [], []>} : vector<8x32xf32>, vector<32x128xf32>, vector<8x128xf32> -> vector<8x128xf32>
    %263 = arith.addf %261, %262 : vector<8x128xf32>
    %264 = arith.index_cast %259 : i32 to index
    %c128_68 = arith.constant 128 : index
    %265 = vector.load %arg14[%264, %c128_68] : memref<64x256xf32, #tpu.memory_space<vmem>>, vector<8x128xf32>
    %cst_69 = arith.constant dense<0.000000e+00> : vector<8x128xf32>
    %266 = tpu.matmul %250, %8, %cst_69 {dimension_numbers = #tpu.dot_dimension_numbers<[1], [0], [0], [1], [0, 0, 1, 1], [], []>} : vector<8x32xf32>, vector<32x128xf32>, vector<8x128xf32> -> vector<8x128xf32>
    %267 = arith.addf %265, %266 : vector<8x128xf32>
    %268 = vector.extract_strided_slice %263 {offsets = [0, 0], sizes = [8, 96], strides = [1, 1]} : vector<8x128xf32> to vector<8x96xf32>
    %269 = arith.negf %268 : vector<8x96xf32>
    %270 = math.exp %269 : vector<8x96xf32>
    %cst_70 = arith.constant 1.000000e+00 : f32
    %271 = vector.broadcast %cst_70 : f32 to vector<8x96xf32>
    %272 = arith.addf %271, %270 : vector<8x96xf32>
    %273 = arith.divf %271, %272 : vector<8x96xf32>
    %274 = vector.extract_strided_slice %267 {offsets = [0, 0], sizes = [8, 96], strides = [1, 1]} : vector<8x128xf32> to vector<8x96xf32>
    %275 = arith.negf %274 : vector<8x96xf32>
    %276 = math.exp %275 : vector<8x96xf32>
    %cst_71 = arith.constant 1.000000e+00 : f32
    %277 = vector.broadcast %cst_71 : f32 to vector<8x96xf32>
    %278 = arith.addf %277, %276 : vector<8x96xf32>
    %279 = arith.divf %277, %278 : vector<8x96xf32>
    %280 = vector.extract_strided_slice %263 {offsets = [0, 96], sizes = [8, 32], strides = [1, 1]} : vector<8x128xf32> to vector<8x32xf32>
    %281 = math.tanh %280 : vector<8x32xf32>
    %282 = vector.extract_strided_slice %267 {offsets = [0, 96], sizes = [8, 32], strides = [1, 1]} : vector<8x128xf32> to vector<8x32xf32>
    %283 = math.tanh %282 : vector<8x32xf32>
    %284 = vector.extract_strided_slice %273 {offsets = [0, 32], sizes = [8, 32], strides = [1, 1]} : vector<8x96xf32> to vector<8x32xf32>
    %285 = arith.mulf %284, %239 : vector<8x32xf32>
    %286 = vector.extract_strided_slice %273 {offsets = [0, 0], sizes = [8, 32], strides = [1, 1]} : vector<8x96xf32> to vector<8x32xf32>
    %287 = arith.mulf %286, %281 : vector<8x32xf32>
    %288 = arith.addf %285, %287 : vector<8x32xf32>
    %289 = vector.extract_strided_slice %279 {offsets = [0, 32], sizes = [8, 32], strides = [1, 1]} : vector<8x96xf32> to vector<8x32xf32>
    %290 = arith.mulf %289, %244 : vector<8x32xf32>
    %291 = vector.extract_strided_slice %279 {offsets = [0, 0], sizes = [8, 32], strides = [1, 1]} : vector<8x96xf32> to vector<8x32xf32>
    %292 = arith.mulf %291, %283 : vector<8x32xf32>
    %293 = arith.addf %290, %292 : vector<8x32xf32>
    %294 = vector.extract_strided_slice %273 {offsets = [0, 64], sizes = [8, 32], strides = [1, 1]} : vector<8x96xf32> to vector<8x32xf32>
    %295 = math.tanh %288 : vector<8x32xf32>
    %296 = arith.mulf %294, %295 : vector<8x32xf32>
    %297 = vector.extract_strided_slice %279 {offsets = [0, 64], sizes = [8, 32], strides = [1, 1]} : vector<8x96xf32> to vector<8x32xf32>
    %298 = math.tanh %293 : vector<8x32xf32>
    %299 = arith.mulf %297, %298 : vector<8x32xf32>
    %300 = arith.index_cast %256 : i32 to index
    %c0_72 = arith.constant 0 : index
    %301 = vector.load %arg12[%300, %c0_72] : memref<64x64xf32, #tpu.memory_space<vmem>>, vector<8x32xf32>
    tpu.vector_store %arg12[%300, %c0_72], %296 {strides = array<i32>} : memref<64x64xf32, #tpu.memory_space<vmem>>, vector<8x32xf32>,
    %302 = arith.index_cast %259 : i32 to index
    %c32_73 = arith.constant 32 : index
    %303 = vector.load %arg12[%302, %c32_73] : memref<64x64xf32, #tpu.memory_space<vmem>>, vector<8x32xf32>
    tpu.vector_store %arg12[%302, %c32_73], %299 {strides = array<i32>} : memref<64x64xf32, #tpu.memory_space<vmem>>, vector<8x32xf32>,
    %c6_i32 = arith.constant 6 : i32
    %c8_i32_74 = arith.constant 8 : i32
    %304 = arith.muli %c6_i32, %c8_i32_74 : i32
    %305 = tpu.assume_multiple %304, 8 : i32
    %c7_i32_75 = arith.constant 7 : i32
    %306 = arith.subi %c7_i32_75, %c6_i32 : i32
    %c8_i32_76 = arith.constant 8 : i32
    %307 = arith.muli %306, %c8_i32_76 : i32
    %308 = tpu.assume_multiple %307, 8 : i32
    %309 = arith.index_cast %305 : i32 to index
    %c0_77 = arith.constant 0 : index
    %310 = vector.load %arg14[%309, %c0_77] : memref<64x256xf32, #tpu.memory_space<vmem>>, vector<8x128xf32>
    %cst_78 = arith.constant dense<0.000000e+00> : vector<8x128xf32>
    %311 = tpu.matmul %296, %7, %cst_78 {dimension_numbers = #tpu.dot_dimension_numbers<[1], [0], [0], [1], [0, 0, 1, 1], [], []>} : vector<8x32xf32>, vector<32x128xf32>, vector<8x128xf32> -> vector<8x128xf32>
    %312 = arith.addf %310, %311 : vector<8x128xf32>
    %313 = arith.index_cast %308 : i32 to index
    %c128_79 = arith.constant 128 : index
    %314 = vector.load %arg14[%313, %c128_79] : memref<64x256xf32, #tpu.memory_space<vmem>>, vector<8x128xf32>
    %cst_80 = arith.constant dense<0.000000e+00> : vector<8x128xf32>
    %315 = tpu.matmul %299, %8, %cst_80 {dimension_numbers = #tpu.dot_dimension_numbers<[1], [0], [0], [1], [0, 0, 1, 1], [], []>} : vector<8x32xf32>, vector<32x128xf32>, vector<8x128xf32> -> vector<8x128xf32>
    %316 = arith.addf %314, %315 : vector<8x128xf32>
    %317 = vector.extract_strided_slice %312 {offsets = [0, 0], sizes = [8, 96], strides = [1, 1]} : vector<8x128xf32> to vector<8x96xf32>
    %318 = arith.negf %317 : vector<8x96xf32>
    %319 = math.exp %318 : vector<8x96xf32>
    %cst_81 = arith.constant 1.000000e+00 : f32
    %320 = vector.broadcast %cst_81 : f32 to vector<8x96xf32>
    %321 = arith.addf %320, %319 : vector<8x96xf32>
    %322 = arith.divf %320, %321 : vector<8x96xf32>
    %323 = vector.extract_strided_slice %316 {offsets = [0, 0], sizes = [8, 96], strides = [1, 1]} : vector<8x128xf32> to vector<8x96xf32>
    %324 = arith.negf %323 : vector<8x96xf32>
    %325 = math.exp %324 : vector<8x96xf32>
    %cst_82 = arith.constant 1.000000e+00 : f32
    %326 = vector.broadcast %cst_82 : f32 to vector<8x96xf32>
    %327 = arith.addf %326, %325 : vector<8x96xf32>
    %328 = arith.divf %326, %327 : vector<8x96xf32>
    %329 = vector.extract_strided_slice %312 {offsets = [0, 96], sizes = [8, 32], strides = [1, 1]} : vector<8x128xf32> to vector<8x32xf32>
    %330 = math.tanh %329 : vector<8x32xf32>
    %331 = vector.extract_strided_slice %316 {offsets = [0, 96], sizes = [8, 32], strides = [1, 1]} : vector<8x128xf32> to vector<8x32xf32>
    %332 = math.tanh %331 : vector<8x32xf32>
    %333 = vector.extract_strided_slice %322 {offsets = [0, 32], sizes = [8, 32], strides = [1, 1]} : vector<8x96xf32> to vector<8x32xf32>
    %334 = arith.mulf %333, %288 : vector<8x32xf32>
    %335 = vector.extract_strided_slice %322 {offsets = [0, 0], sizes = [8, 32], strides = [1, 1]} : vector<8x96xf32> to vector<8x32xf32>
    %336 = arith.mulf %335, %330 : vector<8x32xf32>
    %337 = arith.addf %334, %336 : vector<8x32xf32>
    %338 = vector.extract_strided_slice %328 {offsets = [0, 32], sizes = [8, 32], strides = [1, 1]} : vector<8x96xf32> to vector<8x32xf32>
    %339 = arith.mulf %338, %293 : vector<8x32xf32>
    %340 = vector.extract_strided_slice %328 {offsets = [0, 0], sizes = [8, 32], strides = [1, 1]} : vector<8x96xf32> to vector<8x32xf32>
    %341 = arith.mulf %340, %332 : vector<8x32xf32>
    %342 = arith.addf %339, %341 : vector<8x32xf32>
    %343 = vector.extract_strided_slice %322 {offsets = [0, 64], sizes = [8, 32], strides = [1, 1]} : vector<8x96xf32> to vector<8x32xf32>
    %344 = math.tanh %337 : vector<8x32xf32>
    %345 = arith.mulf %343, %344 : vector<8x32xf32>
    %346 = vector.extract_strided_slice %328 {offsets = [0, 64], sizes = [8, 32], strides = [1, 1]} : vector<8x96xf32> to vector<8x32xf32>
    %347 = math.tanh %342 : vector<8x32xf32>
    %348 = arith.mulf %346, %347 : vector<8x32xf32>
    %349 = arith.index_cast %305 : i32 to index
    %c0_83 = arith.constant 0 : index
    %350 = vector.load %arg12[%349, %c0_83] : memref<64x64xf32, #tpu.memory_space<vmem>>, vector<8x32xf32>
    tpu.vector_store %arg12[%349, %c0_83], %345 {strides = array<i32>} : memref<64x64xf32, #tpu.memory_space<vmem>>, vector<8x32xf32>,
    %351 = arith.index_cast %308 : i32 to index
    %c32_84 = arith.constant 32 : index
    %352 = vector.load %arg12[%351, %c32_84] : memref<64x64xf32, #tpu.memory_space<vmem>>, vector<8x32xf32>
    tpu.vector_store %arg12[%351, %c32_84], %348 {strides = array<i32>} : memref<64x64xf32, #tpu.memory_space<vmem>>, vector<8x32xf32>,
    %c7_i32_85 = arith.constant 7 : i32
    %c8_i32_86 = arith.constant 8 : i32
    %353 = arith.muli %c7_i32_85, %c8_i32_86 : i32
    %354 = tpu.assume_multiple %353, 8 : i32
    %c7_i32_87 = arith.constant 7 : i32
    %355 = arith.subi %c7_i32_87, %c7_i32_85 : i32
    %c8_i32_88 = arith.constant 8 : i32
    %356 = arith.muli %355, %c8_i32_88 : i32
    %357 = tpu.assume_multiple %356, 8 : i32
    %358 = arith.index_cast %354 : i32 to index
    %c0_89 = arith.constant 0 : index
    %359 = vector.load %arg14[%358, %c0_89] : memref<64x256xf32, #tpu.memory_space<vmem>>, vector<8x128xf32>
    %cst_90 = arith.constant dense<0.000000e+00> : vector<8x128xf32>
    %360 = tpu.matmul %345, %7, %cst_90 {dimension_numbers = #tpu.dot_dimension_numbers<[1], [0], [0], [1], [0, 0, 1, 1], [], []>} : vector<8x32xf32>, vector<32x128xf32>, vector<8x128xf32> -> vector<8x128xf32>
    %361 = arith.addf %359, %360 : vector<8x128xf32>
    %362 = arith.index_cast %357 : i32 to index
    %c128_91 = arith.constant 128 : index
    %363 = vector.load %arg14[%362, %c128_91] : memref<64x256xf32, #tpu.memory_space<vmem>>, vector<8x128xf32>
    %cst_92 = arith.constant dense<0.000000e+00> : vector<8x128xf32>
    %364 = tpu.matmul %348, %8, %cst_92 {dimension_numbers = #tpu.dot_dimension_numbers<[1], [0], [0], [1], [0, 0, 1, 1], [], []>} : vector<8x32xf32>, vector<32x128xf32>, vector<8x128xf32> -> vector<8x128xf32>
    %365 = arith.addf %363, %364 : vector<8x128xf32>
    %366 = vector.extract_strided_slice %361 {offsets = [0, 0], sizes = [8, 96], strides = [1, 1]} : vector<8x128xf32> to vector<8x96xf32>
    %367 = arith.negf %366 : vector<8x96xf32>
    %368 = math.exp %367 : vector<8x96xf32>
    %cst_93 = arith.constant 1.000000e+00 : f32
    %369 = vector.broadcast %cst_93 : f32 to vector<8x96xf32>
    %370 = arith.addf %369, %368 : vector<8x96xf32>
    %371 = arith.divf %369, %370 : vector<8x96xf32>
    %372 = vector.extract_strided_slice %365 {offsets = [0, 0], sizes = [8, 96], strides = [1, 1]} : vector<8x128xf32> to vector<8x96xf32>
    %373 = arith.negf %372 : vector<8x96xf32>
    %374 = math.exp %373 : vector<8x96xf32>
    %cst_94 = arith.constant 1.000000e+00 : f32
    %375 = vector.broadcast %cst_94 : f32 to vector<8x96xf32>
    %376 = arith.addf %375, %374 : vector<8x96xf32>
    %377 = arith.divf %375, %376 : vector<8x96xf32>
    %378 = vector.extract_strided_slice %361 {offsets = [0, 96], sizes = [8, 32], strides = [1, 1]} : vector<8x128xf32> to vector<8x32xf32>
    %379 = math.tanh %378 : vector<8x32xf32>
    %380 = vector.extract_strided_slice %365 {offsets = [0, 96], sizes = [8, 32], strides = [1, 1]} : vector<8x128xf32> to vector<8x32xf32>
    %381 = math.tanh %380 : vector<8x32xf32>
    %382 = vector.extract_strided_slice %371 {offsets = [0, 32], sizes = [8, 32], strides = [1, 1]} : vector<8x96xf32> to vector<8x32xf32>
    %383 = arith.mulf %382, %337 : vector<8x32xf32>
    %384 = vector.extract_strided_slice %371 {offsets = [0, 0], sizes = [8, 32], strides = [1, 1]} : vector<8x96xf32> to vector<8x32xf32>
    %385 = arith.mulf %384, %379 : vector<8x32xf32>
    %386 = arith.addf %383, %385 : vector<8x32xf32>
    %387 = vector.extract_strided_slice %377 {offsets = [0, 32], sizes = [8, 32], strides = [1, 1]} : vector<8x96xf32> to vector<8x32xf32>
    %388 = arith.mulf %387, %342 : vector<8x32xf32>
    %389 = vector.extract_strided_slice %377 {offsets = [0, 0], sizes = [8, 32], strides = [1, 1]} : vector<8x96xf32> to vector<8x32xf32>
    %390 = arith.mulf %389, %381 : vector<8x32xf32>
    %391 = arith.addf %388, %390 : vector<8x32xf32>
    %392 = vector.extract_strided_slice %371 {offsets = [0, 64], sizes = [8, 32], strides = [1, 1]} : vector<8x96xf32> to vector<8x32xf32>
    %393 = math.tanh %386 : vector<8x32xf32>
    %394 = arith.mulf %392, %393 : vector<8x32xf32>
    %395 = vector.extract_strided_slice %377 {offsets = [0, 64], sizes = [8, 32], strides = [1, 1]} : vector<8x96xf32> to vector<8x32xf32>
    %396 = math.tanh %391 : vector<8x32xf32>
    %397 = arith.mulf %395, %396 : vector<8x32xf32>
    %398 = arith.index_cast %354 : i32 to index
    %c0_95 = arith.constant 0 : index
    %399 = vector.load %arg12[%398, %c0_95] : memref<64x64xf32, #tpu.memory_space<vmem>>, vector<8x32xf32>
    tpu.vector_store %arg12[%398, %c0_95], %394 {strides = array<i32>} : memref<64x64xf32, #tpu.memory_space<vmem>>, vector<8x32xf32>,
    %400 = arith.index_cast %357 : i32 to index
    %c32_96 = arith.constant 32 : index
    %401 = vector.load %arg12[%400, %c32_96] : memref<64x64xf32, #tpu.memory_space<vmem>>, vector<8x32xf32>
    tpu.vector_store %arg12[%400, %c32_96], %397 {strides = array<i32>} : memref<64x64xf32, #tpu.memory_space<vmem>>, vector<8x32xf32>,
    %c8_i32_97 = arith.constant 8 : i32
    %c0_98 = arith.constant 0 : index
    %c0_99 = arith.constant 0 : index
    %402 = vector.load %arg12[%c0_98, %c0_99] : memref<64x64xf32, #tpu.memory_space<vmem>>, vector<64x64xf32>
    %c0_100 = arith.constant 0 : index
    %c0_101 = arith.constant 0 : index
    %403 = vector.load %arg5[%c0_100, %c0_101] : memref<64x256xf32, #tpu.memory_space<vmem>>, vector<64x256xf32>
    %cst_102 = arith.constant dense<0.000000e+00> : vector<64x256xf32>
    %404 = tpu.matmul %402, %403, %cst_102 {dimension_numbers = #tpu.dot_dimension_numbers<[1], [0], [0], [1], [0, 0, 1, 1], [], []>} : vector<64x64xf32>, vector<64x256xf32>, vector<64x256xf32> -> vector<64x256xf32>
    %c0_103 = arith.constant 0 : index
    %c0_104 = arith.constant 0 : index
    %405 = vector.load %arg8[%c0_103, %c0_104] : memref<1x256xf32, #tpu.memory_space<vmem>>, vector<1x256xf32>
    %406 = vector.broadcast %405 : vector<1x256xf32> to vector<64x256xf32>
    %407 = arith.addf %404, %406 : vector<64x256xf32>
    %c0_105 = arith.constant 0 : index
    %c0_106 = arith.constant 0 : index
    %408 = vector.load %arg14[%c0_105, %c0_106] : memref<64x256xf32, #tpu.memory_space<vmem>>, vector<64x256xf32>
    tpu.vector_store %arg14[%c0_105, %c0_106], %407 {strides = array<i32>} : memref<64x256xf32, #tpu.memory_space<vmem>>, vector<64x256xf32>,
    %c0_107 = arith.constant 0 : index
    %c0_108 = arith.constant 0 : index
    %409 = vector.load %arg6[%c0_107, %c0_108] : memref<32x128xf32, #tpu.memory_space<vmem>>, vector<32x128xf32>
    %c0_109 = arith.constant 0 : index
    %c0_110 = arith.constant 0 : index
    %410 = vector.load %arg7[%c0_109, %c0_110] : memref<32x128xf32, #tpu.memory_space<vmem>>, vector<32x128xf32>
    %cst_111 = arith.constant 0.000000e+00 : f32
    %411 = vector.broadcast %cst_111 : f32 to vector<8x32xf32>
    %c0_i32_112 = arith.constant 0 : i32
    %c8_i32_113 = arith.constant 8 : i32
    %412 = arith.muli %c0_i32_112, %c8_i32_113 : i32
    %413 = tpu.assume_multiple %412, 8 : i32
    %c7_i32_114 = arith.constant 7 : i32
    %414 = arith.subi %c7_i32_114, %c0_i32_112 : i32
    %c8_i32_115 = arith.constant 8 : i32
    %415 = arith.muli %414, %c8_i32_115 : i32
    %416 = tpu.assume_multiple %415, 8 : i32
    %417 = arith.index_cast %413 : i32 to index
    %c0_116 = arith.constant 0 : index
    %418 = vector.load %arg14[%417, %c0_116] : memref<64x256xf32, #tpu.memory_space<vmem>>, vector<8x128xf32>
    %cst_117 = arith.constant dense<0.000000e+00> : vector<8x128xf32>
    %419 = tpu.matmul %411, %409, %cst_117 {dimension_numbers = #tpu.dot_dimension_numbers<[1], [0], [0], [1], [0, 0, 1, 1], [], []>} : vector<8x32xf32>, vector<32x128xf32>, vector<8x128xf32> -> vector<8x128xf32>
    %420 = arith.addf %418, %419 : vector<8x128xf32>
    %421 = arith.index_cast %416 : i32 to index
    %c128_118 = arith.constant 128 : index
    %422 = vector.load %arg14[%421, %c128_118] : memref<64x256xf32, #tpu.memory_space<vmem>>, vector<8x128xf32>
    %cst_119 = arith.constant dense<0.000000e+00> : vector<8x128xf32>
    %423 = tpu.matmul %411, %410, %cst_119 {dimension_numbers = #tpu.dot_dimension_numbers<[1], [0], [0], [1], [0, 0, 1, 1], [], []>} : vector<8x32xf32>, vector<32x128xf32>, vector<8x128xf32> -> vector<8x128xf32>
    %424 = arith.addf %422, %423 : vector<8x128xf32>
    %425 = vector.extract_strided_slice %420 {offsets = [0, 0], sizes = [8, 96], strides = [1, 1]} : vector<8x128xf32> to vector<8x96xf32>
    %426 = arith.negf %425 : vector<8x96xf32>
    %427 = math.exp %426 : vector<8x96xf32>
    %cst_120 = arith.constant 1.000000e+00 : f32
    %428 = vector.broadcast %cst_120 : f32 to vector<8x96xf32>
    %429 = arith.addf %428, %427 : vector<8x96xf32>
    %430 = arith.divf %428, %429 : vector<8x96xf32>
    %431 = vector.extract_strided_slice %424 {offsets = [0, 0], sizes = [8, 96], strides = [1, 1]} : vector<8x128xf32> to vector<8x96xf32>
    %432 = arith.negf %431 : vector<8x96xf32>
    %433 = math.exp %432 : vector<8x96xf32>
    %cst_121 = arith.constant 1.000000e+00 : f32
    %434 = vector.broadcast %cst_121 : f32 to vector<8x96xf32>
    %435 = arith.addf %434, %433 : vector<8x96xf32>
    %436 = arith.divf %434, %435 : vector<8x96xf32>
    %437 = vector.extract_strided_slice %420 {offsets = [0, 96], sizes = [8, 32], strides = [1, 1]} : vector<8x128xf32> to vector<8x32xf32>
    %438 = math.tanh %437 : vector<8x32xf32>
    %439 = vector.extract_strided_slice %424 {offsets = [0, 96], sizes = [8, 32], strides = [1, 1]} : vector<8x128xf32> to vector<8x32xf32>
    %440 = math.tanh %439 : vector<8x32xf32>
    %441 = vector.extract_strided_slice %430 {offsets = [0, 32], sizes = [8, 32], strides = [1, 1]} : vector<8x96xf32> to vector<8x32xf32>
    %442 = arith.mulf %441, %411 : vector<8x32xf32>
    %443 = vector.extract_strided_slice %430 {offsets = [0, 0], sizes = [8, 32], strides = [1, 1]} : vector<8x96xf32> to vector<8x32xf32>
    %444 = arith.mulf %443, %438 : vector<8x32xf32>
    %445 = arith.addf %442, %444 : vector<8x32xf32>
    %446 = vector.extract_strided_slice %436 {offsets = [0, 32], sizes = [8, 32], strides = [1, 1]} : vector<8x96xf32> to vector<8x32xf32>
    %447 = arith.mulf %446, %411 : vector<8x32xf32>
    %448 = vector.extract_strided_slice %436 {offsets = [0, 0], sizes = [8, 32], strides = [1, 1]} : vector<8x96xf32> to vector<8x32xf32>
    %449 = arith.mulf %448, %440 : vector<8x32xf32>
    %450 = arith.addf %447, %449 : vector<8x32xf32>
    %451 = vector.extract_strided_slice %430 {offsets = [0, 64], sizes = [8, 32], strides = [1, 1]} : vector<8x96xf32> to vector<8x32xf32>
    %452 = math.tanh %445 : vector<8x32xf32>
    %453 = arith.mulf %451, %452 : vector<8x32xf32>
    %454 = vector.extract_strided_slice %436 {offsets = [0, 64], sizes = [8, 32], strides = [1, 1]} : vector<8x96xf32> to vector<8x32xf32>
    %455 = math.tanh %450 : vector<8x32xf32>
    %456 = arith.mulf %454, %455 : vector<8x32xf32>
    %457 = arith.index_cast %413 : i32 to index
    %c0_122 = arith.constant 0 : index
    %458 = vector.load %arg13[%457, %c0_122] : memref<64x64xf32, #tpu.memory_space<vmem>>, vector<8x32xf32>
    tpu.vector_store %arg13[%457, %c0_122], %453 {strides = array<i32>} : memref<64x64xf32, #tpu.memory_space<vmem>>, vector<8x32xf32>,
    %459 = arith.index_cast %416 : i32 to index
    %c32_123 = arith.constant 32 : index
    %460 = vector.load %arg13[%459, %c32_123] : memref<64x64xf32, #tpu.memory_space<vmem>>, vector<8x32xf32>
    tpu.vector_store %arg13[%459, %c32_123], %456 {strides = array<i32>} : memref<64x64xf32, #tpu.memory_space<vmem>>, vector<8x32xf32>,
    %c1_i32_124 = arith.constant 1 : i32
    %c8_i32_125 = arith.constant 8 : i32
    %461 = arith.muli %c1_i32_124, %c8_i32_125 : i32
    %462 = tpu.assume_multiple %461, 8 : i32
    %c7_i32_126 = arith.constant 7 : i32
    %463 = arith.subi %c7_i32_126, %c1_i32_124 : i32
    %c8_i32_127 = arith.constant 8 : i32
    %464 = arith.muli %463, %c8_i32_127 : i32
    %465 = tpu.assume_multiple %464, 8 : i32
    %466 = arith.index_cast %462 : i32 to index
    %c0_128 = arith.constant 0 : index
    %467 = vector.load %arg14[%466, %c0_128] : memref<64x256xf32, #tpu.memory_space<vmem>>, vector<8x128xf32>
    %cst_129 = arith.constant dense<0.000000e+00> : vector<8x128xf32>
    %468 = tpu.matmul %453, %409, %cst_129 {dimension_numbers = #tpu.dot_dimension_numbers<[1], [0], [0], [1], [0, 0, 1, 1], [], []>} : vector<8x32xf32>, vector<32x128xf32>, vector<8x128xf32> -> vector<8x128xf32>
    %469 = arith.addf %467, %468 : vector<8x128xf32>
    %470 = arith.index_cast %465 : i32 to index
    %c128_130 = arith.constant 128 : index
    %471 = vector.load %arg14[%470, %c128_130] : memref<64x256xf32, #tpu.memory_space<vmem>>, vector<8x128xf32>
    %cst_131 = arith.constant dense<0.000000e+00> : vector<8x128xf32>
    %472 = tpu.matmul %456, %410, %cst_131 {dimension_numbers = #tpu.dot_dimension_numbers<[1], [0], [0], [1], [0, 0, 1, 1], [], []>} : vector<8x32xf32>, vector<32x128xf32>, vector<8x128xf32> -> vector<8x128xf32>
    %473 = arith.addf %471, %472 : vector<8x128xf32>
    %474 = vector.extract_strided_slice %469 {offsets = [0, 0], sizes = [8, 96], strides = [1, 1]} : vector<8x128xf32> to vector<8x96xf32>
    %475 = arith.negf %474 : vector<8x96xf32>
    %476 = math.exp %475 : vector<8x96xf32>
    %cst_132 = arith.constant 1.000000e+00 : f32
    %477 = vector.broadcast %cst_132 : f32 to vector<8x96xf32>
    %478 = arith.addf %477, %476 : vector<8x96xf32>
    %479 = arith.divf %477, %478 : vector<8x96xf32>
    %480 = vector.extract_strided_slice %473 {offsets = [0, 0], sizes = [8, 96], strides = [1, 1]} : vector<8x128xf32> to vector<8x96xf32>
    %481 = arith.negf %480 : vector<8x96xf32>
    %482 = math.exp %481 : vector<8x96xf32>
    %cst_133 = arith.constant 1.000000e+00 : f32
    %483 = vector.broadcast %cst_133 : f32 to vector<8x96xf32>
    %484 = arith.addf %483, %482 : vector<8x96xf32>
    %485 = arith.divf %483, %484 : vector<8x96xf32>
    %486 = vector.extract_strided_slice %469 {offsets = [0, 96], sizes = [8, 32], strides = [1, 1]} : vector<8x128xf32> to vector<8x32xf32>
    %487 = math.tanh %486 : vector<8x32xf32>
    %488 = vector.extract_strided_slice %473 {offsets = [0, 96], sizes = [8, 32], strides = [1, 1]} : vector<8x128xf32> to vector<8x32xf32>
    %489 = math.tanh %488 : vector<8x32xf32>
    %490 = vector.extract_strided_slice %479 {offsets = [0, 32], sizes = [8, 32], strides = [1, 1]} : vector<8x96xf32> to vector<8x32xf32>
    %491 = arith.mulf %490, %445 : vector<8x32xf32>
    %492 = vector.extract_strided_slice %479 {offsets = [0, 0], sizes = [8, 32], strides = [1, 1]} : vector<8x96xf32> to vector<8x32xf32>
    %493 = arith.mulf %492, %487 : vector<8x32xf32>
    %494 = arith.addf %491, %493 : vector<8x32xf32>
    %495 = vector.extract_strided_slice %485 {offsets = [0, 32], sizes = [8, 32], strides = [1, 1]} : vector<8x96xf32> to vector<8x32xf32>
    %496 = arith.mulf %495, %450 : vector<8x32xf32>
    %497 = vector.extract_strided_slice %485 {offsets = [0, 0], sizes = [8, 32], strides = [1, 1]} : vector<8x96xf32> to vector<8x32xf32>
    %498 = arith.mulf %497, %489 : vector<8x32xf32>
    %499 = arith.addf %496, %498 : vector<8x32xf32>
    %500 = vector.extract_strided_slice %479 {offsets = [0, 64], sizes = [8, 32], strides = [1, 1]} : vector<8x96xf32> to vector<8x32xf32>
    %501 = math.tanh %494 : vector<8x32xf32>
    %502 = arith.mulf %500, %501 : vector<8x32xf32>
    %503 = vector.extract_strided_slice %485 {offsets = [0, 64], sizes = [8, 32], strides = [1, 1]} : vector<8x96xf32> to vector<8x32xf32>
    %504 = math.tanh %499 : vector<8x32xf32>
    %505 = arith.mulf %503, %504 : vector<8x32xf32>
    %506 = arith.index_cast %462 : i32 to index
    %c0_134 = arith.constant 0 : index
    %507 = vector.load %arg13[%506, %c0_134] : memref<64x64xf32, #tpu.memory_space<vmem>>, vector<8x32xf32>
    tpu.vector_store %arg13[%506, %c0_134], %502 {strides = array<i32>} : memref<64x64xf32, #tpu.memory_space<vmem>>, vector<8x32xf32>,
    %508 = arith.index_cast %465 : i32 to index
    %c32_135 = arith.constant 32 : index
    %509 = vector.load %arg13[%508, %c32_135] : memref<64x64xf32, #tpu.memory_space<vmem>>, vector<8x32xf32>
    tpu.vector_store %arg13[%508, %c32_135], %505 {strides = array<i32>} : memref<64x64xf32, #tpu.memory_space<vmem>>, vector<8x32xf32>,
    %c2_i32_136 = arith.constant 2 : i32
    %c8_i32_137 = arith.constant 8 : i32
    %510 = arith.muli %c2_i32_136, %c8_i32_137 : i32
    %511 = tpu.assume_multiple %510, 8 : i32
    %c7_i32_138 = arith.constant 7 : i32
    %512 = arith.subi %c7_i32_138, %c2_i32_136 : i32
    %c8_i32_139 = arith.constant 8 : i32
    %513 = arith.muli %512, %c8_i32_139 : i32
    %514 = tpu.assume_multiple %513, 8 : i32
    %515 = arith.index_cast %511 : i32 to index
    %c0_140 = arith.constant 0 : index
    %516 = vector.load %arg14[%515, %c0_140] : memref<64x256xf32, #tpu.memory_space<vmem>>, vector<8x128xf32>
    %cst_141 = arith.constant dense<0.000000e+00> : vector<8x128xf32>
    %517 = tpu.matmul %502, %409, %cst_141 {dimension_numbers = #tpu.dot_dimension_numbers<[1], [0], [0], [1], [0, 0, 1, 1], [], []>} : vector<8x32xf32>, vector<32x128xf32>, vector<8x128xf32> -> vector<8x128xf32>
    %518 = arith.addf %516, %517 : vector<8x128xf32>
    %519 = arith.index_cast %514 : i32 to index
    %c128_142 = arith.constant 128 : index
    %520 = vector.load %arg14[%519, %c128_142] : memref<64x256xf32, #tpu.memory_space<vmem>>, vector<8x128xf32>
    %cst_143 = arith.constant dense<0.000000e+00> : vector<8x128xf32>
    %521 = tpu.matmul %505, %410, %cst_143 {dimension_numbers = #tpu.dot_dimension_numbers<[1], [0], [0], [1], [0, 0, 1, 1], [], []>} : vector<8x32xf32>, vector<32x128xf32>, vector<8x128xf32> -> vector<8x128xf32>
    %522 = arith.addf %520, %521 : vector<8x128xf32>
    %523 = vector.extract_strided_slice %518 {offsets = [0, 0], sizes = [8, 96], strides = [1, 1]} : vector<8x128xf32> to vector<8x96xf32>
    %524 = arith.negf %523 : vector<8x96xf32>
    %525 = math.exp %524 : vector<8x96xf32>
    %cst_144 = arith.constant 1.000000e+00 : f32
    %526 = vector.broadcast %cst_144 : f32 to vector<8x96xf32>
    %527 = arith.addf %526, %525 : vector<8x96xf32>
    %528 = arith.divf %526, %527 : vector<8x96xf32>
    %529 = vector.extract_strided_slice %522 {offsets = [0, 0], sizes = [8, 96], strides = [1, 1]} : vector<8x128xf32> to vector<8x96xf32>
    %530 = arith.negf %529 : vector<8x96xf32>
    %531 = math.exp %530 : vector<8x96xf32>
    %cst_145 = arith.constant 1.000000e+00 : f32
    %532 = vector.broadcast %cst_145 : f32 to vector<8x96xf32>
    %533 = arith.addf %532, %531 : vector<8x96xf32>
    %534 = arith.divf %532, %533 : vector<8x96xf32>
    %535 = vector.extract_strided_slice %518 {offsets = [0, 96], sizes = [8, 32], strides = [1, 1]} : vector<8x128xf32> to vector<8x32xf32>
    %536 = math.tanh %535 : vector<8x32xf32>
    %537 = vector.extract_strided_slice %522 {offsets = [0, 96], sizes = [8, 32], strides = [1, 1]} : vector<8x128xf32> to vector<8x32xf32>
    %538 = math.tanh %537 : vector<8x32xf32>
    %539 = vector.extract_strided_slice %528 {offsets = [0, 32], sizes = [8, 32], strides = [1, 1]} : vector<8x96xf32> to vector<8x32xf32>
    %540 = arith.mulf %539, %494 : vector<8x32xf32>
    %541 = vector.extract_strided_slice %528 {offsets = [0, 0], sizes = [8, 32], strides = [1, 1]} : vector<8x96xf32> to vector<8x32xf32>
    %542 = arith.mulf %541, %536 : vector<8x32xf32>
    %543 = arith.addf %540, %542 : vector<8x32xf32>
    %544 = vector.extract_strided_slice %534 {offsets = [0, 32], sizes = [8, 32], strides = [1, 1]} : vector<8x96xf32> to vector<8x32xf32>
    %545 = arith.mulf %544, %499 : vector<8x32xf32>
    %546 = vector.extract_strided_slice %534 {offsets = [0, 0], sizes = [8, 32], strides = [1, 1]} : vector<8x96xf32> to vector<8x32xf32>
    %547 = arith.mulf %546, %538 : vector<8x32xf32>
    %548 = arith.addf %545, %547 : vector<8x32xf32>
    %549 = vector.extract_strided_slice %528 {offsets = [0, 64], sizes = [8, 32], strides = [1, 1]} : vector<8x96xf32> to vector<8x32xf32>
    %550 = math.tanh %543 : vector<8x32xf32>
    %551 = arith.mulf %549, %550 : vector<8x32xf32>
    %552 = vector.extract_strided_slice %534 {offsets = [0, 64], sizes = [8, 32], strides = [1, 1]} : vector<8x96xf32> to vector<8x32xf32>
    %553 = math.tanh %548 : vector<8x32xf32>
    %554 = arith.mulf %552, %553 : vector<8x32xf32>
    %555 = arith.index_cast %511 : i32 to index
    %c0_146 = arith.constant 0 : index
    %556 = vector.load %arg13[%555, %c0_146] : memref<64x64xf32, #tpu.memory_space<vmem>>, vector<8x32xf32>
    tpu.vector_store %arg13[%555, %c0_146], %551 {strides = array<i32>} : memref<64x64xf32, #tpu.memory_space<vmem>>, vector<8x32xf32>,
    %557 = arith.index_cast %514 : i32 to index
    %c32_147 = arith.constant 32 : index
    %558 = vector.load %arg13[%557, %c32_147] : memref<64x64xf32, #tpu.memory_space<vmem>>, vector<8x32xf32>
    tpu.vector_store %arg13[%557, %c32_147], %554 {strides = array<i32>} : memref<64x64xf32, #tpu.memory_space<vmem>>, vector<8x32xf32>,
    %c3_i32_148 = arith.constant 3 : i32
    %c8_i32_149 = arith.constant 8 : i32
    %559 = arith.muli %c3_i32_148, %c8_i32_149 : i32
    %560 = tpu.assume_multiple %559, 8 : i32
    %c7_i32_150 = arith.constant 7 : i32
    %561 = arith.subi %c7_i32_150, %c3_i32_148 : i32
    %c8_i32_151 = arith.constant 8 : i32
    %562 = arith.muli %561, %c8_i32_151 : i32
    %563 = tpu.assume_multiple %562, 8 : i32
    %564 = arith.index_cast %560 : i32 to index
    %c0_152 = arith.constant 0 : index
    %565 = vector.load %arg14[%564, %c0_152] : memref<64x256xf32, #tpu.memory_space<vmem>>, vector<8x128xf32>
    %cst_153 = arith.constant dense<0.000000e+00> : vector<8x128xf32>
    %566 = tpu.matmul %551, %409, %cst_153 {dimension_numbers = #tpu.dot_dimension_numbers<[1], [0], [0], [1], [0, 0, 1, 1], [], []>} : vector<8x32xf32>, vector<32x128xf32>, vector<8x128xf32> -> vector<8x128xf32>
    %567 = arith.addf %565, %566 : vector<8x128xf32>
    %568 = arith.index_cast %563 : i32 to index
    %c128_154 = arith.constant 128 : index
    %569 = vector.load %arg14[%568, %c128_154] : memref<64x256xf32, #tpu.memory_space<vmem>>, vector<8x128xf32>
    %cst_155 = arith.constant dense<0.000000e+00> : vector<8x128xf32>
    %570 = tpu.matmul %554, %410, %cst_155 {dimension_numbers = #tpu.dot_dimension_numbers<[1], [0], [0], [1], [0, 0, 1, 1], [], []>} : vector<8x32xf32>, vector<32x128xf32>, vector<8x128xf32> -> vector<8x128xf32>
    %571 = arith.addf %569, %570 : vector<8x128xf32>
    %572 = vector.extract_strided_slice %567 {offsets = [0, 0], sizes = [8, 96], strides = [1, 1]} : vector<8x128xf32> to vector<8x96xf32>
    %573 = arith.negf %572 : vector<8x96xf32>
    %574 = math.exp %573 : vector<8x96xf32>
    %cst_156 = arith.constant 1.000000e+00 : f32
    %575 = vector.broadcast %cst_156 : f32 to vector<8x96xf32>
    %576 = arith.addf %575, %574 : vector<8x96xf32>
    %577 = arith.divf %575, %576 : vector<8x96xf32>
    %578 = vector.extract_strided_slice %571 {offsets = [0, 0], sizes = [8, 96], strides = [1, 1]} : vector<8x128xf32> to vector<8x96xf32>
    %579 = arith.negf %578 : vector<8x96xf32>
    %580 = math.exp %579 : vector<8x96xf32>
    %cst_157 = arith.constant 1.000000e+00 : f32
    %581 = vector.broadcast %cst_157 : f32 to vector<8x96xf32>
    %582 = arith.addf %581, %580 : vector<8x96xf32>
    %583 = arith.divf %581, %582 : vector<8x96xf32>
    %584 = vector.extract_strided_slice %567 {offsets = [0, 96], sizes = [8, 32], strides = [1, 1]} : vector<8x128xf32> to vector<8x32xf32>
    %585 = math.tanh %584 : vector<8x32xf32>
    %586 = vector.extract_strided_slice %571 {offsets = [0, 96], sizes = [8, 32], strides = [1, 1]} : vector<8x128xf32> to vector<8x32xf32>
    %587 = math.tanh %586 : vector<8x32xf32>
    %588 = vector.extract_strided_slice %577 {offsets = [0, 32], sizes = [8, 32], strides = [1, 1]} : vector<8x96xf32> to vector<8x32xf32>
    %589 = arith.mulf %588, %543 : vector<8x32xf32>
    %590 = vector.extract_strided_slice %577 {offsets = [0, 0], sizes = [8, 32], strides = [1, 1]} : vector<8x96xf32> to vector<8x32xf32>
    %591 = arith.mulf %590, %585 : vector<8x32xf32>
    %592 = arith.addf %589, %591 : vector<8x32xf32>
    %593 = vector.extract_strided_slice %583 {offsets = [0, 32], sizes = [8, 32], strides = [1, 1]} : vector<8x96xf32> to vector<8x32xf32>
    %594 = arith.mulf %593, %548 : vector<8x32xf32>
    %595 = vector.extract_strided_slice %583 {offsets = [0, 0], sizes = [8, 32], strides = [1, 1]} : vector<8x96xf32> to vector<8x32xf32>
    %596 = arith.mulf %595, %587 : vector<8x32xf32>
    %597 = arith.addf %594, %596 : vector<8x32xf32>
    %598 = vector.extract_strided_slice %577 {offsets = [0, 64], sizes = [8, 32], strides = [1, 1]} : vector<8x96xf32> to vector<8x32xf32>
    %599 = math.tanh %592 : vector<8x32xf32>
    %600 = arith.mulf %598, %599 : vector<8x32xf32>
    %601 = vector.extract_strided_slice %583 {offsets = [0, 64], sizes = [8, 32], strides = [1, 1]} : vector<8x96xf32> to vector<8x32xf32>
    %602 = math.tanh %597 : vector<8x32xf32>
    %603 = arith.mulf %601, %602 : vector<8x32xf32>
    %604 = arith.index_cast %560 : i32 to index
    %c0_158 = arith.constant 0 : index
    %605 = vector.load %arg13[%604, %c0_158] : memref<64x64xf32, #tpu.memory_space<vmem>>, vector<8x32xf32>
    tpu.vector_store %arg13[%604, %c0_158], %600 {strides = array<i32>} : memref<64x64xf32, #tpu.memory_space<vmem>>, vector<8x32xf32>,
    %606 = arith.index_cast %563 : i32 to index
    %c32_159 = arith.constant 32 : index
    %607 = vector.load %arg13[%606, %c32_159] : memref<64x64xf32, #tpu.memory_space<vmem>>, vector<8x32xf32>
    tpu.vector_store %arg13[%606, %c32_159], %603 {strides = array<i32>} : memref<64x64xf32, #tpu.memory_space<vmem>>, vector<8x32xf32>,
    %c4_i32_160 = arith.constant 4 : i32
    %c8_i32_161 = arith.constant 8 : i32
    %608 = arith.muli %c4_i32_160, %c8_i32_161 : i32
    %609 = tpu.assume_multiple %608, 8 : i32
    %c7_i32_162 = arith.constant 7 : i32
    %610 = arith.subi %c7_i32_162, %c4_i32_160 : i32
    %c8_i32_163 = arith.constant 8 : i32
    %611 = arith.muli %610, %c8_i32_163 : i32
    %612 = tpu.assume_multiple %611, 8 : i32
    %613 = arith.index_cast %609 : i32 to index
    %c0_164 = arith.constant 0 : index
    %614 = vector.load %arg14[%613, %c0_164] : memref<64x256xf32, #tpu.memory_space<vmem>>, vector<8x128xf32>
    %cst_165 = arith.constant dense<0.000000e+00> : vector<8x128xf32>
    %615 = tpu.matmul %600, %409, %cst_165 {dimension_numbers = #tpu.dot_dimension_numbers<[1], [0], [0], [1], [0, 0, 1, 1], [], []>} : vector<8x32xf32>, vector<32x128xf32>, vector<8x128xf32> -> vector<8x128xf32>
    %616 = arith.addf %614, %615 : vector<8x128xf32>
    %617 = arith.index_cast %612 : i32 to index
    %c128_166 = arith.constant 128 : index
    %618 = vector.load %arg14[%617, %c128_166] : memref<64x256xf32, #tpu.memory_space<vmem>>, vector<8x128xf32>
    %cst_167 = arith.constant dense<0.000000e+00> : vector<8x128xf32>
    %619 = tpu.matmul %603, %410, %cst_167 {dimension_numbers = #tpu.dot_dimension_numbers<[1], [0], [0], [1], [0, 0, 1, 1], [], []>} : vector<8x32xf32>, vector<32x128xf32>, vector<8x128xf32> -> vector<8x128xf32>
    %620 = arith.addf %618, %619 : vector<8x128xf32>
    %621 = vector.extract_strided_slice %616 {offsets = [0, 0], sizes = [8, 96], strides = [1, 1]} : vector<8x128xf32> to vector<8x96xf32>
    %622 = arith.negf %621 : vector<8x96xf32>
    %623 = math.exp %622 : vector<8x96xf32>
    %cst_168 = arith.constant 1.000000e+00 : f32
    %624 = vector.broadcast %cst_168 : f32 to vector<8x96xf32>
    %625 = arith.addf %624, %623 : vector<8x96xf32>
    %626 = arith.divf %624, %625 : vector<8x96xf32>
    %627 = vector.extract_strided_slice %620 {offsets = [0, 0], sizes = [8, 96], strides = [1, 1]} : vector<8x128xf32> to vector<8x96xf32>
    %628 = arith.negf %627 : vector<8x96xf32>
    %629 = math.exp %628 : vector<8x96xf32>
    %cst_169 = arith.constant 1.000000e+00 : f32
    %630 = vector.broadcast %cst_169 : f32 to vector<8x96xf32>
    %631 = arith.addf %630, %629 : vector<8x96xf32>
    %632 = arith.divf %630, %631 : vector<8x96xf32>
    %633 = vector.extract_strided_slice %616 {offsets = [0, 96], sizes = [8, 32], strides = [1, 1]} : vector<8x128xf32> to vector<8x32xf32>
    %634 = math.tanh %633 : vector<8x32xf32>
    %635 = vector.extract_strided_slice %620 {offsets = [0, 96], sizes = [8, 32], strides = [1, 1]} : vector<8x128xf32> to vector<8x32xf32>
    %636 = math.tanh %635 : vector<8x32xf32>
    %637 = vector.extract_strided_slice %626 {offsets = [0, 32], sizes = [8, 32], strides = [1, 1]} : vector<8x96xf32> to vector<8x32xf32>
    %638 = arith.mulf %637, %592 : vector<8x32xf32>
    %639 = vector.extract_strided_slice %626 {offsets = [0, 0], sizes = [8, 32], strides = [1, 1]} : vector<8x96xf32> to vector<8x32xf32>
    %640 = arith.mulf %639, %634 : vector<8x32xf32>
    %641 = arith.addf %638, %640 : vector<8x32xf32>
    %642 = vector.extract_strided_slice %632 {offsets = [0, 32], sizes = [8, 32], strides = [1, 1]} : vector<8x96xf32> to vector<8x32xf32>
    %643 = arith.mulf %642, %597 : vector<8x32xf32>
    %644 = vector.extract_strided_slice %632 {offsets = [0, 0], sizes = [8, 32], strides = [1, 1]} : vector<8x96xf32> to vector<8x32xf32>
    %645 = arith.mulf %644, %636 : vector<8x32xf32>
    %646 = arith.addf %643, %645 : vector<8x32xf32>
    %647 = vector.extract_strided_slice %626 {offsets = [0, 64], sizes = [8, 32], strides = [1, 1]} : vector<8x96xf32> to vector<8x32xf32>
    %648 = math.tanh %641 : vector<8x32xf32>
    %649 = arith.mulf %647, %648 : vector<8x32xf32>
    %650 = vector.extract_strided_slice %632 {offsets = [0, 64], sizes = [8, 32], strides = [1, 1]} : vector<8x96xf32> to vector<8x32xf32>
    %651 = math.tanh %646 : vector<8x32xf32>
    %652 = arith.mulf %650, %651 : vector<8x32xf32>
    %653 = arith.index_cast %609 : i32 to index
    %c0_170 = arith.constant 0 : index
    %654 = vector.load %arg13[%653, %c0_170] : memref<64x64xf32, #tpu.memory_space<vmem>>, vector<8x32xf32>
    tpu.vector_store %arg13[%653, %c0_170], %649 {strides = array<i32>} : memref<64x64xf32, #tpu.memory_space<vmem>>, vector<8x32xf32>,
    %655 = arith.index_cast %612 : i32 to index
    %c32_171 = arith.constant 32 : index
    %656 = vector.load %arg13[%655, %c32_171] : memref<64x64xf32, #tpu.memory_space<vmem>>, vector<8x32xf32>
    tpu.vector_store %arg13[%655, %c32_171], %652 {strides = array<i32>} : memref<64x64xf32, #tpu.memory_space<vmem>>, vector<8x32xf32>,
    %c5_i32_172 = arith.constant 5 : i32
    %c8_i32_173 = arith.constant 8 : i32
    %657 = arith.muli %c5_i32_172, %c8_i32_173 : i32
    %658 = tpu.assume_multiple %657, 8 : i32
    %c7_i32_174 = arith.constant 7 : i32
    %659 = arith.subi %c7_i32_174, %c5_i32_172 : i32
    %c8_i32_175 = arith.constant 8 : i32
    %660 = arith.muli %659, %c8_i32_175 : i32
    %661 = tpu.assume_multiple %660, 8 : i32
    %662 = arith.index_cast %658 : i32 to index
    %c0_176 = arith.constant 0 : index
    %663 = vector.load %arg14[%662, %c0_176] : memref<64x256xf32, #tpu.memory_space<vmem>>, vector<8x128xf32>
    %cst_177 = arith.constant dense<0.000000e+00> : vector<8x128xf32>
    %664 = tpu.matmul %649, %409, %cst_177 {dimension_numbers = #tpu.dot_dimension_numbers<[1], [0], [0], [1], [0, 0, 1, 1], [], []>} : vector<8x32xf32>, vector<32x128xf32>, vector<8x128xf32> -> vector<8x128xf32>
    %665 = arith.addf %663, %664 : vector<8x128xf32>
    %666 = arith.index_cast %661 : i32 to index
    %c128_178 = arith.constant 128 : index
    %667 = vector.load %arg14[%666, %c128_178] : memref<64x256xf32, #tpu.memory_space<vmem>>, vector<8x128xf32>
    %cst_179 = arith.constant dense<0.000000e+00> : vector<8x128xf32>
    %668 = tpu.matmul %652, %410, %cst_179 {dimension_numbers = #tpu.dot_dimension_numbers<[1], [0], [0], [1], [0, 0, 1, 1], [], []>} : vector<8x32xf32>, vector<32x128xf32>, vector<8x128xf32> -> vector<8x128xf32>
    %669 = arith.addf %667, %668 : vector<8x128xf32>
    %670 = vector.extract_strided_slice %665 {offsets = [0, 0], sizes = [8, 96], strides = [1, 1]} : vector<8x128xf32> to vector<8x96xf32>
    %671 = arith.negf %670 : vector<8x96xf32>
    %672 = math.exp %671 : vector<8x96xf32>
    %cst_180 = arith.constant 1.000000e+00 : f32
    %673 = vector.broadcast %cst_180 : f32 to vector<8x96xf32>
    %674 = arith.addf %673, %672 : vector<8x96xf32>
    %675 = arith.divf %673, %674 : vector<8x96xf32>
    %676 = vector.extract_strided_slice %669 {offsets = [0, 0], sizes = [8, 96], strides = [1, 1]} : vector<8x128xf32> to vector<8x96xf32>
    %677 = arith.negf %676 : vector<8x96xf32>
    %678 = math.exp %677 : vector<8x96xf32>
    %cst_181 = arith.constant 1.000000e+00 : f32
    %679 = vector.broadcast %cst_181 : f32 to vector<8x96xf32>
    %680 = arith.addf %679, %678 : vector<8x96xf32>
    %681 = arith.divf %679, %680 : vector<8x96xf32>
    %682 = vector.extract_strided_slice %665 {offsets = [0, 96], sizes = [8, 32], strides = [1, 1]} : vector<8x128xf32> to vector<8x32xf32>
    %683 = math.tanh %682 : vector<8x32xf32>
    %684 = vector.extract_strided_slice %669 {offsets = [0, 96], sizes = [8, 32], strides = [1, 1]} : vector<8x128xf32> to vector<8x32xf32>
    %685 = math.tanh %684 : vector<8x32xf32>
    %686 = vector.extract_strided_slice %675 {offsets = [0, 32], sizes = [8, 32], strides = [1, 1]} : vector<8x96xf32> to vector<8x32xf32>
    %687 = arith.mulf %686, %641 : vector<8x32xf32>
    %688 = vector.extract_strided_slice %675 {offsets = [0, 0], sizes = [8, 32], strides = [1, 1]} : vector<8x96xf32> to vector<8x32xf32>
    %689 = arith.mulf %688, %683 : vector<8x32xf32>
    %690 = arith.addf %687, %689 : vector<8x32xf32>
    %691 = vector.extract_strided_slice %681 {offsets = [0, 32], sizes = [8, 32], strides = [1, 1]} : vector<8x96xf32> to vector<8x32xf32>
    %692 = arith.mulf %691, %646 : vector<8x32xf32>
    %693 = vector.extract_strided_slice %681 {offsets = [0, 0], sizes = [8, 32], strides = [1, 1]} : vector<8x96xf32> to vector<8x32xf32>
    %694 = arith.mulf %693, %685 : vector<8x32xf32>
    %695 = arith.addf %692, %694 : vector<8x32xf32>
    %696 = vector.extract_strided_slice %675 {offsets = [0, 64], sizes = [8, 32], strides = [1, 1]} : vector<8x96xf32> to vector<8x32xf32>
    %697 = math.tanh %690 : vector<8x32xf32>
    %698 = arith.mulf %696, %697 : vector<8x32xf32>
    %699 = vector.extract_strided_slice %681 {offsets = [0, 64], sizes = [8, 32], strides = [1, 1]} : vector<8x96xf32> to vector<8x32xf32>
    %700 = math.tanh %695 : vector<8x32xf32>
    %701 = arith.mulf %699, %700 : vector<8x32xf32>
    %702 = arith.index_cast %658 : i32 to index
    %c0_182 = arith.constant 0 : index
    %703 = vector.load %arg13[%702, %c0_182] : memref<64x64xf32, #tpu.memory_space<vmem>>, vector<8x32xf32>
    tpu.vector_store %arg13[%702, %c0_182], %698 {strides = array<i32>} : memref<64x64xf32, #tpu.memory_space<vmem>>, vector<8x32xf32>,
    %704 = arith.index_cast %661 : i32 to index
    %c32_183 = arith.constant 32 : index
    %705 = vector.load %arg13[%704, %c32_183] : memref<64x64xf32, #tpu.memory_space<vmem>>, vector<8x32xf32>
    tpu.vector_store %arg13[%704, %c32_183], %701 {strides = array<i32>} : memref<64x64xf32, #tpu.memory_space<vmem>>, vector<8x32xf32>,
    %c6_i32_184 = arith.constant 6 : i32
    %c8_i32_185 = arith.constant 8 : i32
    %706 = arith.muli %c6_i32_184, %c8_i32_185 : i32
    %707 = tpu.assume_multiple %706, 8 : i32
    %c7_i32_186 = arith.constant 7 : i32
    %708 = arith.subi %c7_i32_186, %c6_i32_184 : i32
    %c8_i32_187 = arith.constant 8 : i32
    %709 = arith.muli %708, %c8_i32_187 : i32
    %710 = tpu.assume_multiple %709, 8 : i32
    %711 = arith.index_cast %707 : i32 to index
    %c0_188 = arith.constant 0 : index
    %712 = vector.load %arg14[%711, %c0_188] : memref<64x256xf32, #tpu.memory_space<vmem>>, vector<8x128xf32>
    %cst_189 = arith.constant dense<0.000000e+00> : vector<8x128xf32>
    %713 = tpu.matmul %698, %409, %cst_189 {dimension_numbers = #tpu.dot_dimension_numbers<[1], [0], [0], [1], [0, 0, 1, 1], [], []>} : vector<8x32xf32>, vector<32x128xf32>, vector<8x128xf32> -> vector<8x128xf32>
    %714 = arith.addf %712, %713 : vector<8x128xf32>
    %715 = arith.index_cast %710 : i32 to index
    %c128_190 = arith.constant 128 : index
    %716 = vector.load %arg14[%715, %c128_190] : memref<64x256xf32, #tpu.memory_space<vmem>>, vector<8x128xf32>
    %cst_191 = arith.constant dense<0.000000e+00> : vector<8x128xf32>
    %717 = tpu.matmul %701, %410, %cst_191 {dimension_numbers = #tpu.dot_dimension_numbers<[1], [0], [0], [1], [0, 0, 1, 1], [], []>} : vector<8x32xf32>, vector<32x128xf32>, vector<8x128xf32> -> vector<8x128xf32>
    %718 = arith.addf %716, %717 : vector<8x128xf32>
    %719 = vector.extract_strided_slice %714 {offsets = [0, 0], sizes = [8, 96], strides = [1, 1]} : vector<8x128xf32> to vector<8x96xf32>
    %720 = arith.negf %719 : vector<8x96xf32>
    %721 = math.exp %720 : vector<8x96xf32>
    %cst_192 = arith.constant 1.000000e+00 : f32
    %722 = vector.broadcast %cst_192 : f32 to vector<8x96xf32>
    %723 = arith.addf %722, %721 : vector<8x96xf32>
    %724 = arith.divf %722, %723 : vector<8x96xf32>
    %725 = vector.extract_strided_slice %718 {offsets = [0, 0], sizes = [8, 96], strides = [1, 1]} : vector<8x128xf32> to vector<8x96xf32>
    %726 = arith.negf %725 : vector<8x96xf32>
    %727 = math.exp %726 : vector<8x96xf32>
    %cst_193 = arith.constant 1.000000e+00 : f32
    %728 = vector.broadcast %cst_193 : f32 to vector<8x96xf32>
    %729 = arith.addf %728, %727 : vector<8x96xf32>
    %730 = arith.divf %728, %729 : vector<8x96xf32>
    %731 = vector.extract_strided_slice %714 {offsets = [0, 96], sizes = [8, 32], strides = [1, 1]} : vector<8x128xf32> to vector<8x32xf32>
    %732 = math.tanh %731 : vector<8x32xf32>
    %733 = vector.extract_strided_slice %718 {offsets = [0, 96], sizes = [8, 32], strides = [1, 1]} : vector<8x128xf32> to vector<8x32xf32>
    %734 = math.tanh %733 : vector<8x32xf32>
    %735 = vector.extract_strided_slice %724 {offsets = [0, 32], sizes = [8, 32], strides = [1, 1]} : vector<8x96xf32> to vector<8x32xf32>
    %736 = arith.mulf %735, %690 : vector<8x32xf32>
    %737 = vector.extract_strided_slice %724 {offsets = [0, 0], sizes = [8, 32], strides = [1, 1]} : vector<8x96xf32> to vector<8x32xf32>
    %738 = arith.mulf %737, %732 : vector<8x32xf32>
    %739 = arith.addf %736, %738 : vector<8x32xf32>
    %740 = vector.extract_strided_slice %730 {offsets = [0, 32], sizes = [8, 32], strides = [1, 1]} : vector<8x96xf32> to vector<8x32xf32>
    %741 = arith.mulf %740, %695 : vector<8x32xf32>
    %742 = vector.extract_strided_slice %730 {offsets = [0, 0], sizes = [8, 32], strides = [1, 1]} : vector<8x96xf32> to vector<8x32xf32>
    %743 = arith.mulf %742, %734 : vector<8x32xf32>
    %744 = arith.addf %741, %743 : vector<8x32xf32>
    %745 = vector.extract_strided_slice %724 {offsets = [0, 64], sizes = [8, 32], strides = [1, 1]} : vector<8x96xf32> to vector<8x32xf32>
    %746 = math.tanh %739 : vector<8x32xf32>
    %747 = arith.mulf %745, %746 : vector<8x32xf32>
    %748 = vector.extract_strided_slice %730 {offsets = [0, 64], sizes = [8, 32], strides = [1, 1]} : vector<8x96xf32> to vector<8x32xf32>
    %749 = math.tanh %744 : vector<8x32xf32>
    %750 = arith.mulf %748, %749 : vector<8x32xf32>
    %751 = arith.index_cast %707 : i32 to index
    %c0_194 = arith.constant 0 : index
    %752 = vector.load %arg13[%751, %c0_194] : memref<64x64xf32, #tpu.memory_space<vmem>>, vector<8x32xf32>
    tpu.vector_store %arg13[%751, %c0_194], %747 {strides = array<i32>} : memref<64x64xf32, #tpu.memory_space<vmem>>, vector<8x32xf32>,
    %753 = arith.index_cast %710 : i32 to index
    %c32_195 = arith.constant 32 : index
    %754 = vector.load %arg13[%753, %c32_195] : memref<64x64xf32, #tpu.memory_space<vmem>>, vector<8x32xf32>
    tpu.vector_store %arg13[%753, %c32_195], %750 {strides = array<i32>} : memref<64x64xf32, #tpu.memory_space<vmem>>, vector<8x32xf32>,
    %c7_i32_196 = arith.constant 7 : i32
    %c8_i32_197 = arith.constant 8 : i32
    %755 = arith.muli %c7_i32_196, %c8_i32_197 : i32
    %756 = tpu.assume_multiple %755, 8 : i32
    %c7_i32_198 = arith.constant 7 : i32
    %757 = arith.subi %c7_i32_198, %c7_i32_196 : i32
    %c8_i32_199 = arith.constant 8 : i32
    %758 = arith.muli %757, %c8_i32_199 : i32
    %759 = tpu.assume_multiple %758, 8 : i32
    %760 = arith.index_cast %756 : i32 to index
    %c0_200 = arith.constant 0 : index
    %761 = vector.load %arg14[%760, %c0_200] : memref<64x256xf32, #tpu.memory_space<vmem>>, vector<8x128xf32>
    %cst_201 = arith.constant dense<0.000000e+00> : vector<8x128xf32>
    %762 = tpu.matmul %747, %409, %cst_201 {dimension_numbers = #tpu.dot_dimension_numbers<[1], [0], [0], [1], [0, 0, 1, 1], [], []>} : vector<8x32xf32>, vector<32x128xf32>, vector<8x128xf32> -> vector<8x128xf32>
    %763 = arith.addf %761, %762 : vector<8x128xf32>
    %764 = arith.index_cast %759 : i32 to index
    %c128_202 = arith.constant 128 : index
    %765 = vector.load %arg14[%764, %c128_202] : memref<64x256xf32, #tpu.memory_space<vmem>>, vector<8x128xf32>
    %cst_203 = arith.constant dense<0.000000e+00> : vector<8x128xf32>
    %766 = tpu.matmul %750, %410, %cst_203 {dimension_numbers = #tpu.dot_dimension_numbers<[1], [0], [0], [1], [0, 0, 1, 1], [], []>} : vector<8x32xf32>, vector<32x128xf32>, vector<8x128xf32> -> vector<8x128xf32>
    %767 = arith.addf %765, %766 : vector<8x128xf32>
    %768 = vector.extract_strided_slice %763 {offsets = [0, 0], sizes = [8, 96], strides = [1, 1]} : vector<8x128xf32> to vector<8x96xf32>
    %769 = arith.negf %768 : vector<8x96xf32>
    %770 = math.exp %769 : vector<8x96xf32>
    %cst_204 = arith.constant 1.000000e+00 : f32
    %771 = vector.broadcast %cst_204 : f32 to vector<8x96xf32>
    %772 = arith.addf %771, %770 : vector<8x96xf32>
    %773 = arith.divf %771, %772 : vector<8x96xf32>
    %774 = vector.extract_strided_slice %767 {offsets = [0, 0], sizes = [8, 96], strides = [1, 1]} : vector<8x128xf32> to vector<8x96xf32>
    %775 = arith.negf %774 : vector<8x96xf32>
    %776 = math.exp %775 : vector<8x96xf32>
    %cst_205 = arith.constant 1.000000e+00 : f32
    %777 = vector.broadcast %cst_205 : f32 to vector<8x96xf32>
    %778 = arith.addf %777, %776 : vector<8x96xf32>
    %779 = arith.divf %777, %778 : vector<8x96xf32>
    %780 = vector.extract_strided_slice %763 {offsets = [0, 96], sizes = [8, 32], strides = [1, 1]} : vector<8x128xf32> to vector<8x32xf32>
    %781 = math.tanh %780 : vector<8x32xf32>
    %782 = vector.extract_strided_slice %767 {offsets = [0, 96], sizes = [8, 32], strides = [1, 1]} : vector<8x128xf32> to vector<8x32xf32>
    %783 = math.tanh %782 : vector<8x32xf32>
    %784 = vector.extract_strided_slice %773 {offsets = [0, 32], sizes = [8, 32], strides = [1, 1]} : vector<8x96xf32> to vector<8x32xf32>
    %785 = arith.mulf %784, %739 : vector<8x32xf32>
    %786 = vector.extract_strided_slice %773 {offsets = [0, 0], sizes = [8, 32], strides = [1, 1]} : vector<8x96xf32> to vector<8x32xf32>
    %787 = arith.mulf %786, %781 : vector<8x32xf32>
    %788 = arith.addf %785, %787 : vector<8x32xf32>
    %789 = vector.extract_strided_slice %779 {offsets = [0, 32], sizes = [8, 32], strides = [1, 1]} : vector<8x96xf32> to vector<8x32xf32>
    %790 = arith.mulf %789, %744 : vector<8x32xf32>
    %791 = vector.extract_strided_slice %779 {offsets = [0, 0], sizes = [8, 32], strides = [1, 1]} : vector<8x96xf32> to vector<8x32xf32>
    %792 = arith.mulf %791, %783 : vector<8x32xf32>
    %793 = arith.addf %790, %792 : vector<8x32xf32>
    %794 = vector.extract_strided_slice %773 {offsets = [0, 64], sizes = [8, 32], strides = [1, 1]} : vector<8x96xf32> to vector<8x32xf32>
    %795 = math.tanh %788 : vector<8x32xf32>
    %796 = arith.mulf %794, %795 : vector<8x32xf32>
    %797 = vector.extract_strided_slice %779 {offsets = [0, 64], sizes = [8, 32], strides = [1, 1]} : vector<8x96xf32> to vector<8x32xf32>
    %798 = math.tanh %793 : vector<8x32xf32>
    %799 = arith.mulf %797, %798 : vector<8x32xf32>
    %800 = arith.index_cast %756 : i32 to index
    %c0_206 = arith.constant 0 : index
    %801 = vector.load %arg13[%800, %c0_206] : memref<64x64xf32, #tpu.memory_space<vmem>>, vector<8x32xf32>
    tpu.vector_store %arg13[%800, %c0_206], %796 {strides = array<i32>} : memref<64x64xf32, #tpu.memory_space<vmem>>, vector<8x32xf32>,
    %802 = arith.index_cast %759 : i32 to index
    %c32_207 = arith.constant 32 : index
    %803 = vector.load %arg13[%802, %c32_207] : memref<64x64xf32, #tpu.memory_space<vmem>>, vector<8x32xf32>
    tpu.vector_store %arg13[%802, %c32_207], %799 {strides = array<i32>} : memref<64x64xf32, #tpu.memory_space<vmem>>, vector<8x32xf32>,
    %c8_i32_208 = arith.constant 8 : i32
    %c56 = arith.constant 56 : index
    %c0_209 = arith.constant 0 : index
    %804 = vector.load %arg13[%c56, %c0_209] : memref<64x64xf32, #tpu.memory_space<vmem>>, vector<8x64xf32>
    %c0_210 = arith.constant 0 : index
    %c0_211 = arith.constant 0 : index
    %805 = vector.load %arg9[%c0_210, %c0_211] : memref<64x128xf32, #tpu.memory_space<vmem>>, vector<64x128xf32>
    %cst_212 = arith.constant dense<0.000000e+00> : vector<8x128xf32>
    %806 = tpu.matmul %804, %805, %cst_212 {dimension_numbers = #tpu.dot_dimension_numbers<[1], [0], [0], [1], [0, 0, 1, 1], [], []>} : vector<8x64xf32>, vector<64x128xf32>, vector<8x128xf32> -> vector<8x128xf32>
    %c0_213 = arith.constant 0 : index
    %c0_214 = arith.constant 0 : index
    %807 = vector.load %arg10[%c0_213, %c0_214] : memref<1x128xf32, #tpu.memory_space<vmem>>, vector<1x128xf32>
    %808 = vector.broadcast %807 : vector<1x128xf32> to vector<8x128xf32>
    %809 = arith.addf %806, %808 : vector<8x128xf32>
    %c0_215 = arith.constant 0 : index
    %c0_216 = arith.constant 0 : index
    %810 = vector.load %arg11[%c0_215, %c0_216] : memref<8x128xf32, #tpu.memory_space<vmem>>, vector<8x128xf32>
    tpu.vector_store %arg11[%c0_215, %c0_216], %809 {strides = array<i32>} : memref<8x128xf32, #tpu.memory_space<vmem>>, vector<8x128xf32>,
    return
  }
}

</mosaic_0001>

<bundles_post_ra>
// kernel: bilstm_forward.1
= control target key start
LH: loop header
LB: loop body
LE: loop exit
PB: predicated region body
PF: predicated region fallthrough
CT: control target
= control target key end

     0   :  { %v4986_v3 = vmov 0.0   ;;  %v4987_v4 = vmov 0.0|0.0   ;;  %vm4988_vm0 = vmmov 0   ;;  %vm62_vm1 = vcmask 130048   ;;  %s4990_s16 = smov 64   ;;  %s5864_s1 = inlined_call_operand.vmem [shape: f32[16,256], index: 1, kind: input, shape index: {}]   ;;  %s5865_s2 = inlined_call_operand.vmem [shape: f32[32,128], index: 2, kind: input, shape index: {}]   ;;  %s5866_s0 = inlined_call_operand.vmem [shape: f32[64,16], index: 0, kind: input, shape index: {}]   ;;  %s5867_s3 = inlined_call_operand.vmem [shape: f32[32,128], index: 3, kind: input, shape index: {}]   ;;  %s5868_s4 = inlined_call_operand.vmem [shape: f32[1,256], index: 4, kind: input, shape index: {}]   ;;  %s5869_s5 = inlined_call_operand.vmem [shape: f32[64,256], index: 5, kind: input, shape index: {}]   ;;  %s5870_s6 = inlined_call_operand.vmem [shape: f32[32,128], index: 6, kind: input, shape index: {}]   ;;  %s5871_s7 = inlined_call_operand.vmem [shape: f32[32,128], index: 7, kind: input, shape index: {}]   ;;  %s5872_s8 = inlined_call_operand.vmem [shape: f32[1,256], index: 8, kind: input, shape index: {}]   ;;  %s5873_s9 = inlined_call_operand.vmem [shape: f32[64,128], index: 9, kind: input, shape index: {}]   ;;  %s5874_s10 = inlined_call_operand.vmem [shape: f32[1,128], index: 10, kind: input, shape index: {}]   ;;  %s5875_s11 = inlined_call_operand.vmem [shape: f32[8,128], index: 11, kind: output, shape index: {}]  }
   0x1   :  { %v47_v0 = vld [vmem:[%s5864_s1 + $0x8] sm:$0xff]  ;;  %v49_v1 = vld [vmem:[%s5864_s1 + $0x18] sm:$0xff]  ;;  %v46_v2 = vld [vmem:[%s5864_s1] sm:$0xff]  ;;  %151 = vmatprep.mubr.f32.mxu0 %v4986_v3  ;;  %4510 = vmatprep.subr.bf16.mxu1 %v4987_v4  ;;  %v52_v28 = vlaneseq  ;;  %vm228_vm2 = vcmask 261120   ;;  %vm436_vm3 = vcmask 523520   ;;  %vm1954_vm4 = vcmask 523264  }
   0x2   :  { %v4500_v5 = vpack.c.bf16 %v49_v1, %v47_v0  ;;  %v48_v6 = vld [vmem:[%s5864_s1 + $0x10] sm:$0xff]  ;;  %v216_v7 = vld [vmem:[%s5865_s2] sm:$0xff]  ;;  %4148 = vmatprep.mubr.msk.f32.mxu1 %vm4988_vm0, %v4986_v3  ;;  %v217_v9 = vld [vmem:[%s5865_s2 + $0x8] sm:$0xff] }
   0x3   :  { %v4502_v8 = vpack.c.bf16 %v48_v6, %v46_v2  ;;  %v38_v10 = vld [vmem:[%s5866_s0] sm:$0xff]  ;;  %v5077_v11 = vpack.c.bf16 %v217_v9, %v216_v7  ;;  %v218_v12 = vld [vmem:[%s5865_s2 + $0x10] sm:$0xff]  ;;  %v219_v13 = vld [vmem:[%s5865_s2 + $0x18] sm:$0xff]  ;;  %v5164_v29 = vshrl.u32 %v52_v28, 7 }
   0x4   :  { %4501 = vmatprep.subr.bf16.mxu0 %v4500_v5  ;;  %v220_v14 = vld [vmem:[%s5867_s3] sm:$0xff]  ;;  %v221_v15 = vld [vmem:[%s5867_s3 + $0x8] sm:$0xff]  ;;  %v222_v17 = vld [vmem:[%s5867_s3 + $0x10] sm:$0xff]  ;;  %v5106_v20 = vpack.c.bf16 %v219_v13, %v218_v12 }
   0x5   :  { %4503 = vmatpush1.bf16.msra.mxu0 %v4502_v8  ;;  %v5092_v16 = vpack.c.bf16 %v221_v15, %v220_v14  ;;  %v223_v18 = vld [vmem:[%s5867_s3 + $0x18] sm:$0xff]  ;;  %v39_v19 = vld [vmem:[%s5866_s0 + $0x8] sm:$0xff]  ;;  %v40_v22 = vld [vmem:[%s5866_s0 + $0x10] sm:$0xff]  ;;  %v58_v30 = vsub.s32 1, %v5164_v29  ;;  %v54_v33 = vsub.s32 0, %v5164_v29 }
   0x6   :  { %4504 = vmatprep.subr.bf16.mxu0 %v4987_v4  ;;  %v5110_v21 = vpack.c.bf16 %v223_v18, %v222_v17  ;;  %v41_v23 = vld [vmem:[%s5866_s0 + $0x18] sm:$0xff]  ;;  %v42_v24 = vld [vmem:[%s5866_s0 + $0x20] sm:$0xff]  ;;  %v43_v25 = vld [vmem:[%s5866_s0 + $0x28] sm:$0xff] }
   0x7   :  { %4512 = vmatpush3.bf16.msra.mxu1 %v5092_v16  ;;  %v44_v26 = vld [vmem:[%s5866_s0 + $0x30] sm:$0xff]  ;;  %v45_v27 = vld [vmem:[%s5866_s0 + $0x38] sm:$0xff]  ;;  %v50_v31 = vld [vmem:[%s5868_s4] sm:$0x3]  ;;  %s4989_s4 = smov 32  }
   0x8   :  { %3882 = vmatmul.mubr.msk.f32.vlgmr.msra.gmra.mrb[0].mxu0 %vm62_vm1, %v38_v10  ;;  %4513 = vmatprep.subr.bf16.mxu1 %v4987_v4  ;;  %v59_v32 = vrot.slane %v50_v31, %v58_v30  ;;  %v55_v37 = vrot.slane %v50_v31, %v54_v33 }
   0x9   :  { %4506 = vmatpush3.bf16.msra.mxu0 %v5077_v11  ;;  %157 = vmatprep.mubr.f32.mxu0 %v4986_v3 }
   0xa   :  { %4507 = vmatprep.subr.bf16.mxu0 %v4987_v4 }
   0xb   :  { %4515 = vmatpush3.bf16.msra.mxu1 %v5110_v21 }
   0xc   :  { %3883 = vmatmul.mubr.msk.f32.gmra.mrb[2].mxu0 %vm62_vm1, %v39_v19  ;;  %4516 = vmatprep.subr.bf16.mxu1 %v4987_v4 }
   0xd   :  { %163 = vmatprep.mubr.f32.mxu0 %v4986_v3  ;;  %4509 = vmatpush3.bf16.msra.mxu0 %v5106_v20 }
   0xe   :  { %4528 = vmatprep.subr.bf16.mxu0 %v4987_v4  ;;  %4149 = vmatmul.mubr.f32.vlgmr.msra.gmra.mrb[0].mxu1 %v4986_v3 }
   0xf   :  { %4518 = vmatpush3.bf16.msra.mxu1 %v5077_v11  ;;  %4159 = vmatprep.mubr.msk.f32.mxu1 %vm4988_vm0, %v4986_v3 }
  0x10   :  { %3884 = vmatmul.mubr.msk.f32.gmra.mrb[4].mxu0 %vm62_vm1, %v40_v22  ;;  %4519 = vmatprep.subr.bf16.mxu1 %v4987_v4 }
  0x11   :  { %169 = vmatprep.mubr.f32.mxu0 %v4986_v3 }
  0x13   :  { %4521 = vmatpush3.bf16.msra.mxu1 %v5106_v20 }
  0x14   :  { %3885 = vmatmul.mubr.msk.f32.gmra.mrb[6].mxu0 %vm62_vm1, %v41_v23  ;;  %4522 = vmatprep.subr.bf16.mxu1 %v4987_v4 }
  0x15   :  { %175 = vmatprep.mubr.f32.mxu0 %v4986_v3 }
  0x18   :  { %3886 = vmatmul.mubr.msk.f32.gmra.mrb[8].mxu0 %vm62_vm1, %v42_v24 }
  0x19   :  { %181 = vmatprep.mubr.f32.mxu0 %v4986_v3 }
  0x1c   :  { %3887 = vmatmul.mubr.msk.f32.gmra.mrb[10].mxu0 %vm62_vm1, %v43_v25 }
  0x1d   :  { %187 = vmatprep.mubr.f32.mxu0 %v4986_v3 }
  0x20   :  { %3888 = vmatmul.mubr.msk.f32.gmra.mrb[12].mxu0 %vm62_vm1, %v44_v26 }
  0x21   :  { %193 = vmatprep.mubr.f32.mxu0 %v4986_v3 }
  0x24   :  { %3889 = vmatmul.mubr.msk.f32.gmra.mrb[14].mxu0 %vm62_vm1, %v45_v27 }
  0x25   :  { %4137 = vmatprep.mubr.msk.f32.mxu0 %vm4988_vm0, %v4986_v3 }
  0x28   :  { %4138 = vmatmul.mubr.f32.vlgmr.msra.gmra.mrb[16].mxu0 %v4986_v3 }
  0x29   :  { %4530 = vmatpush3.bf16.msra.mxu0 %v5077_v11  ;;  %4181 = vmatprep.mubr.msk.f32.mxu0 %vm4988_vm0, %v4986_v3 }
  0x2a   :  { %4531 = vmatprep.subr.bf16.mxu0 %v4987_v4 }
  0x2d   :  { %4533 = vmatpush3.bf16.msra.mxu0 %v5106_v20 }
  0x2e   :  { %4540 = vmatprep.subr.bf16.mxu0 %v4987_v4 }
  0xdb   :  { %v153_v34 = vpop.f32.mrb[0].mxu0 }
  0xdc   :  { %v155_v35 = vpop.f32.mrb[1].mxu0  ;;  %v154_v6 = vadd.f32 %v153_v34, %v55_v37 }
  0xdd   :  { %v5173_v36 = vadd.f32 %v155_v35, %v59_v32 }
  0xdf   :  { %v159_v38 = vpop.f32.mrb[2].mxu0 }
  0xe0   :  { %v5177_v39 = vadd.f32 %v159_v38, %v55_v37  ;;  %v161_v40 = vpop.f32.mrb[3].mxu0 }
  0xe1   :  { %v5179_v41 = vadd.f32 %v161_v40, %v59_v32  ;;  %v373_v45 = vpop.f32.mrb[0].mxu1 }
  0xe2   :  { %v4150_v47 = vpop.f32.mrb[1].mxu1 }
  0xe3   :  { %v165_v42 = vpop.f32.mrb[4].mxu0 }
  0xe4   :  { %v5181_v43 = vadd.f32 %v165_v42, %v55_v37  ;;  %v167_v44 = vpop.f32.mrb[5].mxu0 }
  0xe5   :  { %v5183_v46 = vadd.f32 %v167_v44, %v59_v32 }
  0xe7   :  { %v171_v48 = vpop.f32.mrb[6].mxu0 }
  0xe8   :  { %v5185_v49 = vadd.f32 %v171_v48, %v55_v37  ;;  %v173_v50 = vpop.f32.mrb[7].mxu0 }
  0xe9   :  { %v5187_v51 = vadd.f32 %v173_v50, %v59_v32 }
  0xeb   :  { %v177_v52 = vpop.f32.mrb[8].mxu0 }
  0xec   :  { %v5189_v53 = vadd.f32 %v177_v52, %v55_v37  ;;  %v179_v54 = vpop.f32.mrb[9].mxu0 }
  0xed   :  { %v5191_v55 = vadd.f32 %v179_v54, %v59_v32 }
  0xef   :  { %v183_v56 = vpop.f32.mrb[10].mxu0 }
  0xf0   :  { %v5193_v57 = vadd.f32 %v183_v56, %v55_v37  ;;  %v185_v58 = vpop.f32.mrb[11].mxu0 }
  0xf1   :  { %v5195_v59 = vadd.f32 %v185_v58, %v59_v32 }
  0xf3   :  { %v189_v60 = vpop.f32.mrb[12].mxu0 }
  0xf4   :  { %v5197_v61 = vadd.f32 %v189_v60, %v55_v37  ;;  %v191_v62 = vpop.f32.mrb[13].mxu0 }
  0xf5   :  { %v5199_v63 = vadd.f32 %v191_v62, %v59_v32 }
  0xf7   :  { %v195_v0 = vpop.f32.mrb[14].mxu0 }
  0xf8   :  { %v5201_v1 = vadd.f32 %v195_v0, %v55_v37  ;;  %v197_v2 = vpop.f32.mrb[15].mxu0 }
  0xf9   :  { %v198_v5 = vadd.f32 %v197_v2, %v59_v32 }
  0xfb   :  { %v377_v7 = vadd.f32 %v373_v45, %v198_v5  ;;  %v298_v8 = vpop.f32.mrb[16].mxu0 }
  0xfc   :  { %v302_v9 = vadd.f32 %v298_v8, %v154_v6  ;;  %v4139_v10 = vpop.f32.mrb[17].mxu0 }
  0xfd   :  { %v3891_v15 = vmul.f32 -1.442695, %v377_v7 }
  0xfe   :  { %4730 = vtanh.f32 %v302_v9  ;;  %v3890_v14 = vmul.f32 -1.442695, %v302_v9 }
  0xff   :  { %4732 = vtanh.f32 %v377_v7 }
 0x100   :  { %4734 = vpow2.f32 %v3890_v14 }
 0x101   :  { %4736 = vpow2.f32 %v3891_v15 }
 0x108   :  { %v4731_v12 = vpop.eup %4730 }
 0x109   :  { %394 = vrot.lane.b32.xlu0 %v4731_v12, %s4989_s4  ;;  %v4733_v13 = vpop.eup %4732 }
 0x10a   :  { %v4735_v17 = vpop.eup %4734 }
 0x10b   :  { %v381_v18 = vadd.f32 1.0, %v4735_v17  ;;  %v4737_v19 = vpop.eup %4736 }
 0x10c   :  { %v387_v22 = vadd.f32 1.0, %v4737_v19 }
 0x10d   :  { %405 = vrot.lane.b32.xlu0 %v4733_v13, %s4989_s4  ;;  %4738 = vrcp.f32 %v381_v18 }
 0x10e   :  { %4740 = vrcp.f32 %v387_v22 }
 0x117   :  { %v4739_v23 = vpop.eup %4738 }
 0x118   :  { %v4741_v26 = vpop.eup %4740  ;;  %v392_v31 = vmul.f32 0.0, %v4739_v23 }
 0x119   :  { %v403_v35 = vmul.f32 0.0, %v4741_v26 }
 0x17b   :  { %v395_v24 = vpop.permute.xlu0 %394 }
 0x17c   :  { %v397_v25 = vmul.f32 %v4739_v23, %v395_v24 }
 0x17e   :  { %399 = vrot.lane.b32.xlu1 %v397_v25, %s4989_s4 }
 0x17f   :  { %v406_v27 = vpop.permute.xlu0 %405 }
 0x180   :  { %v408_v28 = vmul.f32 %v4741_v26, %v406_v27 }
 0x182   :  { %410 = vrot.lane.b32.xlu1 %v408_v28, %s4989_s4 }
 0x1f0   :  { %v400_v32 = vpop.permute.xlu1 %399 }
 0x1f1   :  { %v5207_v34 = vadd.f32 %v400_v32, %v392_v31 }
 0x1f3   :  { %4742 = vtanh.f32 %v5207_v34 }
 0x1f4   :  { %v411_v37 = vpop.permute.xlu1 %410 }
 0x1f5   :  { %v413_v38 = vadd.f32 %v411_v37, %v403_v35 }
 0x1f7   :  { %4744 = vtanh.f32 %v413_v38 }
 0x1fd   :  { %v4743_v40 = vpop.eup %4742 }
 0x1fe   :  { %416 = vrot.lane.b32.xlu0 %v4743_v40, %s4989_s4 }
 0x201   :  { %v4745_v42 = vpop.eup %4744 }
 0x202   :  { %422 = vrot.lane.b32.xlu1 %v4745_v42, %s4989_s4 }
 0x270   :  { %v417_v44 = vpop.permute.xlu0 %416 }
 0x271   :  { %v419_v45 = vmul.f32 %v4739_v23, %v417_v44 }
 0x273   :  { %427 = vrot.lane.b32.xlu0 %v419_v45, %s4990_s16 }
 0x274   :  { %v423_v47 = vpop.permute.xlu1 %422 }
 0x275   :  { %v5213_v48 = vmul.f32 %v4741_v26, %v423_v47 }
 0x277   :  { %519 = vrot.lane.b32.xlu1 %v5213_v48, %s4990_s16 }
 0x2e5   :  { %v428_v50 = vpop.permute.xlu0 %427 }
 0x2e6   :  { %430 = vst.msk [vmem:[#allocation2] sm:$0xff] %vm228_vm2, %v428_v50  ;;  %4160 = vmatmul.mubr.msk.f32.vlgmr.msra.gmra.mrb[2].mxu1 %vm228_vm2, %v428_v50 }
 0x2e7   :  { %4524 = vmatpush3.bf16.msra.mxu1 %v5092_v16  ;;  %4170 = vmatprep.mubr.msk.f32.mxu1 %vm4988_vm0, %v4986_v3 }
 0x2e8   :  { %4525 = vmatprep.subr.bf16.mxu1 %v4987_v4 }
 0x2e9   :  { %v520_v52 = vpop.permute.xlu1 %519 }
 0x2eb   :  { %4527 = vmatpush3.bf16.msra.mxu1 %v5110_v21 }
 0x2ec   :  { %4534 = vmatprep.subr.bf16.mxu1 %v4987_v4 }
 0x2ee   :  { %4171 = vmatmul.mubr.msk.f32.vlgmr.msra.gmra.mrb[4].mxu1 %vm228_vm2, %v520_v52 }
 0x2ef   :  { %4536 = vmatpush3.bf16.msra.mxu1 %v5092_v16  ;;  %4192 = vmatprep.mubr.msk.f32.mxu1 %vm4988_vm0, %v4986_v3 }
 0x2f0   :  { %4537 = vmatprep.subr.bf16.mxu1 %v4987_v4 }
 0x2f3   :  { %4539 = vmatpush3.bf16.msra.mxu1 %v5110_v21 }
 0x2f4   :  { %4546 = vmatprep.subr.bf16.mxu1 %v4987_v4 }
 0x3b9   :  { %v510_v54 = vpop.f32.mrb[2].mxu1 }
 0x3ba   :  { %v514_v56 = vadd.f32 %v510_v54, %v5177_v39  ;;  %v4161_v58 = vpop.f32.mrb[3].mxu1 }
 0x3bc   :  { %v3894_v15 = vmul.f32 -1.442695, %v514_v56 }
 0x3c1   :  { %v589_v60 = vpop.f32.mrb[4].mxu1 }
 0x3c2   :  { %v593_v62 = vadd.f32 %v589_v60, %v5199_v63  ;;  %v4172_v0 = vpop.f32.mrb[5].mxu1 }
 0x3c4   :  { %4746 = vtanh.f32 %v593_v62  ;;  %v3895_v5 = vmul.f32 -1.442695, %v593_v62 }
 0x3c6   :  { %4748 = vpow2.f32 %v3895_v5 }
 0x3ce   :  { %v4747_v2 = vpop.eup %4746 }
 0x3cf   :  { %621 = vrot.lane.b32.xlu0 %v4747_v2, %s4989_s4 }
 0x3d0   :  { %v4749_v6 = vpop.eup %4748 }
 0x3d1   :  { %v603_v7 = vadd.f32 1.0, %v4749_v6 }
 0x3d3   :  { %4750 = vrcp.f32 %v603_v7 }
 0x3dd   :  { %v4751_v8 = vpop.eup %4750 }
 0x3de   :  { %v619_v39 = vmul.f32 %v4751_v8, %v413_v38 }
 0x441   :  { %v622_v9 = vpop.permute.xlu0 %621 }
 0x442   :  { %v624_v10 = vmul.f32 %v4751_v8, %v622_v9 }
 0x444   :  { %626 = vrot.lane.b32.xlu1 %v624_v10, %s4989_s4 }
 0x4b6   :  { %v627_v12 = vpop.permute.xlu1 %626 }
 0x4b7   :  { %v629_v13 = vadd.f32 %v627_v12, %v619_v39 }
 0x4b9   :  { %4752 = vtanh.f32 %v629_v13 }
 0x4ba   :  { %4754 = vtanh.f32 %v514_v56 }
 0x4bb   :  { %4756 = vpow2.f32 %v3894_v15 }
 0x4c3   :  { %v4753_v63 = vpop.eup %4752 }
 0x4c4   :  { %638 = vrot.lane.b32.xlu0 %v4753_v63, %s4989_s4  ;;  %v4755_v14 = vpop.eup %4754 }
 0x4c5   :  { %v4757_v17 = vpop.eup %4756 }
 0x4c6   :  { %v597_v18 = vadd.f32 1.0, %v4757_v17 }
 0x4c8   :  { %610 = vrot.lane.b32.xlu0 %v4755_v14, %s4989_s4  ;;  %4758 = vrcp.f32 %v597_v18 }
 0x4d2   :  { %v4759_v23 = vpop.eup %4758 }
 0x4d3   :  { %v608_v27 = vmul.f32 %v4759_v23, %v5207_v34 }
 0x536   :  { %v639_v19 = vpop.permute.xlu0 %638 }
 0x537   :  { %v5238_v22 = vmul.f32 %v4751_v8, %v639_v19 }
 0x539   :  { %735 = vrot.lane.b32.xlu1 %v5238_v22, %s4990_s16 }
 0x53a   :  { %v611_v24 = vpop.permute.xlu0 %610 }
 0x53b   :  { %v613_v25 = vmul.f32 %v4759_v23, %v611_v24 }
 0x53d   :  { %615 = vrot.lane.b32.xlu1 %v613_v25, %s4989_s4 }
 0x5ab   :  { %v736_v26 = vpop.permute.xlu1 %735 }
 0x5ac   :  { %4193 = vmatmul.mubr.msk.f32.vlgmr.msra.gmra.mrb[6].mxu1 %vm228_vm2, %v736_v26 }
 0x5ad   :  { %4548 = vmatpush3.bf16.msra.mxu1 %v5092_v16  ;;  %4214 = vmatprep.mubr.msk.f32.mxu1 %vm4988_vm0, %v4986_v3 }
 0x5ae   :  { %4549 = vmatprep.subr.bf16.mxu1 %v4987_v4 }
 0x5af   :  { %v616_v28 = vpop.permute.xlu1 %615 }
 0x5b0   :  { %v618_v31 = vadd.f32 %v616_v28, %v608_v27 }
 0x5b1   :  { %4551 = vmatpush3.bf16.msra.mxu1 %v5110_v21 }
 0x5b2   :  { %4760 = vtanh.f32 %v618_v31  ;;  %4558 = vmatprep.subr.bf16.mxu1 %v4987_v4 }
 0x5bc   :  { %v4761_v32 = vpop.eup %4760 }
 0x5bd   :  { %632 = vrot.lane.b32.xlu0 %v4761_v32, %s4989_s4 }
 0x62f   :  { %v633_v35 = vpop.permute.xlu0 %632 }
 0x630   :  { %v635_v37 = vmul.f32 %v4759_v23, %v633_v35 }
 0x632   :  { %643 = vrot.lane.b32.xlu1 %v635_v37, %s4990_s16 }
 0x67f   :  { %v805_v38 = vpop.f32.mrb[6].mxu1 }
 0x680   :  { %v809_v40 = vadd.f32 %v805_v38, %v5195_v59  ;;  %v4194_v34 = vpop.f32.mrb[7].mxu1 }
 0x682   :  { %4762 = vtanh.f32 %v809_v40  ;;  %v3899_v59 = vmul.f32 -1.442695, %v809_v40 }
 0x684   :  { %4764 = vpow2.f32 %v3899_v59 }
 0x68c   :  { %v4763_v42 = vpop.eup %4762 }
 0x68d   :  { %837 = vrot.lane.b32.xlu0 %v4763_v42, %s4989_s4 }
 0x68e   :  { %v4765_v45 = vpop.eup %4764 }
 0x68f   :  { %v819_v47 = vadd.f32 1.0, %v4765_v45 }
 0x691   :  { %4766 = vrcp.f32 %v819_v47 }
 0x69b   :  { %v4767_v50 = vpop.eup %4766 }
 0x69c   :  { %v835_v56 = vmul.f32 %v4767_v50, %v629_v13 }
 0x6a4   :  { %v644_v44 = vpop.permute.xlu1 %643 }
 0x6a5   :  { %647 = vst.msk [vmem:[#allocation2 + $0x8] sm:$0xff] %vm228_vm2, %v644_v44  ;;  %4182 = vmatmul.mubr.msk.f32.vlgmr.msra.gmra.mrb[18].mxu0 %vm228_vm2, %v644_v44 }
 0x6a6   :  { %4542 = vmatpush3.bf16.msra.mxu0 %v5077_v11  ;;  %4203 = vmatprep.mubr.msk.f32.mxu0 %vm4988_vm0, %v4986_v3 }
 0x6a7   :  { %4543 = vmatprep.subr.bf16.mxu0 %v4987_v4 }
 0x6aa   :  { %4545 = vmatpush3.bf16.msra.mxu0 %v5106_v20 }
 0x6ab   :  { %4552 = vmatprep.subr.bf16.mxu0 %v4987_v4 }
 0x6ff   :  { %v838_v52 = vpop.permute.xlu0 %837 }
 0x700   :  { %v840_v54 = vmul.f32 %v4767_v50, %v838_v52 }
 0x702   :  { %842 = vrot.lane.b32.xlu1 %v840_v54, %s4989_s4 }
 0x774   :  { %v843_v58 = vpop.permute.xlu1 %842 }
 0x775   :  { %v845_v60 = vadd.f32 %v843_v58, %v835_v56 }
 0x777   :  { %4768 = vtanh.f32 %v845_v60 }
 0x778   :  { %v726_v62 = vpop.f32.mrb[18].mxu0 }
 0x779   :  { %v730_v0 = vadd.f32 %v726_v62, %v5181_v43  ;;  %v4183_v2 = vpop.f32.mrb[19].mxu0 }
 0x77b   :  { %4770 = vtanh.f32 %v730_v0  ;;  %v3898_v7 = vmul.f32 -1.442695, %v730_v0 }
 0x77d   :  { %4772 = vpow2.f32 %v3898_v7 }
 0x781   :  { %v4769_v5 = vpop.eup %4768 }
 0x782   :  { %854 = vrot.lane.b32.xlu0 %v4769_v5, %s4989_s4 }
 0x785   :  { %v4771_v6 = vpop.eup %4770 }
 0x786   :  { %826 = vrot.lane.b32.xlu0 %v4771_v6, %s4989_s4 }
 0x787   :  { %v4773_v8 = vpop.eup %4772 }
 0x788   :  { %v813_v9 = vadd.f32 1.0, %v4773_v8 }
 0x78a   :  { %4774 = vrcp.f32 %v813_v9 }
 0x794   :  { %v4775_v43 = vpop.eup %4774 }
 0x795   :  { %v824_v14 = vmul.f32 %v4775_v43, %v618_v31 }
 0x7f4   :  { %v855_v10 = vpop.permute.xlu0 %854 }
 0x7f5   :  { %v5267_v39 = vmul.f32 %v4767_v50, %v855_v10 }
 0x7f7   :  { %951 = vrot.lane.b32.xlu1 %v5267_v39, %s4990_s16 }
 0x7f8   :  { %v827_v12 = vpop.permute.xlu0 %826 }
 0x7f9   :  { %v829_v13 = vmul.f32 %v4775_v43, %v827_v12 }
 0x7fb   :  { %831 = vrot.lane.b32.xlu1 %v829_v13, %s4989_s4 }
 0x869   :  { %v952_v63 = vpop.permute.xlu1 %951 }
 0x86a   :  { %4215 = vmatmul.mubr.msk.f32.vlgmr.msra.gmra.mrb[8].mxu1 %vm228_vm2, %v952_v63 }
 0x86b   :  { %4560 = vmatpush3.bf16.msra.mxu1 %v5092_v16  ;;  %4236 = vmatprep.mubr.msk.f32.mxu1 %vm4988_vm0, %v4986_v3 }
 0x86c   :  { %4561 = vmatprep.subr.bf16.mxu1 %v4987_v4 }
 0x86d   :  { %v832_v15 = vpop.permute.xlu1 %831 }
 0x86e   :  { %v834_v17 = vadd.f32 %v832_v15, %v824_v14 }
 0x86f   :  { %4563 = vmatpush3.bf16.msra.mxu1 %v5110_v21 }
 0x870   :  { %4776 = vtanh.f32 %v834_v17  ;;  %4570 = vmatprep.subr.bf16.mxu1 %v4987_v4 }
 0x87a   :  { %v4777_v18 = vpop.eup %4776 }
 0x87b   :  { %848 = vrot.lane.b32.xlu0 %v4777_v18, %s4989_s4 }
 0x8ed   :  { %v849_v19 = vpop.permute.xlu0 %848 }
 0x8ee   :  { %v851_v23 = vmul.f32 %v4775_v43, %v849_v19 }
 0x8f0   :  { %859 = vrot.lane.b32.xlu1 %v851_v23, %s4990_s16 }
 0x93d   :  { %v1021_v24 = vpop.f32.mrb[8].mxu1 }
 0x93e   :  { %v1025_v25 = vadd.f32 %v1021_v24, %v5191_v55  ;;  %v4216_v26 = vpop.f32.mrb[9].mxu1 }
 0x940   :  { %4778 = vtanh.f32 %v1025_v25  ;;  %v3903_v55 = vmul.f32 -1.442695, %v1025_v25 }
 0x942   :  { %4780 = vpow2.f32 %v3903_v55 }
 0x94a   :  { %v4779_v27 = vpop.eup %4778 }
 0x94b   :  { %1053 = vrot.lane.b32.xlu0 %v4779_v27, %s4989_s4 }
 0x94c   :  { %v4781_v31 = vpop.eup %4780 }
 0x94d   :  { %v1035_v32 = vadd.f32 1.0, %v4781_v31 }
 0x94f   :  { %4782 = vrcp.f32 %v1035_v32 }
 0x959   :  { %v4783_v35 = vpop.eup %4782 }
 0x95a   :  { %v1051_v40 = vmul.f32 %v4783_v35, %v845_v60 }
 0x962   :  { %v860_v28 = vpop.permute.xlu1 %859 }
 0x963   :  { %863 = vst.msk [vmem:[#allocation2 + $0x10] sm:$0xff] %vm228_vm2, %v860_v28  ;;  %4204 = vmatmul.mubr.msk.f32.vlgmr.msra.gmra.mrb[20].mxu0 %vm228_vm2, %v860_v28 }
 0x964   :  { %4554 = vmatpush3.bf16.msra.mxu0 %v5077_v11  ;;  %4225 = vmatprep.mubr.msk.f32.mxu0 %vm4988_vm0, %v4986_v3 }
 0x965   :  { %4555 = vmatprep.subr.bf16.mxu0 %v4987_v4 }
 0x968   :  { %4557 = vmatpush3.bf16.msra.mxu0 %v5106_v20 }
 0x969   :  { %4564 = vmatprep.subr.bf16.mxu0 %v4987_v4 }
 0x9bd   :  { %v1054_v37 = vpop.permute.xlu0 %1053 }
 0x9be   :  { %v1056_v38 = vmul.f32 %v4783_v35, %v1054_v37 }
 0x9c0   :  { %1058 = vrot.lane.b32.xlu1 %v1056_v38, %s4989_s4 }
 0xa32   :  { %v1059_v34 = vpop.permute.xlu1 %1058 }
 0xa33   :  { %v1061_v42 = vadd.f32 %v1059_v34, %v1051_v40 }
 0xa35   :  { %4784 = vtanh.f32 %v1061_v42 }
 0xa36   :  { %v942_v44 = vpop.f32.mrb[20].mxu0 }
 0xa37   :  { %v946_v59 = vadd.f32 %v942_v44, %v5185_v49  ;;  %v4205_v45 = vpop.f32.mrb[21].mxu0 }
 0xa39   :  { %4786 = vtanh.f32 %v946_v59  ;;  %v3902_v52 = vmul.f32 -1.442695, %v946_v59 }
 0xa3b   :  { %4788 = vpow2.f32 %v3902_v52 }
 0xa3f   :  { %v4785_v47 = vpop.eup %4784 }
 0xa40   :  { %1070 = vrot.lane.b32.xlu0 %v4785_v47, %s4989_s4 }
 0xa43   :  { %v4787_v50 = vpop.eup %4786 }
 0xa44   :  { %1042 = vrot.lane.b32.xlu0 %v4787_v50, %s4989_s4 }
 0xa45   :  { %v4789_v54 = vpop.eup %4788 }
 0xa46   :  { %v1029_v56 = vadd.f32 1.0, %v4789_v54 }
 0xa48   :  { %4790 = vrcp.f32 %v1029_v56 }
 0xa52   :  { %v4791_v49 = vpop.eup %4790 }
 0xa53   :  { %v1040_v5 = vmul.f32 %v4791_v49, %v834_v17 }
 0xab2   :  { %v1071_v58 = vpop.permute.xlu0 %1070 }
 0xab3   :  { %v5295_v60 = vmul.f32 %v4783_v35, %v1071_v58 }
 0xab5   :  { %1161 = vrot.lane.b32.xlu1 %v5295_v60, %s4990_s16 }
 0xab6   :  { %v1043_v62 = vpop.permute.xlu0 %1042 }
 0xab7   :  { %v1045_v0 = vmul.f32 %v4791_v49, %v1043_v62 }
 0xab9   :  { %1047 = vrot.lane.b32.xlu1 %v1045_v0, %s4989_s4 }
 0xb27   :  { %v1162_v2 = vpop.permute.xlu1 %1161 }
 0xb28   :  { %4237 = vmatmul.mubr.msk.f32.vlgmr.msra.gmra.mrb[10].mxu1 %vm228_vm2, %v1162_v2 }
 0xb29   :  { %4572 = vmatpush3.bf16.msra.mxu1 %v5092_v16  ;;  %4258 = vmatprep.mubr.msk.f32.mxu1 %vm4988_vm0, %v4986_v3 }
 0xb2a   :  { %4573 = vmatprep.subr.bf16.mxu1 %v4987_v4 }
 0xb2b   :  { %v1048_v6 = vpop.permute.xlu1 %1047 }
 0xb2c   :  { %v1050_v7 = vadd.f32 %v1048_v6, %v1040_v5 }
 0xb2d   :  { %4575 = vmatpush3.bf16.msra.mxu1 %v5110_v21 }
 0xb2e   :  { %4792 = vtanh.f32 %v1050_v7  ;;  %4582 = vmatprep.subr.bf16.mxu1 %v4987_v4 }
 0xb38   :  { %v4793_v8 = vpop.eup %4792 }
 0xb39   :  { %1064 = vrot.lane.b32.xlu0 %v4793_v8, %s4989_s4 }
 0xbab   :  { %v1065_v9 = vpop.permute.xlu0 %1064 }
 0xbac   :  { %v1067_v10 = vmul.f32 %v4791_v49, %v1065_v9 }
 0xbae   :  { %1075 = vrot.lane.b32.xlu1 %v1067_v10, %s4990_s16 }
 0xbfb   :  { %v1231_v43 = vpop.f32.mrb[10].mxu1 }
 0xbfc   :  { %v1235_v12 = vadd.f32 %v1231_v43, %v5187_v51  ;;  %v4238_v13 = vpop.f32.mrb[11].mxu1 }
 0xbfe   :  { %4794 = vtanh.f32 %v1235_v12  ;;  %v3907_v51 = vmul.f32 -1.442695, %v1235_v12 }
 0xc00   :  { %4796 = vpow2.f32 %v3907_v51 }
 0xc08   :  { %v4795_v63 = vpop.eup %4794 }
 0xc09   :  { %1263 = vrot.lane.b32.xlu0 %v4795_v63, %s4989_s4 }
 0xc0a   :  { %v4797_v15 = vpop.eup %4796 }
 0xc0b   :  { %v1245_v17 = vadd.f32 1.0, %v4797_v15 }
 0xc0d   :  { %4798 = vrcp.f32 %v1245_v17 }
 0xc17   :  { %v4799_v18 = vpop.eup %4798 }
 0xc18   :  { %v1261_v24 = vmul.f32 %v4799_v18, %v1061_v42 }
 0xc20   :  { %v1076_v14 = vpop.permute.xlu1 %1075 }
 0xc21   :  { %1079 = vst.msk [vmem:[#allocation2 + $0x18] sm:$0xff] %vm228_vm2, %v1076_v14  ;;  %4226 = vmatmul.mubr.msk.f32.vlgmr.msra.gmra.mrb[22].mxu0 %vm228_vm2, %v1076_v14 }
 0xc22   :  { %4566 = vmatpush3.bf16.msra.mxu0 %v5077_v11  ;;  %4247 = vmatprep.mubr.msk.f32.mxu0 %vm4988_vm0, %v4986_v3 }
 0xc23   :  { %4567 = vmatprep.subr.bf16.mxu0 %v4987_v4 }
 0xc26   :  { %4569 = vmatpush3.bf16.msra.mxu0 %v5106_v20 }
 0xc27   :  { %4576 = vmatprep.subr.bf16.mxu0 %v4987_v4 }
 0xc7b   :  { %v1264_v19 = vpop.permute.xlu0 %1263 }
 0xc7c   :  { %v1266_v23 = vmul.f32 %v4799_v18, %v1264_v19 }
 0xc7e   :  { %1268 = vrot.lane.b32.xlu1 %v1266_v23, %s4989_s4 }
 0xcf0   :  { %v1269_v25 = vpop.permute.xlu1 %1268 }
 0xcf1   :  { %v1271_v26 = vadd.f32 %v1269_v25, %v1261_v24 }
 0xcf3   :  { %4800 = vtanh.f32 %v1271_v26 }
 0xcf4   :  { %v1155_v27 = vpop.f32.mrb[22].mxu0 }
 0xcf5   :  { %v1159_v28 = vadd.f32 %v1155_v27, %v5189_v53  ;;  %v4227_v55 = vpop.f32.mrb[23].mxu0 }
 0xcf7   :  { %4802 = vtanh.f32 %v1159_v28  ;;  %v3906_v35 = vmul.f32 -1.442695, %v1159_v28 }
 0xcf9   :  { %4804 = vpow2.f32 %v3906_v35 }
 0xcfd   :  { %v4801_v31 = vpop.eup %4800 }
 0xcfe   :  { %1280 = vrot.lane.b32.xlu0 %v4801_v31, %s4989_s4 }
 0xd01   :  { %v4803_v32 = vpop.eup %4802 }
 0xd02   :  { %1252 = vrot.lane.b32.xlu0 %v4803_v32, %s4989_s4 }
 0xd03   :  { %v4805_v37 = vpop.eup %4804 }
 0xd04   :  { %v1239_v38 = vadd.f32 1.0, %v4805_v37 }
 0xd06   :  { %4806 = vrcp.f32 %v1239_v38 }
 0xd10   :  { %v4807_v53 = vpop.eup %4806 }
 0xd11   :  { %v1250_v45 = vmul.f32 %v4807_v53, %v1050_v7 }
 0xd70   :  { %v1281_v40 = vpop.permute.xlu0 %1280 }
 0xd71   :  { %v5323_v34 = vmul.f32 %v4799_v18, %v1281_v40 }
 0xd73   :  { %1369 = vrot.lane.b32.xlu1 %v5323_v34, %s4990_s16 }
 0xd74   :  { %v1253_v42 = vpop.permute.xlu0 %1252 }
 0xd75   :  { %v1255_v44 = vmul.f32 %v4807_v53, %v1253_v42 }
 0xd77   :  { %1257 = vrot.lane.b32.xlu1 %v1255_v44, %s4989_s4 }
 0xde5   :  { %v1370_v59 = vpop.permute.xlu1 %1369 }
 0xde6   :  { %4259 = vmatmul.mubr.msk.f32.vlgmr.msra.gmra.mrb[12].mxu1 %vm228_vm2, %v1370_v59 }
 0xde7   :  { %4584 = vmatpush3.bf16.msra.mxu1 %v5092_v16  ;;  %4280 = vmatprep.mubr.msk.f32.mxu1 %vm4988_vm0, %v4986_v3 }
 0xde8   :  { %4585 = vmatprep.subr.bf16.mxu1 %v4987_v4 }
 0xde9   :  { %v1258_v47 = vpop.permute.xlu1 %1257 }
 0xdea   :  { %v1260_v50 = vadd.f32 %v1258_v47, %v1250_v45 }
 0xdeb   :  { %4587 = vmatpush3.bf16.msra.mxu1 %v5110_v21 }
 0xdec   :  { %4808 = vtanh.f32 %v1260_v50  ;;  %4594 = vmatprep.subr.bf16.mxu1 %v4987_v4 }
 0xdf6   :  { %v4809_v52 = vpop.eup %4808 }
 0xdf7   :  { %1274 = vrot.lane.b32.xlu0 %v4809_v52, %s4989_s4 }
 0xe69   :  { %v1275_v54 = vpop.permute.xlu0 %1274 }
 0xe6a   :  { %v1277_v56 = vmul.f32 %v4807_v53, %v1275_v54 }
 0xe6c   :  { %1285 = vrot.lane.b32.xlu1 %v1277_v56, %s4990_s16 }
 0xeb9   :  { %v1439_v58 = vpop.f32.mrb[12].mxu1 }
 0xeba   :  { %v1443_v49 = vadd.f32 %v1439_v58, %v5183_v46  ;;  %v4260_v62 = vpop.f32.mrb[13].mxu1 }
 0xebc   :  { %4810 = vtanh.f32 %v1443_v49  ;;  %v3911_v46 = vmul.f32 -1.442695, %v1443_v49 }
 0xebe   :  { %4812 = vpow2.f32 %v3911_v46 }
 0xec6   :  { %v4811_v0 = vpop.eup %4810 }
 0xec7   :  { %1471 = vrot.lane.b32.xlu0 %v4811_v0, %s4989_s4 }
 0xec8   :  { %v4813_v5 = vpop.eup %4812 }
 0xec9   :  { %v1453_v6 = vadd.f32 1.0, %v4813_v5 }
 0xecb   :  { %4814 = vrcp.f32 %v1453_v6 }
 0xed5   :  { %v4815_v7 = vpop.eup %4814 }
 0xed6   :  { %v1469_v10 = vmul.f32 %v4815_v7, %v1271_v26 }
 0xede   :  { %v5339_v2 = vpop.permute.xlu1 %1285 }
 0xedf   :  { %4248 = vmatmul.mubr.msk.f32.vlgmr.msra.gmra.mrb[24].mxu0 %vm228_vm2, %v5339_v2 }
 0xee0   :  { %4578 = vmatpush3.bf16.msra.mxu0 %v5077_v11  ;;  %4269 = vmatprep.mubr.msk.f32.mxu0 %vm4988_vm0, %v4986_v3 }
 0xee1   :  { %4579 = vmatprep.subr.bf16.mxu0 %v4987_v4 }
 0xee4   :  { %4581 = vmatpush3.bf16.msra.mxu0 %v5106_v20 }
 0xee5   :  { %4588 = vmatprep.subr.bf16.mxu0 %v4987_v4 }
 0xf39   :  { %v1472_v8 = vpop.permute.xlu0 %1471 }
 0xf3a   :  { %v1474_v9 = vmul.f32 %v4815_v7, %v1472_v8 }
 0xf3c   :  { %1476 = vrot.lane.b32.xlu1 %v1474_v9, %s4989_s4 }
 0xfae   :  { %v1477_v43 = vpop.permute.xlu1 %1476 }
 0xfaf   :  { %v1479_v12 = vadd.f32 %v1477_v43, %v1469_v10 }
 0xfb1   :  { %4816 = vtanh.f32 %v1479_v12 }
 0xfb2   :  { %v1363_v13 = vpop.f32.mrb[24].mxu0 }
 0xfb3   :  { %v1367_v63 = vadd.f32 %v1363_v13, %v5193_v57  ;;  %v4249_v14 = vpop.f32.mrb[25].mxu0 }
 0xfb5   :  { %4818 = vtanh.f32 %v1367_v63  ;;  %v3910_v17 = vmul.f32 -1.442695, %v1367_v63 }
 0xfb7   :  { %4820 = vpow2.f32 %v3910_v17 }
 0xfbb   :  { %v4817_v51 = vpop.eup %4816 }
 0xfbc   :  { %1488 = vrot.lane.b32.xlu0 %v4817_v51, %s4989_s4 }
 0xfbf   :  { %v4819_v15 = vpop.eup %4818 }
 0xfc0   :  { %1460 = vrot.lane.b32.xlu0 %v4819_v15, %s4989_s4 }
 0xfc1   :  { %v4821_v18 = vpop.eup %4820 }
 0xfc2   :  { %v1447_v19 = vadd.f32 1.0, %v4821_v18 }
 0xfc4   :  { %4822 = vrcp.f32 %v1447_v19 }
 0xfce   :  { %v4823_v57 = vpop.eup %4822 }
 0xfcf   :  { %v1458_v28 = vmul.f32 %v4823_v57, %v1260_v50 }
0x102e   :  { %v1489_v23 = vpop.permute.xlu0 %1488 }
0x102f   :  { %v5353_v24 = vmul.f32 %v4815_v7, %v1489_v23 }
0x1031   :  { %1577 = vrot.lane.b32.xlu1 %v5353_v24, %s4990_s16 }
0x1032   :  { %v1461_v25 = vpop.permute.xlu0 %1460 }
0x1033   :  { %v1463_v26 = vmul.f32 %v4823_v57, %v1461_v25 }
0x1035   :  { %1465 = vrot.lane.b32.xlu1 %v1463_v26, %s4989_s4 }
0x10a3   :  { %v1578_v27 = vpop.permute.xlu1 %1577 }
0x10a4   :  { %4281 = vmatmul.mubr.msk.f32.vlgmr.msra.gmra.mrb[14].mxu1 %vm228_vm2, %v1578_v27 }
0x10a5   :  { %4596 = vmatpush3.bf16.msra.mxu1 %v5092_v16  ;;  %4302 = vmatprep.mubr.msk.f32.mxu1 %vm4988_vm0, %v4986_v3 }
0x10a6   :  { %4597 = vmatprep.subr.bf16.mxu1 %v4987_v4 }
0x10a7   :  { %v1466_v55 = vpop.permute.xlu1 %1465 }
0x10a8   :  { %v1468_v31 = vadd.f32 %v1466_v55, %v1458_v28 }
0x10a9   :  { %4599 = vmatpush3.bf16.msra.mxu1 %v5110_v21 }
0x10aa   :  { %4824 = vtanh.f32 %v1468_v31  ;;  %4616 = vmatprep.subr.bf16.mxu1 %v4987_v4 }
0x10b4   :  { %v4825_v32 = vpop.eup %4824 }
0x10b5   :  { %1482 = vrot.lane.b32.xlu0 %v4825_v32, %s4989_s4 }
0x1127   :  { %v1483_v35 = vpop.permute.xlu0 %1482 }
0x1128   :  { %v1485_v37 = vmul.f32 %v4823_v57, %v1483_v35 }
0x112a   :  { %1493 = vrot.lane.b32.xlu1 %v1485_v37, %s4990_s16 }
0x1177   :  { %v1647_v16 = vpop.f32.mrb[14].mxu1 }
0x1178   :  { %v1651_v38 = vadd.f32 %v1647_v16, %v5179_v41  ;;  %v4282_v40 = vpop.f32.mrb[15].mxu1 }
0x1179   :  { %v1927_v40 = vld [vmem:[%s5869_s5 + $0x8] sm:$0xff] }
0x117a   :  { %4826 = vtanh.f32 %v1651_v38  ;;  %v3915_v21 = vmul.f32 -1.442695, %v1651_v38 }
0x117c   :  { %4828 = vpow2.f32 %v3915_v21 }
0x1184   :  { %v4827_v53 = vpop.eup %4826 }
0x1185   :  { %1679 = vrot.lane.b32.xlu0 %v4827_v53, %s4989_s4  ;;  %v1929_v53 = vld [vmem:[%s5869_s5 + $0x18] sm:$0xff] }
0x1186   :  { %v4829_v41 = vpop.eup %4828  ;;  %v4600_v21 = vpack.c.bf16 %v1929_v53, %v1927_v40 }
0x1187   :  { %v1661_v44 = vadd.f32 1.0, %v4829_v41  ;;  %v1928_v41 = vld [vmem:[%s5869_s5 + $0x10] sm:$0xff] }
0x1189   :  { %4830 = vrcp.f32 %v1661_v44  ;;  %v1931_v44 = vld [vmem:[%s5869_s5 + $0x28] sm:$0xff] }
0x1193   :  { %v4831_v59 = vpop.eup %4830 }
0x1194   :  { %v1677_v50 = vmul.f32 %v4831_v59, %v1479_v12 }
0x119c   :  { %v5369_v42 = vpop.permute.xlu1 %1493 }
0x119d   :  { %4270 = vmatmul.mubr.msk.f32.vlgmr.msra.gmra.mrb[26].mxu0 %vm228_vm2, %v5369_v42 }
0x119e   :  { %4590 = vmatpush3.bf16.msra.mxu0 %v5077_v11  ;;  %4291 = vmatprep.mubr.msk.f32.mxu0 %vm4988_vm0, %v4986_v3 }
0x119f   :  { %4591 = vmatprep.subr.bf16.mxu0 %v4987_v4 }
0x11a2   :  { %4593 = vmatpush3.bf16.msra.mxu0 %v5106_v20 }
0x11a3   :  { %4601 = vmatprep.subr.bf16.mxu0 %v4600_v21 }
0x11f7   :  { %v1680_v45 = vpop.permute.xlu0 %1679 }
0x11f8   :  { %v1682_v47 = vmul.f32 %v4831_v59, %v1680_v45 }
0x11fa   :  { %1684 = vrot.lane.b32.xlu1 %v1682_v47, %s4989_s4 }
0x126c   :  { %v1685_v52 = vpop.permute.xlu1 %1684 }
0x126d   :  { %v1687_v11 = vadd.f32 %v1685_v52, %v1677_v50  ;;  %v1930_v50 = vld [vmem:[%s5869_s5 + $0x20] sm:$0xff]  ;;  %v1932_v52 = vld [vmem:[%s5869_s5 + $0x30] sm:$0xff] }
0x126f   :  { %4832 = vtanh.f32 %v1687_v11 }
0x1270   :  { %v1571_v54 = vpop.f32.mrb[26].mxu0 }
0x1271   :  { %v1575_v56 = vadd.f32 %v1571_v54, %v5197_v61  ;;  %v4271_v58 = vpop.f32.mrb[27].mxu0 }
0x1272   :  { %v1935_v58 = vld [vmem:[%s5869_s5 + $0x48] sm:$0xff] }
0x1273   :  { %4834 = vtanh.f32 %v1575_v56  ;;  %v3914_v62 = vmul.f32 -1.442695, %v1575_v56 }
0x1275   :  { %4836 = vpow2.f32 %v3914_v62  ;;  %v1934_v62 = vld [vmem:[%s5869_s5 + $0x40] sm:$0xff] }
0x1279   :  { %v4833_v20 = vpop.eup %4832 }
0x127a   :  { %1696 = vrot.lane.b32.xlu0 %v4833_v20, %s4989_s4  ;;  %v1937_v20 = vld [vmem:[%s5869_s5 + $0x58] sm:$0xff] }
0x127d   :  { %v4835_v49 = vpop.eup %4834 }
0x127e   :  { %1668 = vrot.lane.b32.xlu0 %v4835_v49, %s4989_s4  ;;  %v4608_v49 = vpack.c.bf16 %v1937_v20, %v1935_v58 }
0x127f   :  { %v4837_v0 = vpop.eup %4836 }
0x1280   :  { %v1655_v46 = vadd.f32 1.0, %v4837_v0  ;;  %v1936_v0 = vld [vmem:[%s5869_s5 + $0x50] sm:$0xff] }
0x1282   :  { %4838 = vrcp.f32 %v1655_v46  ;;  %v4610_v46 = vpack.c.bf16 %v1936_v0, %v1934_v62 }
0x128c   :  { %v4839_v61 = vpop.eup %4838 }
0x128d   :  { %v1666_v10 = vmul.f32 %v4839_v61, %v1468_v31 }
0x12ec   :  { %v1697_v5 = vpop.permute.xlu0 %1696 }
0x12ed   :  { %v5382_v6 = vmul.f32 %v4831_v59, %v1697_v5  ;;  %v1933_v59 = vld [vmem:[%s5869_s5 + $0x38] sm:$0xff] }
0x12ee   :  { %v4604_v47 = vpack.c.bf16 %v1933_v59, %v1931_v44 }
0x12ef   :  { %1785 = vrot.lane.b32.xlu1 %v5382_v6, %s4990_s16 }
0x12f0   :  { %v1669_v7 = vpop.permute.xlu0 %1668 }
0x12f1   :  { %v1671_v8 = vmul.f32 %v4839_v61, %v1669_v7  ;;  %v2109_v7 = vld [vmem:[%s5870_s6 + $0x8] sm:$0xff] }
0x12f3   :  { %1673 = vrot.lane.b32.xlu1 %v1671_v8, %s4989_s4 }
0x1361   :  { %v1786_v9 = vpop.permute.xlu1 %1785 }
0x1362   :  { %4303 = vmatmul.mubr.msk.f32.vlgmr.msra.gmra.mrb[16].mxu1 %vm228_vm2, %v1786_v9  ;;  %v1939_v9 = vld [vmem:[%s5869_s5 + $0x68] sm:$0xff] }
0x1363   :  { %4313 = vmatprep.mubr.msk.f32.mxu1 %vm4988_vm0, %v4986_v3 }
0x1365   :  { %v1674_v43 = vpop.permute.xlu1 %1673 }
0x1366   :  { %v5390_v12 = vadd.f32 %v1674_v43, %v1666_v10  ;;  %v1941_v10 = vld [vmem:[%s5869_s5 + $0x78] sm:$0xff] }
0x1367   :  { %v4612_v43 = vpack.c.bf16 %v1941_v10, %v1939_v9 }
0x1368   :  { %4840 = vtanh.f32 %v5390_v12 }
0x1372   :  { %v4841_v13 = vpop.eup %4840 }
0x1373   :  { %1690 = vrot.lane.b32.xlu0 %v4841_v13, %s4989_s4  ;;  %v1938_v13 = vld [vmem:[%s5869_s5 + $0x60] sm:$0xff] }
0x13e5   :  { %v1691_v63 = vpop.permute.xlu0 %1690 }
0x13e6   :  { %v1693_v14 = vmul.f32 %v4839_v61, %v1691_v63  ;;  %v2108_v61 = vld [vmem:[%s5870_s6] sm:$0xff]  ;;  %v1940_v63 = vld [vmem:[%s5869_s5 + $0x70] sm:$0xff] }
0x13e7   :  { %v5452_v8 = vpack.c.bf16 %v2109_v7, %v2108_v61 }
0x13e8   :  { %1701 = vrot.lane.b32.xlu1 %v1693_v14, %s4990_s16  ;;  %v4614_v14 = vpack.c.bf16 %v1940_v63, %v1938_v13 }
0x13e9   :  { %4618 = vmatpush3.bf16.msra.mxu1 %v5452_v8 }
0x13ea   :  { %4619 = vmatprep.subr.bf16.mxu1 %v4987_v4 }
0x1435   :  { %v1855_v51 = vpop.f32.mrb[16].mxu1 }
0x1436   :  { %v1859_v15 = vadd.f32 %v1855_v51, %v5173_v36  ;;  %v4304_v17 = vpop.f32.mrb[17].mxu1  ;;  %v2110_v51 = vld [vmem:[%s5870_s6 + $0x10] sm:$0xff] }
0x1438   :  { %4842 = vtanh.f32 %v1859_v15  ;;  %v3919_v23 = vmul.f32 -1.442695, %v1859_v15  ;;  %v2111_v15 = vld [vmem:[%s5870_s6 + $0x18] sm:$0xff] }
0x1439   :  { %v5474_v17 = vpack.c.bf16 %v2111_v15, %v2110_v51 }
0x143a   :  { %4844 = vpow2.f32 %v3919_v23 }
0x143b   :  { %4621 = vmatpush3.bf16.msra.mxu1 %v5474_v17 }
0x143c   :  { %4622 = vmatprep.subr.bf16.mxu1 %v4987_v4 }
0x143e   :  { %4314 = vmatmul.mubr.f32.vlgmr.msra.gmra.mrb[18].mxu1 %v4986_v3 }
0x143f   :  { %4324 = vmatprep.mubr.msk.f32.mxu1 %vm4988_vm0, %v4986_v3 }
0x1442   :  { %v4843_v18 = vpop.eup %4842 }
0x1443   :  { %1887 = vrot.lane.b32.xlu0 %v4843_v18, %s4989_s4 }
0x1444   :  { %v4845_v57 = vpop.eup %4844 }
0x1445   :  { %v1869_v25 = vadd.f32 1.0, %v4845_v57 }
0x1447   :  { %4846 = vrcp.f32 %v1869_v25 }
0x1451   :  { %v5402_v26 = vpop.eup %4846 }
0x1452   :  { %v1885_v28 = vmul.f32 %v5402_v26, %v1687_v11  ;;  %v4606_v11 = vpack.c.bf16 %v1932_v52, %v1930_v50 }
0x145a   :  { %v5397_v19 = vpop.permute.xlu1 %1701 }
0x145b   :  { %4292 = vmatmul.mubr.msk.f32.vlgmr.msra.gmra.mrb[28].mxu0 %vm228_vm2, %v5397_v19 }
0x145c   :  { %2043 = vmatprep.mubr.f32.mxu0 %v4986_v3 }
0x14b5   :  { %v1888_v36 = vpop.permute.xlu0 %1887 }
0x14b6   :  { %v1890_v27 = vmul.f32 %v5402_v26, %v1888_v36 }
0x14b8   :  { %1892 = vrot.lane.b32.xlu1 %v1890_v27, %s4989_s4 }
0x152a   :  { %v1893_v55 = vpop.permute.xlu1 %1892 }
0x152b   :  { %v1895_v31 = vadd.f32 %v1893_v55, %v1885_v28 }
0x152d   :  { %4848 = vtanh.f32 %v1895_v31 }
0x152e   :  { %v1779_v32 = vpop.f32.mrb[28].mxu0 }
0x152f   :  { %v1783_v35 = vadd.f32 %v1779_v32, %v5201_v1  ;;  %v4293_v37 = vpop.f32.mrb[29].mxu0  ;;  %v1926_v1 = vld [vmem:[%s5869_s5] sm:$0xff]  ;;  %s4991_s5 = smov 96  }
0x1530   :  { %v4602_v45 = vpack.c.bf16 %v1928_v41, %v1926_v1 }
0x1531   :  { %4850 = vtanh.f32 %v1783_v35  ;;  %v3918_v54 = vmul.f32 -1.442695, %v1783_v35  ;;  %v2183_v35 = vpop.f32.mrb[18].mxu1 }
0x1532   :  { %4603 = vmatpush1.bf16.msra.mxu0 %v4602_v45  ;;  %v4315_v37 = vpop.f32.mrb[19].mxu1 }
0x1533   :  { %4605 = vmatprep.subr.bf16.mxu0 %v4604_v47  ;;  %4852 = vpow2.f32 %v3918_v54 }
0x1536   :  { %4607 = vmatpush1.bf16.msra.mxu0 %v4606_v11 }
0x1537   :  { %v4849_v16 = vpop.eup %4848  ;;  %4609 = vmatprep.subr.bf16.mxu0 %v4608_v49 }
0x1538   :  { %1904 = vrot.lane.b32.xlu0 %v4849_v16, %s4989_s4  ;;  %v2113_v16 = vld [vmem:[%s5871_s7 + $0x8] sm:$0xff] }
0x153a   :  { %4611 = vmatpush1.bf16.msra.mxu0 %v4610_v46 }
0x153b   :  { %v4851_v38 = vpop.eup %4850  ;;  %4613 = vmatprep.subr.bf16.mxu0 %v4612_v43 }
0x153c   :  { %1876 = vrot.lane.b32.xlu0 %v4851_v38, %s4989_s4 }
0x153d   :  { %v4853_v56 = vpop.eup %4852 }
0x153e   :  { %v1863_v5 = vadd.f32 1.0, %v4853_v56  ;;  %4615 = vmatpush1.bf16.msra.mxu0 %v4614_v14 }
0x153f   :  { %4646 = vmatprep.subr.bf16.mxu0 %v4987_v4 }
0x1540   :  { %4854 = vrcp.f32 %v1863_v5 }
0x154a   :  { %v4855_v57 = vpop.eup %4854 }
0x154b   :  { %v1874_v27 = vmul.f32 %v4855_v57, %v5390_v12 }
0x15aa   :  { %v1905_v18 = vpop.permute.xlu0 %1904 }
0x15ab   :  { %v1907_v23 = vmul.f32 %v5402_v26, %v1905_v18 }
0x15ad   :  { %1914 = vrot.lane.b32.xlu1 %v1907_v23, %s4991_s5 }
0x15ae   :  { %v1877_v25 = vpop.permute.xlu0 %1876 }
0x15af   :  { %v1879_v36 = vmul.f32 %v4855_v57, %v1877_v25 }
0x15b1   :  { %1881 = vrot.lane.b32.xlu1 %v1879_v36, %s4989_s4 }
0x15b5   :  { %1706 = vrot.lane.b32.xlu1 %v5382_v6, %s4991_s5 }
0x15b9   :  { %1290 = vrot.lane.b32.xlu1 %v5323_v34, %s4991_s5 }
0x15bd   :  { %865 = vrot.lane.b32.xlu1 %v5267_v39, %s4991_s5 }
0x15c1   :  { %432 = vrot.lane.b32.xlu1 %v5213_v48, %s4991_s5 }
0x161f   :  { %v1915_v26 = vpop.permute.xlu1 %1914 }
0x1620   :  { %1917 = vst.msk [vmem:[#allocation2] sm:$0xff] %vm436_vm3, %v1915_v26 }
0x1623   :  { %v1882_v28 = vpop.permute.xlu1 %1881 }
0x1624   :  { %v1884_v55 = vadd.f32 %v1882_v28, %v1874_v27 }
0x1626   :  { %4856 = vtanh.f32 %v1884_v55 }
0x1627   :  { %v1707_v6 = vpop.permute.xlu1 %1706  ;;  %v1918_v31 = vld [vmem:[#allocation2] sm:$0xff] }
0x1628   :  { %1709 = vst.msk [vmem:[#allocation2 + $0x8] sm:$0xff] %vm436_vm3, %v1707_v6  ;;  %3920 = vmatmul.mubr.msk.f32.vlgmr.msra.gmra.mrb[30].mxu0 %vm1954_vm4, %v1918_v31 }
0x1629   :  { %2049 = vmatprep.mubr.f32.mxu0 %v4986_v3 }
0x162b   :  { %v1291_v39 = vpop.permute.xlu1 %1290 }
0x162c   :  { %1293 = vst.msk [vmem:[#allocation2 + $0x18] sm:$0xff] %vm436_vm3, %v1291_v39 }
0x162f   :  { %v866_v48 = vpop.permute.xlu1 %865  ;;  %v1919_v34 = vld [vmem:[#allocation2 + $0x8] sm:$0xff] }
0x1630   :  { %v4857_v32 = vpop.eup %4856  ;;  %869 = vst.msk [vmem:[#allocation2 + $0x28] sm:$0xff] %vm436_vm3, %v866_v48  ;;  %3921 = vmatmul.mubr.msk.f32.gmra.mrb[32].mxu0 %vm1954_vm4, %v1919_v34 }
0x1631   :  { %1496 = vst.msk [vmem:[#allocation2 + $0x28] sm:$0xff] %vm228_vm2, %v5369_v42  ;;  %1898 = vrot.lane.b32.xlu0 %v4857_v32, %s4989_s4  ;;  %2055 = vmatprep.mubr.f32.mxu0 %v4986_v3  ;;  %v2112_v42 = vld [vmem:[%s5871_s7] sm:$0xff] }
0x1632   :  { %v5518_v38 = vpack.c.bf16 %v2113_v16, %v2112_v42 }
0x1633   :  { %v433_v12 = vpop.permute.xlu1 %432  ;;  %v1921_v59 = vld [vmem:[#allocation2 + $0x18] sm:$0xff] }
0x1634   :  { %437 = vst.msk [vmem:[#allocation2 + $0x38] sm:$0xff] %vm436_vm3, %v433_v12  ;;  %4624 = vmatpush3.bf16.msra.mxu1 %v5518_v38  ;;  %4648 = vmatpush3.bf16.msra.mxu0 %v5518_v38 }
0x1635   :  { %1498 = vrot.lane.b32.xlu0 %v5353_v24, %s4991_s5  ;;  %4625 = vmatprep.subr.bf16.mxu1 %v4987_v4 }
0x1636   :  { %4649 = vmatprep.subr.bf16.mxu0 %v4987_v4 }
0x1639   :  { %1081 = vrot.lane.b32.xlu0 %v5295_v60, %s4991_s5  ;;  %v2115_v60 = vld [vmem:[%s5871_s7 + $0x18] sm:$0xff] }
0x163d   :  { %649 = vrot.lane.b32.xlu0 %v5238_v22, %s4991_s5  ;;  %v2114_v22 = vld [vmem:[%s5871_s7 + $0x10] sm:$0xff] }
0x163e   :  { %v5530_v24 = vpack.c.bf16 %v2115_v60, %v2114_v22 }
0x1640   :  { %4627 = vmatpush3.bf16.msra.mxu1 %v5530_v24  ;;  %4651 = vmatpush3.bf16.msra.mxu0 %v5530_v24 }
0x1641   :  { %4628 = vmatprep.subr.bf16.mxu1 %v4987_v4  ;;  %4658 = vmatprep.subr.bf16.mxu0 %v4987_v4 }
0x1643   :  { %4325 = vmatmul.mubr.f32.vlgmr.msra.gmra.mrb[20].mxu1 %v4986_v3 }
0x1644   :  { %4630 = vmatpush3.bf16.msra.mxu1 %v5452_v8  ;;  %4335 = vmatprep.mubr.msk.f32.mxu1 %vm4988_vm0, %v4986_v3 }
0x1645   :  { %4631 = vmatprep.subr.bf16.mxu1 %v4987_v4 }
0x1648   :  { %4633 = vmatpush3.bf16.msra.mxu1 %v5474_v17 }
0x1649   :  { %4634 = vmatprep.subr.bf16.mxu1 %v4987_v4 }
0x16a3   :  { %v1899_v40 = vpop.permute.xlu0 %1898 }
0x16a4   :  { %v1901_v53 = vmul.f32 %v4855_v57, %v1899_v40 }
0x16a6   :  { %1909 = vrot.lane.b32.xlu0 %v1901_v53, %s4990_s16 }
0x16a7   :  { %v1499_v1 = vpop.permute.xlu0 %1498 }
0x16a8   :  { %1501 = vst.msk [vmem:[#allocation2 + $0x10] sm:$0xff] %vm436_vm3, %v1499_v1 }
0x16ab   :  { %v1082_v21 = vpop.permute.xlu0 %1081 }
0x16ac   :  { %1085 = vst.msk [vmem:[#allocation2 + $0x20] sm:$0xff] %vm436_vm3, %v1082_v21 }
0x16ad   :  { %1288 = vst.msk [vmem:[#allocation2 + $0x20] sm:$0xff] %vm228_vm2, %v5339_v2  ;;  %v1923_v2 = vld [vmem:[#allocation2 + $0x28] sm:$0xff] }
0x16af   :  { %v650_v41 = vpop.permute.xlu0 %649  ;;  %v1920_v44 = vld [vmem:[#allocation2 + $0x10] sm:$0xff] }
0x16b0   :  { %653 = vst.msk [vmem:[#allocation2 + $0x30] sm:$0xff] %vm436_vm3, %v650_v41  ;;  %3922 = vmatmul.mubr.msk.f32.gmra.mrb[34].mxu0 %vm1954_vm4, %v1920_v44 }
0x16b1   :  { %1704 = vst.msk [vmem:[#allocation2 + $0x30] sm:$0xff] %vm228_vm2, %v5397_v19  ;;  %2061 = vmatprep.mubr.f32.mxu0 %v4986_v3  ;;  %v1942_v19 = vld [vmem:[%s5872_s8] sm:$0x3] }
0x16b2   :  { %v5566_v50 = vrot.slane %v1942_v19, %v54_v33  ;;  %v5605_v55 = vrot.slane %v1942_v19, %v58_v30 }
0x16b4   :  { %3923 = vmatmul.mubr.msk.f32.gmra.mrb[36].mxu0 %vm1954_vm4, %v1921_v59  ;;  %v1922_v45 = vld [vmem:[#allocation2 + $0x20] sm:$0xff] }
0x16b5   :  { %2067 = vmatprep.mubr.f32.mxu0 %v4986_v3 }
0x16b8   :  { %3924 = vmatmul.mubr.msk.f32.gmra.mrb[38].mxu0 %vm1954_vm4, %v1922_v45  ;;  %v1924_v47 = vld [vmem:[#allocation2 + $0x30] sm:$0xff] }
0x16b9   :  { %2073 = vmatprep.mubr.f32.mxu0 %v4986_v3 }
0x16bc   :  { %3925 = vmatmul.mubr.msk.f32.gmra.mrb[40].mxu0 %vm1954_vm4, %v1923_v2 }
0x16bd   :  { %2079 = vmatprep.mubr.f32.mxu0 %v4986_v3 }
0x16c0   :  { %3926 = vmatmul.mubr.msk.f32.gmra.mrb[42].mxu0 %vm1954_vm4, %v1924_v47 }
0x16c1   :  { %2085 = vmatprep.mubr.f32.mxu0 %v4986_v3 }
0x16fb   :  { %v2045_v52 = vpop.f32.mrb[30].mxu0 }
0x16fc   :  { %v2046_v11 = vadd.f32 %v2045_v52, %v5566_v50  ;;  %v5569_v54 = vpop.f32.mrb[31].mxu0 }
0x16fe   :  { %v2187_v56 = vadd.f32 %v2183_v35, %v2046_v11 }
0x1700   :  { %4858 = vtanh.f32 %v2187_v56  ;;  %v3928_v33 = vmul.f32 -1.442695, %v2187_v56 }
0x1702   :  { %4860 = vpow2.f32 %v3928_v33 }
0x1703   :  { %v5571_v58 = vpop.f32.mrb[32].mxu0 }
0x1704   :  { %v5573_v20 = vpop.f32.mrb[33].mxu0  ;;  %v2052_v59 = vadd.f32 %v5571_v58, %v5566_v50 }
0x170a   :  { %v4859_v49 = vpop.eup %4858 }
0x170b   :  { %2276 = vrot.lane.b32.xlu1 %v4859_v49, %s4989_s4 }
0x170c   :  { %v4861_v46 = vpop.eup %4860 }
0x170d   :  { %v2263_v5 = vadd.f32 1.0, %v4861_v46 }
0x170f   :  { %4862 = vrcp.f32 %v2263_v5 }
0x1716   :  { %v2255_v61 = vpop.f32.mrb[20].mxu1 }
0x1717   :  { %v4326_v7 = vpop.f32.mrb[21].mxu1 }
0x1718   :  { %v1910_v62 = vpop.permute.xlu0 %1909 }
0x1719   :  { %1912 = vst.msk [vmem:[#allocation2 + $0x38] sm:$0xff] %vm228_vm2, %v1910_v62  ;;  %v4863_v9 = vpop.eup %4862 }
0x171a   :  { %v2274_v26 = vmul.f32 0.0, %v4863_v9 }
0x1720   :  { %v1925_v0 = vld [vmem:[#allocation2 + $0x38] sm:$0xff] }
0x1721   :  { %3927 = vmatmul.mubr.msk.f32.gmra.mrb[44].mxu0 %vm1954_vm4, %v1925_v0 }
0x1722   :  { %4368 = vmatprep.mubr.msk.f32.mxu0 %vm4988_vm0, %v4986_v3 }
0x177d   :  { %v2277_v10 = vpop.permute.xlu1 %2276 }
0x177e   :  { %v2279_v43 = vmul.f32 %v4863_v9, %v2277_v10 }
0x1780   :  { %2281 = vrot.lane.b32.xlu0 %v2279_v43, %s4989_s4 }
0x1783   :  { %v5581_v13 = vpop.f32.mrb[34].mxu0 }
0x1784   :  { %v5583_v63 = vpop.f32.mrb[35].mxu0 }
0x1787   :  { %v5585_v14 = vpop.f32.mrb[36].mxu0 }
0x1788   :  { %v5587_v51 = vpop.f32.mrb[37].mxu0 }
0x178b   :  { %v5589_v15 = vpop.f32.mrb[38].mxu0 }
0x178c   :  { %v5591_v18 = vpop.f32.mrb[39].mxu0 }
0x178f   :  { %v5593_v23 = vpop.f32.mrb[40].mxu0 }
0x1790   :  { %v5595_v57 = vpop.f32.mrb[41].mxu0 }
0x1793   :  { %v5597_v25 = vpop.f32.mrb[42].mxu0 }
0x1794   :  { %v5599_v36 = vpop.f32.mrb[43].mxu0 }
0x17f2   :  { %v2282_v27 = vpop.permute.xlu0 %2281 }
0x17f3   :  { %v5601_v28 = vadd.f32 %v2282_v27, %v2274_v26 }
0x17f4   :  { %v5607_v6 = vpop.f32.mrb[44].mxu0 }
0x17f5   :  { %4864 = vtanh.f32 %v5601_v28  ;;  %v2089_v31 = vpop.f32.mrb[45].mxu0 }
0x17f6   :  { %v2090_v39 = vadd.f32 %v2089_v31, %v5605_v55 }
0x17f8   :  { %v2259_v48 = vadd.f32 %v2255_v61, %v2090_v39  ;;  %v2084_v61 = vadd.f32 %v5599_v36, %v5605_v55 }
0x17fa   :  { %4866 = vtanh.f32 %v2259_v48  ;;  %v3929_v12 = vmul.f32 -1.442695, %v2259_v48 }
0x17fc   :  { %4868 = vpow2.f32 %v3929_v12 }
0x17ff   :  { %v4865_v34 = vpop.eup %4864 }
0x1800   :  { %2298 = vrot.lane.b32.xlu1 %v4865_v34, %s4989_s4 }
0x1804   :  { %v4867_v32 = vpop.eup %4866 }
0x1805   :  { %2287 = vrot.lane.b32.xlu1 %v4867_v32, %s4989_s4 }
0x1806   :  { %v4869_v29 = vpop.eup %4868 }
0x1807   :  { %v2269_v30 = vadd.f32 1.0, %v4869_v29 }
0x1809   :  { %4870 = vrcp.f32 %v2269_v30 }
0x1813   :  { %v4871_v42 = vpop.eup %4870 }
0x1814   :  { %v2285_v40 = vmul.f32 0.0, %v4871_v42 }
0x1872   :  { %v2299_v35 = vpop.permute.xlu1 %2298 }
0x1873   :  { %v2301_v37 = vmul.f32 %v4863_v9, %v2299_v35 }
0x1875   :  { %2309 = vrot.lane.b32.xlu0 %v2301_v37, %s4990_s16 }
0x1877   :  { %v2288_v16 = vpop.permute.xlu1 %2287 }
0x1878   :  { %v2290_v22 = vmul.f32 %v4871_v42, %v2288_v16 }
0x187a   :  { %2292 = vrot.lane.b32.xlu0 %v2290_v22, %s4989_s4  ;;  %v2058_v22 = vadd.f32 %v5581_v13, %v5566_v50 }
0x18e7   :  { %v2310_v60 = vpop.permute.xlu0 %2309 }
0x18e8   :  { %4336 = vmatmul.mubr.msk.f32.vlgmr.msra.gmra.mrb[22].mxu1 %vm228_vm2, %v2310_v60 }
0x18e9   :  { %4636 = vmatpush3.bf16.msra.mxu1 %v5518_v38  ;;  %4346 = vmatprep.mubr.msk.f32.mxu1 %vm4988_vm0, %v4986_v3 }
0x18ea   :  { %4637 = vmatprep.subr.bf16.mxu1 %v4987_v4 }
0x18ec   :  { %v2293_v53 = vpop.permute.xlu0 %2292 }
0x18ed   :  { %v2295_v1 = vadd.f32 %v2293_v53, %v2285_v40  ;;  %4639 = vmatpush3.bf16.msra.mxu1 %v5530_v24 }
0x18ee   :  { %4640 = vmatprep.subr.bf16.mxu1 %v4987_v4 }
0x18ef   :  { %4872 = vtanh.f32 %v2295_v1 }
0x18f9   :  { %v4873_v21 = vpop.eup %4872 }
0x18fa   :  { %2304 = vrot.lane.b32.xlu1 %v4873_v21, %s4989_s4 }
0x196c   :  { %v2305_v41 = vpop.permute.xlu1 %2304 }
0x196d   :  { %v5623_v44 = vmul.f32 %v4871_v42, %v2305_v41 }
0x196f   :  { %2394 = vrot.lane.b32.xlu0 %v5623_v44, %s4990_s16 }
0x19bb   :  { %v2388_v45 = vpop.f32.mrb[22].mxu1 }
0x19bc   :  { %v2392_v2 = vadd.f32 %v2388_v45, %v2052_v59  ;;  %v4337_v47 = vpop.f32.mrb[23].mxu1 }
0x19be   :  { %4874 = vtanh.f32 %v2392_v2  ;;  %v3932_v11 = vmul.f32 -1.442695, %v2392_v2 }
0x19c0   :  { %4876 = vpow2.f32 %v3932_v11 }
0x19c8   :  { %v4875_v19 = vpop.eup %4874 }
0x19c9   :  { %2485 = vrot.lane.b32.xlu1 %v4875_v19, %s4989_s4 }
0x19ca   :  { %v4877_v56 = vpop.eup %4876 }
0x19cb   :  { %v2472_v58 = vadd.f32 1.0, %v4877_v56  ;;  %v2078_v56 = vadd.f32 %v5595_v57, %v5605_v55 }
0x19cd   :  { %4878 = vrcp.f32 %v2472_v58 }
0x19d7   :  { %v4879_v49 = vpop.eup %4878 }
0x19d8   :  { %v2483_v33 = vmul.f32 %v4879_v49, %v5601_v28 }
0x19e1   :  { %v2395_v52 = vpop.permute.xlu0 %2394 }
0x19e2   :  { %4347 = vmatmul.mubr.msk.f32.vlgmr.msra.gmra.mrb[24].mxu1 %vm228_vm2, %v2395_v52 }
0x19e3   :  { %4642 = vmatpush3.bf16.msra.mxu1 %v5452_v8  ;;  %4357 = vmatprep.mubr.msk.f32.mxu1 %vm4988_vm0, %v4986_v3 }
0x19e4   :  { %4643 = vmatprep.subr.bf16.mxu1 %v4987_v4 }
0x19e7   :  { %4645 = vmatpush3.bf16.msra.mxu1 %v5474_v17 }
0x19e8   :  { %4652 = vmatprep.subr.bf16.mxu1 %v4987_v4 }
0x1a3b   :  { %v2486_v62 = vpop.permute.xlu1 %2485 }
0x1a3c   :  { %v2488_v0 = vmul.f32 %v4879_v49, %v2486_v62 }
0x1a3e   :  { %2490 = vrot.lane.b32.xlu0 %v2488_v0, %s4989_s4 }
0x1ab0   :  { %v2491_v46 = vpop.permute.xlu0 %2490 }
0x1ab1   :  { %v2493_v5 = vadd.f32 %v2491_v46, %v2483_v33 }
0x1ab3   :  { %4880 = vtanh.f32 %v2493_v5 }
0x1ab5   :  { %v2464_v7 = vpop.f32.mrb[24].mxu1 }
0x1ab6   :  { %v2468_v9 = vadd.f32 %v2464_v7, %v2084_v61  ;;  %v4348_v10 = vpop.f32.mrb[25].mxu1 }
0x1ab8   :  { %4882 = vtanh.f32 %v2468_v9  ;;  %v3933_v27 = vmul.f32 -1.442695, %v2468_v9 }
0x1aba   :  { %4884 = vpow2.f32 %v3933_v27 }
0x1abd   :  { %v4881_v43 = vpop.eup %4880 }
0x1abe   :  { %2507 = vrot.lane.b32.xlu1 %v4881_v43, %s4989_s4 }
0x1ac2   :  { %v4883_v26 = vpop.eup %4882 }
0x1ac3   :  { %2496 = vrot.lane.b32.xlu1 %v4883_v26, %s4989_s4 }
0x1ac4   :  { %v4885_v31 = vpop.eup %4884 }
0x1ac5   :  { %v2478_v28 = vadd.f32 1.0, %v4885_v31 }
0x1ac7   :  { %4886 = vrcp.f32 %v2478_v28 }
0x1ad1   :  { %v4887_v36 = vpop.eup %4886 }
0x1ad2   :  { %v2494_v29 = vmul.f32 %v4887_v36, %v2295_v1 }
0x1b30   :  { %v2508_v39 = vpop.permute.xlu1 %2507 }
0x1b31   :  { %v2510_v48 = vmul.f32 %v4879_v49, %v2508_v39 }
0x1b33   :  { %2518 = vrot.lane.b32.xlu0 %v2510_v48, %s4990_s16 }
0x1b35   :  { %v2497_v34 = vpop.permute.xlu1 %2496 }
0x1b36   :  { %v2499_v32 = vmul.f32 %v4887_v36, %v2497_v34  ;;  %v2064_v34 = vadd.f32 %v5585_v14, %v5566_v50 }
0x1b38   :  { %2501 = vrot.lane.b32.xlu0 %v2499_v32, %s4989_s4 }
0x1ba5   :  { %v2519_v12 = vpop.permute.xlu0 %2518 }
0x1ba6   :  { %4358 = vmatmul.mubr.msk.f32.vlgmr.msra.gmra.mrb[26].mxu1 %vm228_vm2, %v2519_v12 }
0x1ba7   :  { %4654 = vmatpush3.bf16.msra.mxu1 %v5452_v8  ;;  %4379 = vmatprep.mubr.msk.f32.mxu1 %vm4988_vm0, %v4986_v3 }
0x1ba8   :  { %4655 = vmatprep.subr.bf16.mxu1 %v4987_v4 }
0x1baa   :  { %v2502_v30 = vpop.permute.xlu0 %2501 }
0x1bab   :  { %v2504_v35 = vadd.f32 %v2502_v30, %v2494_v29  ;;  %4657 = vmatpush3.bf16.msra.mxu1 %v5474_v17 }
0x1bac   :  { %4664 = vmatprep.subr.bf16.mxu1 %v4987_v4 }
0x1bad   :  { %4888 = vtanh.f32 %v2504_v35 }
0x1bb7   :  { %v4889_v37 = vpop.eup %4888 }
0x1bb8   :  { %2513 = vrot.lane.b32.xlu1 %v4889_v37, %s4989_s4 }
0x1c2a   :  { %v2514_v42 = vpop.permute.xlu1 %2513 }
0x1c2b   :  { %v5653_v16 = vmul.f32 %v4887_v36, %v2514_v42 }
0x1c2d   :  { %2604 = vrot.lane.b32.xlu0 %v5653_v16, %s4990_s16 }
0x1c79   :  { %v2598_v60 = vpop.f32.mrb[26].mxu1 }
0x1c7a   :  { %v2602_v40 = vadd.f32 %v2598_v60, %v2058_v22  ;;  %v4359_v53 = vpop.f32.mrb[27].mxu1 }
0x1c7c   :  { %4890 = vtanh.f32 %v2602_v40  ;;  %v3936_v13 = vmul.f32 -1.442695, %v2602_v40 }
0x1c7e   :  { %4892 = vpow2.f32 %v3936_v13  ;;  %v2072_v13 = vadd.f32 %v5591_v18, %v5605_v55 }
0x1c86   :  { %v4891_v1 = vpop.eup %4890 }
0x1c87   :  { %2695 = vrot.lane.b32.xlu1 %v4891_v1, %s4989_s4 }
0x1c88   :  { %v4893_v41 = vpop.eup %4892 }
0x1c89   :  { %v2682_v59 = vadd.f32 1.0, %v4893_v41 }
0x1c8b   :  { %4894 = vrcp.f32 %v2682_v59 }
0x1c95   :  { %v4895_v45 = vpop.eup %4894 }
0x1c96   :  { %v2693_v19 = vmul.f32 %v4895_v45, %v2493_v5 }
0x1c9f   :  { %v2605_v21 = vpop.permute.xlu0 %2604 }
0x1ca0   :  { %4369 = vmatmul.mubr.msk.f32.vlgmr.msra.gmra.mrb[46].mxu0 %vm228_vm2, %v2605_v21 }
0x1ca1   :  { %4660 = vmatpush3.bf16.msra.mxu0 %v5518_v38  ;;  %4390 = vmatprep.mubr.msk.f32.mxu0 %vm4988_vm0, %v4986_v3 }
0x1ca2   :  { %4661 = vmatprep.subr.bf16.mxu0 %v4987_v4 }
0x1ca5   :  { %4663 = vmatpush3.bf16.msra.mxu0 %v5530_v24 }
0x1ca6   :  { %4670 = vmatprep.subr.bf16.mxu0 %v4987_v4 }
0x1cf9   :  { %v2696_v2 = vpop.permute.xlu1 %2695 }
0x1cfa   :  { %v2698_v47 = vmul.f32 %v4895_v45, %v2696_v2 }
0x1cfc   :  { %2700 = vrot.lane.b32.xlu0 %v2698_v47, %s4989_s4 }
0x1d6e   :  { %v2701_v52 = vpop.permute.xlu0 %2700 }
0x1d6f   :  { %v2703_v11 = vadd.f32 %v2701_v52, %v2693_v19 }
0x1d71   :  { %4896 = vtanh.f32 %v2703_v11 }
0x1d73   :  { %v2674_v58 = vpop.f32.mrb[46].mxu0 }
0x1d74   :  { %v2678_v49 = vadd.f32 %v2674_v58, %v2078_v56  ;;  %v4370_v62 = vpop.f32.mrb[47].mxu0 }
0x1d76   :  { %4898 = vtanh.f32 %v2678_v49  ;;  %v3937_v46 = vmul.f32 -1.442695, %v2678_v49 }
0x1d78   :  { %4900 = vpow2.f32 %v3937_v46 }
0x1d7b   :  { %v4897_v0 = vpop.eup %4896 }
0x1d7c   :  { %2717 = vrot.lane.b32.xlu1 %v4897_v0, %s4989_s4 }
0x1d80   :  { %v4899_v33 = vpop.eup %4898 }
0x1d81   :  { %2706 = vrot.lane.b32.xlu1 %v4899_v33, %s4989_s4 }
0x1d82   :  { %v4901_v61 = vpop.eup %4900 }
0x1d83   :  { %v2688_v5 = vadd.f32 1.0, %v4901_v61 }
0x1d85   :  { %4902 = vrcp.f32 %v2688_v5 }
0x1d8f   :  { %v4903_v57 = vpop.eup %4902 }
0x1d90   :  { %v2704_v27 = vmul.f32 %v4903_v57, %v2504_v35 }
0x1dee   :  { %v2718_v7 = vpop.permute.xlu1 %2717 }
0x1def   :  { %v2720_v9 = vmul.f32 %v4895_v45, %v2718_v7 }
0x1df1   :  { %2728 = vrot.lane.b32.xlu0 %v2720_v9, %s4990_s16 }
0x1df3   :  { %v2707_v10 = vpop.permute.xlu1 %2706 }
0x1df4   :  { %v2709_v43 = vmul.f32 %v4903_v57, %v2707_v10 }
0x1df6   :  { %2711 = vrot.lane.b32.xlu0 %v2709_v43, %s4989_s4 }
0x1e63   :  { %v2729_v26 = vpop.permute.xlu0 %2728 }
0x1e64   :  { %4380 = vmatmul.mubr.msk.f32.vlgmr.msra.gmra.mrb[28].mxu1 %vm228_vm2, %v2729_v26 }
0x1e65   :  { %4666 = vmatpush3.bf16.msra.mxu1 %v5452_v8  ;;  %4401 = vmatprep.mubr.msk.f32.mxu1 %vm4988_vm0, %v4986_v3 }
0x1e66   :  { %4667 = vmatprep.subr.bf16.mxu1 %v4987_v4 }
0x1e68   :  { %v2712_v31 = vpop.permute.xlu0 %2711 }
0x1e69   :  { %v2714_v28 = vadd.f32 %v2712_v31, %v2704_v27  ;;  %4669 = vmatpush3.bf16.msra.mxu1 %v5474_v17 }
0x1e6a   :  { %4676 = vmatprep.subr.bf16.mxu1 %v4987_v4 }
0x1e6b   :  { %4904 = vtanh.f32 %v2714_v28 }
0x1e75   :  { %v4905_v39 = vpop.eup %4904 }
0x1e76   :  { %2723 = vrot.lane.b32.xlu1 %v4905_v39, %s4989_s4 }
0x1ee8   :  { %v2724_v48 = vpop.permute.xlu1 %2723 }
0x1ee9   :  { %v5682_v36 = vmul.f32 %v4903_v57, %v2724_v48  ;;  %v2070_v57 = vadd.f32 %v5589_v15, %v5566_v50 }
0x1eeb   :  { %2814 = vrot.lane.b32.xlu0 %v5682_v36, %s4990_s16 }
0x1f37   :  { %v2808_v32 = vpop.f32.mrb[28].mxu1 }
0x1f38   :  { %v2812_v12 = vadd.f32 %v2808_v32, %v2064_v34  ;;  %v4381_v29 = vpop.f32.mrb[29].mxu1 }
0x1f3a   :  { %4906 = vtanh.f32 %v2812_v12  ;;  %v3940_v14 = vmul.f32 -1.442695, %v2812_v12 }
0x1f3c   :  { %4908 = vpow2.f32 %v3940_v14 }
0x1f44   :  { %v4907_v30 = vpop.eup %4906 }
0x1f45   :  { %2905 = vrot.lane.b32.xlu1 %v4907_v30, %s4989_s4 }
0x1f46   :  { %v4909_v37 = vpop.eup %4908 }
0x1f47   :  { %v2892_v42 = vadd.f32 1.0, %v4909_v37 }
0x1f49   :  { %4910 = vrcp.f32 %v2892_v42 }
0x1f53   :  { %v4911_v22 = vpop.eup %4910 }
0x1f54   :  { %v2903_v53 = vmul.f32 %v4911_v22, %v2703_v11 }
0x1f5d   :  { %v2815_v35 = vpop.permute.xlu0 %2814 }
0x1f5e   :  { %4391 = vmatmul.mubr.msk.f32.vlgmr.msra.gmra.mrb[48].mxu0 %vm228_vm2, %v2815_v35  ;;  %v2066_v35 = vadd.f32 %v5587_v51, %v5605_v55 }
0x1f5f   :  { %4672 = vmatpush3.bf16.msra.mxu0 %v5518_v38  ;;  %4412 = vmatprep.mubr.msk.f32.mxu0 %vm4988_vm0, %v4986_v3 }
0x1f60   :  { %4673 = vmatprep.subr.bf16.mxu0 %v4987_v4 }
0x1f63   :  { %4675 = vmatpush3.bf16.msra.mxu0 %v5530_v24 }
0x1f64   :  { %4682 = vmatprep.subr.bf16.mxu0 %v4987_v4 }
0x1fb7   :  { %v2906_v60 = vpop.permute.xlu1 %2905 }
0x1fb8   :  { %v2908_v40 = vmul.f32 %v4911_v22, %v2906_v60 }
0x1fba   :  { %2910 = vrot.lane.b32.xlu0 %v2908_v40, %s4989_s4 }
0x202c   :  { %v2911_v1 = vpop.permute.xlu0 %2910 }
0x202d   :  { %v2913_v21 = vadd.f32 %v2911_v1, %v2903_v53 }
0x202f   :  { %4912 = vtanh.f32 %v2913_v21 }
0x2031   :  { %v2884_v41 = vpop.f32.mrb[48].mxu0 }
0x2032   :  { %v2888_v59 = vadd.f32 %v2884_v41, %v2072_v13  ;;  %v4392_v45 = vpop.f32.mrb[49].mxu0 }
0x2034   :  { %4914 = vtanh.f32 %v2888_v59  ;;  %v3941_v19 = vmul.f32 -1.442695, %v2888_v59 }
0x2036   :  { %4916 = vpow2.f32 %v3941_v19 }
0x2039   :  { %v4913_v2 = vpop.eup %4912 }
0x203a   :  { %2927 = vrot.lane.b32.xlu1 %v4913_v2, %s4989_s4 }
0x203e   :  { %v4915_v47 = vpop.eup %4914 }
0x203f   :  { %2916 = vrot.lane.b32.xlu1 %v4915_v47, %s4989_s4 }
0x2040   :  { %v4917_v52 = vpop.eup %4916 }
0x2041   :  { %v2898_v11 = vadd.f32 1.0, %v4917_v52 }
0x2043   :  { %4918 = vrcp.f32 %v2898_v11 }
0x204d   :  { %v4919_v18 = vpop.eup %4918 }
0x204e   :  { %v2914_v33 = vmul.f32 %v4919_v18, %v2714_v28 }
0x20ac   :  { %v2928_v56 = vpop.permute.xlu1 %2927 }
0x20ad   :  { %v2930_v58 = vmul.f32 %v4911_v22, %v2928_v56 }
0x20af   :  { %2938 = vrot.lane.b32.xlu0 %v2930_v58, %s4990_s16  ;;  %v2076_v58 = vadd.f32 %v5593_v23, %v5566_v50 }
0x20b1   :  { %v2917_v49 = vpop.permute.xlu1 %2916 }
0x20b2   :  { %v2919_v62 = vmul.f32 %v4919_v18, %v2917_v49 }
0x20b4   :  { %2921 = vrot.lane.b32.xlu0 %v2919_v62, %s4989_s4 }
0x2121   :  { %v2939_v0 = vpop.permute.xlu0 %2938 }
0x2122   :  { %4402 = vmatmul.mubr.msk.f32.vlgmr.msra.gmra.mrb[30].mxu1 %vm228_vm2, %v2939_v0 }
0x2123   :  { %4678 = vmatpush3.bf16.msra.mxu1 %v5452_v8  ;;  %4423 = vmatprep.mubr.msk.f32.mxu1 %vm4988_vm0, %v4986_v3 }
0x2124   :  { %4679 = vmatprep.subr.bf16.mxu1 %v4987_v4 }
0x2126   :  { %v2922_v46 = vpop.permute.xlu0 %2921 }
0x2127   :  { %v2924_v61 = vadd.f32 %v2922_v46, %v2914_v33  ;;  %4681 = vmatpush3.bf16.msra.mxu1 %v5474_v17 }
0x2128   :  { %4688 = vmatprep.subr.bf16.mxu1 %v4987_v4 }
0x2129   :  { %4920 = vtanh.f32 %v2924_v61 }
0x2133   :  { %v4921_v5 = vpop.eup %4920 }
0x2134   :  { %2933 = vrot.lane.b32.xlu1 %v4921_v5, %s4989_s4 }
0x21a6   :  { %v2934_v7 = vpop.permute.xlu1 %2933 }
0x21a7   :  { %v5711_v9 = vmul.f32 %v4919_v18, %v2934_v7 }
0x21a9   :  { %3024 = vrot.lane.b32.xlu0 %v5711_v9, %s4990_s16 }
0x21f5   :  { %v3018_v10 = vpop.f32.mrb[30].mxu1 }
0x21f6   :  { %v3022_v43 = vadd.f32 %v3018_v10, %v2070_v57  ;;  %v4403_v26 = vpop.f32.mrb[31].mxu1 }
0x21f8   :  { %4922 = vtanh.f32 %v3022_v43  ;;  %v3944_v15 = vmul.f32 -1.442695, %v3022_v43 }
0x21fa   :  { %4924 = vpow2.f32 %v3944_v15 }
0x2202   :  { %v4923_v27 = vpop.eup %4922 }
0x2203   :  { %3115 = vrot.lane.b32.xlu1 %v4923_v27, %s4989_s4  ;;  %v2060_v27 = vadd.f32 %v5583_v63, %v5605_v55 }
0x2204   :  { %v4925_v28 = vpop.eup %4924 }
0x2205   :  { %v3102_v39 = vadd.f32 1.0, %v4925_v28 }
0x2207   :  { %4926 = vrcp.f32 %v3102_v39 }
0x2211   :  { %v4927_v48 = vpop.eup %4926 }
0x2212   :  { %v3113_v12 = vmul.f32 %v4927_v48, %v2913_v21 }
0x221b   :  { %v3025_v31 = vpop.permute.xlu0 %3024 }
0x221c   :  { %4413 = vmatmul.mubr.msk.f32.vlgmr.msra.gmra.mrb[50].mxu0 %vm228_vm2, %v3025_v31 }
0x221d   :  { %4684 = vmatpush3.bf16.msra.mxu0 %v5518_v38  ;;  %4434 = vmatprep.mubr.msk.f32.mxu0 %vm4988_vm0, %v4986_v3 }
0x221e   :  { %4685 = vmatprep.subr.bf16.mxu0 %v4987_v4 }
0x2221   :  { %4687 = vmatpush3.bf16.msra.mxu0 %v5530_v24 }
0x2222   :  { %4694 = vmatprep.subr.bf16.mxu0 %v4987_v4 }
0x2275   :  { %v3116_v34 = vpop.permute.xlu1 %3115 }
0x2276   :  { %v3118_v32 = vmul.f32 %v4927_v48, %v3116_v34 }
0x2278   :  { %3120 = vrot.lane.b32.xlu0 %v3118_v32, %s4989_s4 }
0x22ea   :  { %v3121_v29 = vpop.permute.xlu0 %3120 }
0x22eb   :  { %v3123_v30 = vadd.f32 %v3121_v29, %v3113_v12 }
0x22ed   :  { %4928 = vtanh.f32 %v3123_v30 }
0x22ef   :  { %v3094_v14 = vpop.f32.mrb[50].mxu0 }
0x22f0   :  { %v3098_v37 = vadd.f32 %v3094_v14, %v2066_v35  ;;  %v4414_v42 = vpop.f32.mrb[51].mxu0 }
0x22f2   :  { %4930 = vtanh.f32 %v3098_v37  ;;  %v3945_v40 = vmul.f32 -1.442695, %v3098_v37 }
0x22f4   :  { %4932 = vpow2.f32 %v3945_v40 }
0x22f7   :  { %v4929_v22 = vpop.eup %4928 }
0x22f8   :  { %3137 = vrot.lane.b32.xlu1 %v4929_v22, %s4989_s4 }
0x22fc   :  { %v4931_v60 = vpop.eup %4930 }
0x22fd   :  { %3126 = vrot.lane.b32.xlu1 %v4931_v60, %s4989_s4 }
0x22fe   :  { %v4933_v53 = vpop.eup %4932 }
0x22ff   :  { %v3108_v1 = vadd.f32 1.0, %v4933_v53 }
0x2301   :  { %4934 = vrcp.f32 %v3108_v1 }
0x230b   :  { %v4935_v51 = vpop.eup %4934 }
0x230c   :  { %v3124_v2 = vmul.f32 %v4935_v51, %v2924_v61 }
0x236a   :  { %v3138_v21 = vpop.permute.xlu1 %3137 }
0x236b   :  { %v3140_v13 = vmul.f32 %v4927_v48, %v3138_v21 }
0x236d   :  { %3148 = vrot.lane.b32.xlu0 %v3140_v13, %s4990_s16 }
0x236f   :  { %v3127_v41 = vpop.permute.xlu1 %3126 }
0x2370   :  { %v3129_v59 = vmul.f32 %v4935_v51, %v3127_v41 }
0x2372   :  { %3131 = vrot.lane.b32.xlu0 %v3129_v59, %s4989_s4 }
0x23df   :  { %v3149_v45 = vpop.permute.xlu0 %3148 }
0x23e0   :  { %4424 = vmatmul.mubr.msk.f32.vlgmr.msra.gmra.mrb[32].mxu1 %vm228_vm2, %v3149_v45 }
0x23e1   :  { %4690 = vmatpush3.bf16.msra.mxu1 %v5452_v8  ;;  %4445 = vmatprep.mubr.msk.f32.mxu1 %vm4988_vm0, %v4986_v3 }
0x23e2   :  { %4691 = vmatprep.subr.bf16.mxu1 %v4987_v4 }
0x23e4   :  { %v3132_v47 = vpop.permute.xlu0 %3131 }
0x23e5   :  { %v3134_v19 = vadd.f32 %v3132_v47, %v3124_v2  ;;  %4693 = vmatpush3.bf16.msra.mxu1 %v5474_v17 }
0x23e6   :  { %4700 = vmatprep.subr.bf16.mxu1 %v4987_v4 }
0x23e7   :  { %4936 = vtanh.f32 %v3134_v19 }
0x23f1   :  { %v4937_v52 = vpop.eup %4936 }
0x23f2   :  { %3143 = vrot.lane.b32.xlu1 %v4937_v52, %s4989_s4 }
0x2464   :  { %v3144_v11 = vpop.permute.xlu1 %3143 }
0x2465   :  { %v5740_v56 = vmul.f32 %v4935_v51, %v3144_v11 }
0x2467   :  { %3232 = vrot.lane.b32.xlu0 %v5740_v56, %s4990_s16 }
0x24b3   :  { %v3226_v18 = vpop.f32.mrb[32].mxu1 }
0x24b4   :  { %v3230_v49 = vadd.f32 %v3226_v18, %v2076_v58  ;;  %v4425_v62 = vpop.f32.mrb[33].mxu1  ;;  %v2054_v58 = vadd.f32 %v5573_v20, %v5605_v55 }
0x24b6   :  { %4938 = vtanh.f32 %v3230_v49  ;;  %v3948_v23 = vmul.f32 -1.442695, %v3230_v49 }
0x24b8   :  { %4940 = vpow2.f32 %v3948_v23 }
0x24c0   :  { %v4939_v0 = vpop.eup %4938 }
0x24c1   :  { %3323 = vrot.lane.b32.xlu1 %v4939_v0, %s4989_s4 }
0x24c2   :  { %v4941_v46 = vpop.eup %4940 }
0x24c3   :  { %v3310_v61 = vadd.f32 1.0, %v4941_v46 }
0x24c5   :  { %4942 = vrcp.f32 %v3310_v61 }
0x24cf   :  { %v4943_v5 = vpop.eup %4942 }
0x24d0   :  { %v3321_v10 = vmul.f32 %v4943_v5, %v3123_v30 }
0x24d9   :  { %v3233_v33 = vpop.permute.xlu0 %3232 }
0x24da   :  { %4435 = vmatmul.mubr.msk.f32.vlgmr.msra.gmra.mrb[52].mxu0 %vm228_vm2, %v3233_v33 }
0x24db   :  { %4696 = vmatpush3.bf16.msra.mxu0 %v5518_v38  ;;  %4456 = vmatprep.mubr.msk.f32.mxu0 %vm4988_vm0, %v4986_v3 }
0x24dc   :  { %4697 = vmatprep.subr.bf16.mxu0 %v4987_v4 }
0x24df   :  { %4699 = vmatpush3.bf16.msra.mxu0 %v5530_v24 }
0x24e0   :  { %4706 = vmatprep.subr.bf16.mxu0 %v4987_v4 }
0x2533   :  { %v3324_v7 = vpop.permute.xlu1 %3323 }
0x2534   :  { %v3326_v57 = vmul.f32 %v4943_v5, %v3324_v7 }
0x2536   :  { %3328 = vrot.lane.b32.xlu0 %v3326_v57, %s4989_s4 }
0x25a8   :  { %v3329_v43 = vpop.permute.xlu0 %3328 }
0x25a9   :  { %v3331_v26 = vadd.f32 %v3329_v43, %v3321_v10 }
0x25ab   :  { %4944 = vtanh.f32 %v3331_v26 }
0x25ad   :  { %v3302_v31 = vpop.f32.mrb[52].mxu0 }
0x25ae   :  { %v3306_v15 = vadd.f32 %v3302_v31, %v2060_v27  ;;  %v4436_v28 = vpop.f32.mrb[53].mxu0 }
0x25b0   :  { %4946 = vtanh.f32 %v3306_v15  ;;  %v3949_v34 = vmul.f32 -1.442695, %v3306_v15 }
0x25b2   :  { %4948 = vpow2.f32 %v3949_v34 }
0x25b5   :  { %v4945_v39 = vpop.eup %4944 }
0x25b6   :  { %3345 = vrot.lane.b32.xlu1 %v4945_v39, %s4989_s4  ;;  %v2088_v39 = vadd.f32 %v5607_v6, %v5566_v50 }
0x25ba   :  { %v4947_v48 = vpop.eup %4946 }
0x25bb   :  { %3334 = vrot.lane.b32.xlu1 %v4947_v48, %s4989_s4 }
0x25bc   :  { %v4949_v32 = vpop.eup %4948 }
0x25bd   :  { %v3316_v12 = vadd.f32 1.0, %v4949_v32 }
0x25bf   :  { %4950 = vrcp.f32 %v3316_v12 }
0x25c9   :  { %v4951_v63 = vpop.eup %4950 }
0x25ca   :  { %v3332_v42 = vmul.f32 %v4951_v63, %v3134_v19 }
0x2628   :  { %v3346_v29 = vpop.permute.xlu1 %3345 }
0x2629   :  { %v3348_v30 = vmul.f32 %v4943_v5, %v3346_v29 }
0x262b   :  { %3356 = vrot.lane.b32.xlu0 %v3348_v30, %s4990_s16 }
0x262d   :  { %v3335_v35 = vpop.permute.xlu1 %3334 }
0x262e   :  { %v3337_v14 = vmul.f32 %v4951_v63, %v3335_v35 }
0x2630   :  { %3339 = vrot.lane.b32.xlu0 %v3337_v14, %s4989_s4 }
0x269d   :  { %v3357_v37 = vpop.permute.xlu0 %3356 }
0x269e   :  { %4446 = vmatmul.mubr.msk.f32.vlgmr.msra.gmra.mrb[34].mxu1 %vm228_vm2, %v3357_v37 }
0x269f   :  { %4702 = vmatpush3.bf16.msra.mxu1 %v5452_v8  ;;  %4467 = vmatprep.mubr.msk.f32.mxu1 %vm4988_vm0, %v4986_v3  ;;  %v2082_v8 = vadd.f32 %v5597_v25, %v5566_v50 }
0x26a0   :  { %4703 = vmatprep.subr.bf16.mxu1 %v4987_v4 }
0x26a2   :  { %v3340_v22 = vpop.permute.xlu0 %3339 }
0x26a3   :  { %v3342_v60 = vadd.f32 %v3340_v22, %v3332_v42  ;;  %4705 = vmatpush3.bf16.msra.mxu1 %v5474_v17  ;;  %v2048_v22 = vadd.f32 %v5569_v54, %v5605_v55  ;;  %v3783_v54 = vld [vmem:[%s5873_s9 + $0x8] sm:$0xff]  ;;  %v3784_v55 = vld [vmem:[%s5873_s9 + $0x10] sm:$0xff] }
0x26a4   :  { %4712 = vmatprep.subr.bf16.mxu1 %v4987_v4 }
0x26a5   :  { %4952 = vtanh.f32 %v3342_v60 }
0x26af   :  { %v4953_v40 = vpop.eup %4952 }
0x26b0   :  { %3351 = vrot.lane.b32.xlu1 %v4953_v40, %s4989_s4 }
0x2722   :  { %v3352_v53 = vpop.permute.xlu1 %3351 }
0x2723   :  { %v5769_v1 = vmul.f32 %v4951_v63, %v3352_v53 }
0x2725   :  { %3440 = vrot.lane.b32.xlu0 %v5769_v1, %s4990_s16 }
0x2771   :  { %v3434_v21 = vpop.f32.mrb[34].mxu1 }
0x2772   :  { %v3438_v13 = vadd.f32 %v3434_v21, %v2082_v8  ;;  %v4447_v51 = vpop.f32.mrb[35].mxu1 }
0x2774   :  { %4954 = vtanh.f32 %v3438_v13  ;;  %v3952_v25 = vmul.f32 -1.442695, %v3438_v13 }
0x2776   :  { %4956 = vpow2.f32 %v3952_v25 }
0x277e   :  { %v4955_v17 = vpop.eup %4954 }
0x277f   :  { %3531 = vrot.lane.b32.xlu1 %v4955_v17, %s4989_s4  ;;  %v3785_v17 = vld [vmem:[%s5873_s9 + $0x18] sm:$0xff] }
0x2780   :  { %v4957_v59 = vpop.eup %4956 }
0x2781   :  { %v3518_v45 = vadd.f32 1.0, %v4957_v59 }
0x2783   :  { %4958 = vrcp.f32 %v3518_v45  ;;  %v3786_v45 = vld [vmem:[%s5873_s9 + $0x20] sm:$0xff] }
0x278d   :  { %v4959_v2 = vpop.eup %4958 }
0x278e   :  { %v3529_v52 = vmul.f32 %v4959_v2, %v3331_v26 }
0x2797   :  { %v3441_v41 = vpop.permute.xlu0 %3440 }
0x2798   :  { %4457 = vmatmul.mubr.msk.f32.vlgmr.msra.gmra.mrb[54].mxu0 %vm228_vm2, %v3441_v41  ;;  %v4716_v41 = vpack.c.bf16 %v3785_v17, %v3784_v55 }
0x2799   :  { %4708 = vmatpush3.bf16.msra.mxu0 %v5518_v38  ;;  %4478 = vmatprep.mubr.msk.f32.mxu0 %vm4988_vm0, %v4986_v3 }
0x279a   :  { %4709 = vmatprep.subr.bf16.mxu0 %v4987_v4 }
0x279d   :  { %4711 = vmatpush3.bf16.msra.mxu0 %v5530_v24 }
0x27f1   :  { %v3532_v47 = vpop.permute.xlu1 %3531 }
0x27f2   :  { %v3534_v19 = vmul.f32 %v4959_v2, %v3532_v47 }
0x27f4   :  { %3536 = vrot.lane.b32.xlu0 %v3534_v19, %s4989_s4 }
0x2866   :  { %v3537_v11 = vpop.permute.xlu0 %3536 }
0x2867   :  { %v3539_v38 = vadd.f32 %v3537_v11, %v3529_v52  ;;  %v3788_v52 = vld [vmem:[%s5873_s9 + $0x30] sm:$0xff]  ;;  %v3789_v11 = vld [vmem:[%s5873_s9 + $0x38] sm:$0xff] }
0x2869   :  { %4960 = vtanh.f32 %v3539_v38 }
0x286b   :  { %v3510_v18 = vpop.f32.mrb[54].mxu0 }
0x286c   :  { %v3514_v49 = vadd.f32 %v3510_v18, %v2054_v58  ;;  %v4458_v24 = vpop.f32.mrb[55].mxu0 }
0x286e   :  { %4962 = vtanh.f32 %v3514_v49  ;;  %v3953_v33 = vmul.f32 -1.442695, %v3514_v49 }
0x2870   :  { %4964 = vpow2.f32 %v3953_v33 }
0x2873   :  { %v4961_v62 = vpop.eup %4960 }
0x2874   :  { %3553 = vrot.lane.b32.xlu1 %v4961_v62, %s4989_s4 }
0x2878   :  { %v4963_v0 = vpop.eup %4962 }
0x2879   :  { %3542 = vrot.lane.b32.xlu1 %v4963_v0, %s4989_s4 }
0x287a   :  { %v4965_v23 = vpop.eup %4964 }
0x287b   :  { %v3524_v46 = vadd.f32 1.0, %v4965_v23 }
0x287d   :  { %4966 = vrcp.f32 %v3524_v46 }
0x2887   :  { %v4967_v20 = vpop.eup %4966 }
0x2888   :  { %v3540_v43 = vmul.f32 %v4967_v20, %v3342_v60 }
0x28e6   :  { %v3554_v61 = vpop.permute.xlu1 %3553 }
0x28e7   :  { %v3556_v5 = vmul.f32 %v4959_v2, %v3554_v61  ;;  %v3787_v2 = vld [vmem:[%s5873_s9 + $0x28] sm:$0xff] }
0x28e8   :  { %v4719_v47 = vpack.c.bf16 %v3787_v2, %v3786_v45 }
0x28e9   :  { %3564 = vrot.lane.b32.xlu0 %v3556_v5, %s4990_s16 }
0x28eb   :  { %v3543_v7 = vpop.permute.xlu1 %3542 }
0x28ec   :  { %v3545_v57 = vmul.f32 %v4967_v20, %v3543_v7 }
0x28ee   :  { %3547 = vrot.lane.b32.xlu0 %v3545_v57, %s4989_s4 }
0x295b   :  { %v3565_v10 = vpop.permute.xlu0 %3564 }
0x295c   :  { %4468 = vmatmul.mubr.msk.f32.vlgmr.msra.gmra.mrb[36].mxu1 %vm228_vm2, %v3565_v10 }
0x295d   :  { %4497 = vmatprep.mubr.msk.f32.mxu1 %vm4988_vm0, %v4986_v3 }
0x2960   :  { %v3548_v26 = vpop.permute.xlu0 %3547 }
0x2961   :  { %v5792_v27 = vadd.f32 %v3548_v26, %v3540_v43  ;;  %v3958_v43 = vld [vmem:[%s5874_s10] ss:$0 sm:$0xff] }
0x2963   :  { %4968 = vtanh.f32 %v5792_v27 }
0x296d   :  { %v4969_v31 = vpop.eup %4968 }
0x296e   :  { %3559 = vrot.lane.b32.xlu1 %v4969_v31, %s4989_s4 }
0x29e0   :  { %v3560_v15 = vpop.permute.xlu1 %3559 }
0x29e1   :  { %v5796_v28 = vmul.f32 %v4967_v20, %v3560_v15 }
0x29e3   :  { %3648 = vrot.lane.b32.xlu0 %v5796_v28, %s4990_s16 }
0x2a2f   :  { %v3642_v48 = vpop.f32.mrb[36].mxu1 }
0x2a30   :  { %v3646_v3 = vadd.f32 %v3642_v48, %v2088_v39  ;;  %v4469_v34 = vpop.f32.mrb[37].mxu1 }
0x2a32   :  { %4970 = vtanh.f32 %v3646_v3  ;;  %v3956_v29 = vmul.f32 -1.442695, %v3646_v3 }
0x2a34   :  { %4972 = vpow2.f32 %v3956_v29 }
0x2a3c   :  { %v4971_v32 = vpop.eup %4970 }
0x2a3d   :  { %3739 = vrot.lane.b32.xlu1 %v4971_v32, %s4989_s4 }
0x2a3e   :  { %v4973_v30 = vpop.eup %4972 }
0x2a3f   :  { %v3726_v63 = vadd.f32 1.0, %v4973_v30 }
0x2a41   :  { %4974 = vrcp.f32 %v3726_v63 }
0x2a4b   :  { %v4975_v35 = vpop.eup %4974 }
0x2a4c   :  { %v3737_v50 = vmul.f32 %v4975_v35, %v3539_v38  ;;  %v4722_v38 = vpack.c.bf16 %v3789_v11, %v3788_v52 }
0x2a55   :  { %v3649_v12 = vpop.permute.xlu0 %3648 }
0x2a56   :  { %4479 = vmatmul.mubr.msk.f32.vlgmr.msra.gmra.mrb[56].mxu0 %vm228_vm2, %v3649_v12 }
0x2aaf   :  { %v3740_v14 = vpop.permute.xlu1 %3739 }
0x2ab0   :  { %v3742_v37 = vmul.f32 %v4975_v35, %v3740_v14 }
0x2ab2   :  { %3744 = vrot.lane.b32.xlu0 %v3742_v37, %s4989_s4 }
0x2ab6   :  { %2314 = vrot.lane.b32.xlu0 %v5623_v44, %s4991_s5  ;;  %v3782_v44 = vld [vmem:[%s5873_s9] sm:$0xff] }
0x2ab7   :  { %v4713_v51 = vpack.c.bf16 %v3783_v54, %v3782_v44 }
0x2ab9   :  { %4714 = vmatpush3.bf16.msra.mxu1 %v4713_v51 }
0x2aba   :  { %4715 = vmatprep.subr.bf16.mxu1 %v4987_v4 }
0x2abd   :  { %4717 = vmatpush3.bf16.msra.mxu1 %v4716_v41 }
0x2abe   :  { %4718 = vmatprep.subr.bf16.mxu1 %v4987_v4 }
0x2ac1   :  { %4720 = vmatpush3.bf16.msra.mxu1 %v4719_v47 }
0x2ac2   :  { %4721 = vmatprep.subr.bf16.mxu1 %v4987_v4 }
0x2ac5   :  { %4723 = vmatpush3.bf16.msra.mxu1 %v4722_v38 }
0x2b24   :  { %v3745_v6 = vpop.permute.xlu0 %3744 }
0x2b25   :  { %v3747_v42 = vadd.f32 %v3745_v6, %v3737_v50 }
0x2b27   :  { %4976 = vtanh.f32 %v3747_v42 }
0x2b28   :  { %v2315_v60 = vpop.permute.xlu0 %2314 }
0x2b29   :  { %2318 = vst.msk [vmem:[#allocation3 + $0x38] sm:$0xff] %vm436_vm3, %v2315_v60  ;;  %v3718_v40 = vpop.f32.mrb[56].mxu0 }
0x2b2a   :  { %v3722_v53 = vadd.f32 %v3718_v40, %v2048_v22  ;;  %v4480_v8 = vpop.f32.mrb[57].mxu0 }
0x2b2c   :  { %4978 = vtanh.f32 %v3722_v53  ;;  %v3957_v25 = vmul.f32 -1.442695, %v3722_v53 }
0x2b2e   :  { %4980 = vpow2.f32 %v3957_v25 }
0x2b31   :  { %v4977_v21 = vpop.eup %4976 }
0x2b32   :  { %3761 = vrot.lane.b32.xlu1 %v4977_v21, %s4989_s4 }
0x2b36   :  { %v4979_v13 = vpop.eup %4978 }
0x2b37   :  { %3750 = vrot.lane.b32.xlu0 %v4979_v13, %s4989_s4 }
0x2b38   :  { %v4981_v59 = vpop.eup %4980 }
0x2b39   :  { %v3732_v19 = vadd.f32 1.0, %v4981_v59 }
0x2b3b   :  { %4982 = vrcp.f32 %v3732_v19 }
0x2b45   :  { %v4983_v49 = vpop.eup %4982 }
0x2b46   :  { %v3748_v0 = vmul.f32 %v4983_v49, %v5792_v27 }
0x2ba4   :  { %v3762_v58 = vpop.permute.xlu1 %3761 }
0x2ba5   :  { %v3764_v18 = vmul.f32 %v4975_v35, %v3762_v58 }
0x2ba7   :  { %3772 = vrot.lane.b32.xlu1 %v3764_v18, %s4990_s16 }
0x2ba9   :  { %v3751_v24 = vpop.permute.xlu0 %3750 }
0x2baa   :  { %v3753_v62 = vmul.f32 %v4983_v49, %v3751_v24 }
0x2bac   :  { %3755 = vrot.lane.b32.xlu1 %v3753_v62, %s4989_s4 }
0x2bb0   :  { %2524 = vrot.lane.b32.xlu1 %v5653_v16, %s4991_s5 }
0x2bb4   :  { %2944 = vrot.lane.b32.xlu1 %v5711_v9, %s4991_s5 }
0x2bb8   :  { %3361 = vrot.lane.b32.xlu1 %v5769_v1, %s4991_s5 }
0x2c19   :  { %v3773_v4 = vpop.permute.xlu1 %3772 }
0x2c1a   :  { %3775 = vst.msk [vmem:[#allocation3 + $0x38] sm:$0xff] %vm228_vm2, %v3773_v4 }
0x2c1e   :  { %v3756_v33 = vpop.permute.xlu1 %3755 }
0x2c1f   :  { %v3758_v23 = vadd.f32 %v3756_v33, %v3748_v0 }
0x2c21   :  { %4984 = vtanh.f32 %v3758_v23  ;;  %v3781_v46 = vld [vmem:[#allocation3 + $0x38] sm:$0xff] }
0x2c22   :  { %4498 = vmatmul.mubr.msk.f32.vlgmr.msra.gmra.mrb[38].mxu1 %vm1954_vm4, %v3781_v46  ;;  %v2525_v61 = vpop.permute.xlu1 %2524 }
0x2c26   :  { %v2945_v5 = vpop.permute.xlu1 %2944 }
0x2c2a   :  { %v3362_v16 = vpop.permute.xlu1 %3361 }
0x2c2b   :  { %v4985_v20 = vpop.eup %4984 }
0x2c2c   :  { %3767 = vrot.lane.b32.xlu0 %v4985_v20, %s4989_s4 }
0x2c30   :  { %2734 = vrot.lane.b32.xlu0 %v5682_v36, %s4991_s5 }
0x2c34   :  { %3153 = vrot.lane.b32.xlu0 %v5740_v56, %s4991_s5 }
0x2c38   :  { %3569 = vrot.lane.b32.xlu0 %v5796_v28, %s4991_s5 }
0x2c9e   :  { %v3768_v9 = vpop.permute.xlu0 %3767 }
0x2c9f   :  { %v3770_v1 = vmul.f32 %v4983_v49, %v3768_v9 }
0x2ca1   :  { %3777 = vrot.lane.b32.xlu1 %v3770_v1, %s4991_s5 }
0x2ca2   :  { %v2735_v7 = vpop.permute.xlu0 %2734 }
0x2ca6   :  { %v3154_v57 = vpop.permute.xlu0 %3153 }
0x2caa   :  { %v3570_v10 = vpop.permute.xlu0 %3569 }
0x2cf5   :  { %v3866_v26 = vpop.f32.mrb[38].mxu1 }
0x2cf6   :  { %v3867_v27 = vadd.f32 %v3958_v43, %v3866_v26  ;;  %v4499_v36 = vpop.f32.mrb[39].mxu1 }
0x2cf8   :  { %3870 = vst [vmem:[%s5875_s11] sm:$0xff] %v3867_v27 }
0x2d13   :  { %v3778_v56 = vpop.permute.xlu1 %3777 }

</bundles_post_ra>
